<compile_context>
chip_gen: v7x
topology: tpu7x:2x2x1
jax: 0.10.0
libtpu: 0.0.40
codegen_flags: <defaults>
</compile_context>

<pallas_src>
import functools

import jax
import jax.numpy as jnp
from jax import lax
from jax.experimental import pallas as pl
from jax.experimental.pallas import tpu as pltpu


# ----------------------------------------------------------------------------
# Small helpers
# ----------------------------------------------------------------------------
def _row_tile(n, cap):
    """Largest tile <= cap that divides n (and is a multiple of 8 if < n)."""
    if n <= cap:
        return n
    for t in range(cap, 0, -1):
        if n % t == 0 and t % 8 == 0:
            return t
    return n


def _vmem_full(shape):
    """BlockSpec covering the whole array (single block)."""
    return pl.BlockSpec(shape, lambda *_: (0,) * len(shape))


# ----------------------------------------------------------------------------
# Pallas kernels
# ----------------------------------------------------------------------------
def _image_encoder_kernel(p_ref, cw_ref, cb_ref, fw_ref, fb_ref, o_ref,
                          acc_ref, *, inv_hw):
    """Fused conv-as-matmul + ReLU + mean-pool (accumulated) + FC + l2norm.

    grid = (B, HW_tiles); the pooled-sum accumulator lives in VMEM scratch and
    the tiny FC/normalize runs only on the last HW tile.
    """
    j = pl.program_id(1)

    @pl.when(j == 0)
    def _init():
        acc_ref[...] = jnp.zeros_like(acc_ref)

    x = p_ref[0]                                               # (hw_tile, CK)
    conv = jnp.dot(x, cw_ref[...], preferred_element_type=jnp.float32)
    conv = jnp.maximum(conv + cb_ref[...], 0.0)                # (hw_tile, Cp)
    acc_ref[...] += jnp.sum(conv, axis=0, keepdims=True)       # (1, Cp)

    @pl.when(j == pl.num_programs(1) - 1)
    def _finalize():
        pooled = acc_ref[...] * inv_hw                         # (1, Cp)
        z = jnp.dot(pooled, fw_ref[...],
                    preferred_element_type=jnp.float32) + fb_ref[...]
        nrm = jnp.sqrt(jnp.sum(z * z, axis=-1, keepdims=True))
        o_ref[0] = z / jnp.maximum(nrm, 1e-12)                 # torch-style eps


def _gru_input_proj_kernel(x_ref, wr_ref, wz_ref, wn_ref,
                           br_ref, bz_ref, bn_ref,
                           gr_ref, gz_ref, gn_ref):
    """Hoisted GRU input projection: gx_g = x @ W_ig + b_ig for g in {r,z,n}."""
    x = x_ref[...]
    gr_ref[...] = jnp.dot(x, wr_ref[...],
                          preferred_element_type=jnp.float32) + br_ref[...]
    gz_ref[...] = jnp.dot(x, wz_ref[...],
                          preferred_element_type=jnp.float32) + bz_ref[...]
    gn_ref[...] = jnp.dot(x, wn_ref[...],
                          preferred_element_type=jnp.float32) + bn_ref[...]


def _gru_decode_kernel(lens_ref, gxr_ref, gxz_ref, gxn_ref,
                       whr_ref, whz_ref, whn_ref,
                       bhr_ref, bhz_ref, bhn_ref,
                       w1_ref, b1_ref, w2_ref, b2_ref,
                       zcap_ref, recon_ref, *, seq_len):
    """Full GRU recurrence (PyTorch semantics, separate b_ih/b_hh, r inside
    the candidate gate) + length-based final-hidden select + l2norm + 2-layer
    target decoder, all in one kernel invocation."""
    B, H = zcap_ref.shape
    lens = lens_ref[...]                                       # (B, 1) int32

    def step(t, carry):
        h, h_fin = carry
        gr = gxr_ref[t] + jnp.dot(h, whr_ref[...],
                                  preferred_element_type=jnp.float32) + bhr_ref[...]
        gz = gxz_ref[t] + jnp.dot(h, whz_ref[...],
                                  preferred_element_type=jnp.float32) + bhz_ref[...]
        gnh = jnp.dot(h, whn_ref[...],
                      preferred_element_type=jnp.float32) + bhn_ref[...]
        r = jax.nn.sigmoid(gr)
        z = jax.nn.sigmoid(gz)
        n = jnp.tanh(gxn_ref[t] + r * gnh)
        h_new = (1.0 - z) * n + z * h
        h_fin = jnp.where(lens - 1 == t, h_new, h_fin)         # select last step
        return h_new, h_fin

    h0 = jnp.zeros((B, H), jnp.float32)
    # TODO(synk): for very long sequences, chunk the time axis over a grid
    # instead of keeping all gx_* in VMEM at once.
    _, h_fin = lax.fori_loop(0, seq_len, step, (h0, h0), unroll=True)

    nrm = jnp.sqrt(jnp.sum(h_fin * h_fin, axis=-1, keepdims=True))
    z_cap = h_fin / jnp.maximum(nrm, 1e-12)
    zcap_ref[...] = z_cap

    # Target decoder: Linear -> ReLU -> Linear (fused; weights prefetch under
    # the recurrence, tiny matmuls stay in VMEM).
    h1 = jnp.maximum(
        jnp.dot(z_cap, w1_ref[...], preferred_element_type=jnp.float32) + b1_ref[...],
        0.0)
    recon_ref[...] = jnp.dot(h1, w2_ref[...],
                             preferred_element_type=jnp.float32) + b2_ref[...]


# ----------------------------------------------------------------------------
# Forward pass: (images, caption, cap_lengths) -> (z_images, z_captions, recon)
# ----------------------------------------------------------------------------
def image_caption_encoder_forward(params, images, caption, cap_lengths):
    f32 = jnp.float32

    # ---------------- Image encoder ----------------
    # NCHW -> NHWC once (small raw input), then channel-last zero-padded 3x3
    # im2col so no large patch-tensor transpose is materialized in HBM.
    x = jnp.transpose(images, (0, 2, 3, 1)).astype(f32)        # (B,H,W,C)
    B, H, W, C = x.shape
    xp = jnp.pad(x, ((0, 0), (1, 1), (1, 1), (0, 0)))
    cols = [xp[:, dy:dy + H, dx:dx + W, :] for dy in range(3) for dx in range(3)]
    patches = jnp.concatenate(cols, axis=-1).reshape(B, H * W, 9 * C)
    HW, CK = H * W, 9 * C

    # Zero-pad conv output channels to a 128-lane multiple (numerically
    # identical: ReLU(0)=0 contributes nothing through the zero-padded FC rows)
    Cout = params["conv_w"].shape[1]
    D = params["img_fc_w"].shape[1]
    Cp = ((Cout + 127) // 128) * 128
    conv_w = jnp.pad(params["conv_w"], ((0, 0), (0, Cp - Cout)))
    conv_b = jnp.pad(params["conv_b"], (0, Cp - Cout)).reshape(1, Cp)
    img_fc_w = jnp.pad(params["img_fc_w"], ((0, Cp - Cout), (0, 0)))
    img_fc_b = params["img_fc_b"].reshape(1, D)

    hw_tile = _row_tile(HW, 512)
    z_img = pl.pallas_call(
        functools.partial(_image_encoder_kernel, inv_hw=1.0 / HW),
        out_shape=jax.ShapeDtypeStruct((B, 1, D), f32),
        grid=(B, HW // hw_tile),
        in_specs=[
            pl.BlockSpec((1, hw_tile, CK), lambda b, j: (b, j, 0)),
            pl.BlockSpec((CK, Cp), lambda b, j: (0, 0)),
            pl.BlockSpec((1, Cp), lambda b, j: (0, 0)),
            pl.BlockSpec((Cp, D), lambda b, j: (0, 0)),
            pl.BlockSpec((1, D), lambda b, j: (0, 0)),
        ],
        out_specs=pl.BlockSpec((1, 1, D), lambda b, j: (b, 0, 0)),
        scratch_shapes=[pltpu.VMEM((1, Cp), f32)],
        compiler_params=pltpu.CompilerParams(
            dimension_semantics=("parallel", "arbitrary")),
    )(patches, conv_w, conv_b, img_fc_w, img_fc_b)
    z_images = z_img.reshape(B, D)

    # ---------------- Caption encoder (+ fused target decoder) ----------------
    # Embedding gather stays as XLA glue.
    emb = params["embed"][caption].astype(f32)                 # (B, T, E)
    Bc, T, E = emb.shape
    Hh = params["gru_wh_r"].shape[0]
    x_tb = jnp.transpose(emb, (1, 0, 2)).reshape(T * Bc, E)    # time-major rows

    bih = [params[k].reshape(1, Hh) for k in ("gru_bih_r", "gru_bih_z", "gru_bih_n")]
    bhh = [params[k].reshape(1, Hh) for k in ("gru_bhh_r", "gru_bhh_z", "gru_bhh_n")]

    # (a) hoisted input projection: one batched matmul per gate over all T*B rows.
    TB = T * Bc
    tm = _row_tile(TB, 256)
    gx = pl.pallas_call(
        _gru_input_proj_kernel,
        out_shape=(jax.ShapeDtypeStruct((TB, Hh), f32),) * 3,
        grid=(TB // tm,),
        in_specs=[pl.BlockSpec((tm, E), lambda i: (i, 0))]
                 + [pl.BlockSpec((E, Hh), lambda i: (0, 0))] * 3
                 + [pl.BlockSpec((1, Hh), lambda i: (0, 0))] * 3,
        out_specs=[pl.BlockSpec((tm, Hh), lambda i: (i, 0))] * 3,
        compiler_params=pltpu.CompilerParams(dimension_semantics=("parallel",)),
    )(x_tb, params["gru_wx_r"], params["gru_wx_z"], params["gru_wx_n"], *bih)
    gx_r, gx_z, gx_n = (g.reshape(T, Bc, Hh) for g in gx)

    # (b) recurrence + final-hidden select + l2norm + target decoder, one launch.
    lens2d = cap_lengths.reshape(Bc, 1).astype(jnp.int32)
    R = params["dec_w2"].shape[1]
    F = params["dec_w1"].shape[1]
    dec_b1 = params["dec_b1"].reshape(1, F)
    dec_b2 = params["dec_b2"].reshape(1, R)

    rec_inputs = (lens2d, gx_r, gx_z, gx_n,
                  params["gru_wh_r"], params["gru_wh_z"], params["gru_wh_n"],
                  *bhh,
                  params["dec_w1"], dec_b1, params["dec_w2"], dec_b2)
    z_captions, reconstructions = pl.pallas_call(
        functools.partial(_gru_decode_kernel, seq_len=T),
        out_shape=(jax.ShapeDtypeStruct((Bc, Hh), f32),
                   jax.ShapeDtypeStruct((Bc, R), f32)),
        grid=(1,),
        in_specs=[_vmem_full(a.shape) for a in rec_inputs],
        out_specs=[_vmem_full((Bc, Hh)), _vmem_full((Bc, R))],
        compiler_params=pltpu.CompilerParams(dimension_semantics=("arbitrary",)),
    )(*rec_inputs)

    return z_images, z_captions, reconstructions


# ----------------------------------------------------------------------------
# Deterministic synthetic parameters (GRU weights pre-split per gate r/z/n,
# with separate b_ih / b_hh, matching torch.nn.GRU semantics).
# ----------------------------------------------------------------------------
def init_params(key, *, c_in, c_conv, embed_dim, vocab_size,
                hidden_features, reconstruction_dim):
    ks = jax.random.split(key, 20)
    s = 0.05
    ck = c_in * 9
    H = embed_dim  # GRU hidden == embed_dim

    def rn(k, shape):
        return s * jax.random.normal(k, shape, jnp.float32)

    return {
        # image encoder
        "conv_w":    rn(ks[0], (ck, c_conv)),
        "conv_b":    rn(ks[1], (c_conv,)),
        "img_fc_w":  rn(ks[2], (c_conv, embed_dim)),
        "img_fc_b":  rn(ks[3], (embed_dim,)),
        # caption encoder
        "embed":     rn(ks[4], (vocab_size, embed_dim)),
        "gru_wx_r":  rn(ks[5], (embed_dim, H)),
        "gru_wx_z":  rn(ks[6], (embed_dim, H)),
        "gru_wx_n":  rn(ks[7], (embed_dim, H)),
        "gru_wh_r":  rn(ks[8], (H, H)),
        "gru_wh_z":  rn(ks[9], (H, H)),
        "gru_wh_n":  rn(ks[10], (H, H)),
        "gru_bih_r": rn(ks[11], (H,)),
        "gru_bih_z": rn(ks[12], (H,)),
        "gru_bih_n": rn(ks[13], (H,)),
        "gru_bhh_r": rn(ks[14], (H,)),
        "gru_bhh_z": rn(ks[15], (H,)),
        "gru_bhh_n": rn(ks[16], (H,)),
        # target decoder
        "dec_w1":    rn(ks[17], (embed_dim, hidden_features)),
        "dec_b1":    jnp.zeros((hidden_features,), jnp.float32),
        "dec_w2":    rn(ks[18], (hidden_features, reconstruction_dim)),
        "dec_b2":    jnp.zeros((reconstruction_dim,), jnp.float32),
    }


if __name__ == "__main__":
    B, C, S = 2, 4, 16          # batch, image channels, spatial
    T = 8                       # caption length
    EMBED_DIM = 32
    VOCAB = 50
    C_CONV = 8
    HIDDEN_FEATURES = 64
    RECON_DIM = 32

    key = jax.random.PRNGKey(0)
    k_img, k_cap, k_par = jax.random.split(key, 3)

    images = jax.random.normal(k_img, (B, C, S, S), jnp.float32)          # NCHW
    caption = jax.random.randint(k_cap, (B, T), 1, VOCAB, jnp.int32)
    cap_lengths = jnp.array([T, T - 3], jnp.int32)

    params = init_params(k_par, c_in=C, c_conv=C_CONV, embed_dim=EMBED_DIM,
                         vocab_size=VOCAB, hidden_features=HIDDEN_FEATURES,
                         reconstruction_dim=RECON_DIM)

    fwd = jax.jit(image_caption_encoder_forward)
    z_images, z_captions, reconstructions = fwd(params, images, caption, cap_lengths)
    jax.block_until_ready((z_images, z_captions, reconstructions))

    assert z_images.shape == (B, EMBED_DIM)
    assert z_captions.shape == (B, EMBED_DIM)
    assert reconstructions.shape == (B, RECON_DIM)
    print("KERNEL_OK")
</pallas_src>

<mosaic_0001>
module attributes {stable_mosaic.version = 11 : i64} {
  func.func @_image_encoder_kernel(%arg0: i32, %arg1: i32, %arg2: memref<1x256x36xf32, #tpu.memory_space<vmem>>, %arg3: memref<36x128xf32, #tpu.memory_space<vmem>>, %arg4: memref<1x128xf32, #tpu.memory_space<vmem>>, %arg5: memref<128x32xf32, #tpu.memory_space<vmem>>, %arg6: memref<1x32xf32, #tpu.memory_space<vmem>>, %arg7: memref<1x1x32xf32, #tpu.memory_space<vmem>>, %arg8: memref<1x128xf32, #tpu.memory_space<vmem>>) attributes {dimension_semantics = [#tpu.dimension_semantics<parallel>, #tpu.dimension_semantics<arbitrary>], iteration_bounds = array<i64: 2, 1>, scalar_prefetch = 0 : i64, scratch_operands = 1 : i64, tpu.core_type = #tpu.core_type<tc>, window_params = [{transform_indices = @transform_0, window_bounds = array<i64: 1, 256, 36>}, {pipeline_mode = #tpu.pipeline_mode<synchronous>, transform_indices = @transform_1, window_bounds = array<i64: 36, 128>}, {pipeline_mode = #tpu.pipeline_mode<synchronous>, transform_indices = @transform_2, window_bounds = array<i64: 1, 128>}, {pipeline_mode = #tpu.pipeline_mode<synchronous>, transform_indices = @transform_3, window_bounds = array<i64: 128, 32>}, {pipeline_mode = #tpu.pipeline_mode<synchronous>, transform_indices = @transform_4, window_bounds = array<i64: 1, 32>}, {transform_indices = @transform_5, window_bounds = array<i64: 1, 1, 32>}]} {
    %c0_i32 = arith.constant 0 : i32
    %0 = arith.cmpi eq, %arg1, %c0_i32 : i32
    %1 = arith.extui %0 : i1 to i32
    %c0_i32_0 = arith.constant 0 : i32
    %2 = arith.cmpi ne, %1, %c0_i32_0 : i32
    scf.if %2 {
      %cst_15 = arith.constant 0.000000e+00 : f32
      %20 = vector.broadcast %cst_15 : f32 to vector<1x128xf32>
      %c0_16 = arith.constant 0 : index
      %c0_17 = arith.constant 0 : index
      %21 = vector.load %arg8[%c0_16, %c0_17] : memref<1x128xf32, #tpu.memory_space<vmem>>, vector<1x128xf32>
      tpu.vector_store %arg8[%c0_16, %c0_17], %20 {strides = array<i32>} : memref<1x128xf32, #tpu.memory_space<vmem>>, vector<1x128xf32>,
    } else {
    }
    %c0 = arith.constant 0 : index
    %c0_1 = arith.constant 0 : index
    %c0_2 = arith.constant 0 : index
    %3 = vector.load %arg2[%c0, %c0_1, %c0_2] : memref<1x256x36xf32, #tpu.memory_space<vmem>>, vector<1x256x36xf32>
    %4 = vector.shape_cast %3 : vector<1x256x36xf32> to vector<256x36xf32>
    %c0_3 = arith.constant 0 : index
    %c0_4 = arith.constant 0 : index
    %5 = vector.load %arg3[%c0_3, %c0_4] : memref<36x128xf32, #tpu.memory_space<vmem>>, vector<36x128xf32>
    %cst = arith.constant dense<0.000000e+00> : vector<256x128xf32>
    %6 = tpu.matmul %4, %5, %cst {dimension_numbers = #tpu.dot_dimension_numbers<[1], [0], [0], [1], [0, 0, 1, 1], [], []>} : vector<256x36xf32>, vector<36x128xf32>, vector<256x128xf32> -> vector<256x128xf32>
    %c0_5 = arith.constant 0 : index
    %c0_6 = arith.constant 0 : index
    %7 = vector.load %arg4[%c0_5, %c0_6] : memref<1x128xf32, #tpu.memory_space<vmem>>, vector<1x128xf32>
    %8 = vector.broadcast %7 : vector<1x128xf32> to vector<256x128xf32>
    %9 = arith.addf %6, %8 : vector<256x128xf32>
    %cst_7 = arith.constant 0.000000e+00 : f32
    %10 = vector.broadcast %cst_7 : f32 to vector<256x128xf32>
    %11 = arith.maximumf %9, %10 : vector<256x128xf32>
    %c0_8 = arith.constant 0 : index
    %c0_9 = arith.constant 0 : index
    %12 = vector.load %arg8[%c0_8, %c0_9] : memref<1x128xf32, #tpu.memory_space<vmem>>, vector<1x128xf32>
    %cst_10 = arith.constant dense<0.000000e+00> : vector<128xf32>
    %13 = vector.multi_reduction <add>, %11, %cst_10 [0] : vector<256x128xf32> to vector<128xf32>
    %14 = vector.shape_cast %13 : vector<128xf32> to vector<1x128xf32>
    %15 = arith.addf %12, %14 : vector<1x128xf32>
    %c0_11 = arith.constant 0 : index
    %c0_12 = arith.constant 0 : index
    %16 = vector.load %arg8[%c0_11, %c0_12] : memref<1x128xf32, #tpu.memory_space<vmem>>, vector<1x128xf32>
    tpu.vector_store %arg8[%c0_11, %c0_12], %15 {strides = array<i32>} : memref<1x128xf32, #tpu.memory_space<vmem>>, vector<1x128xf32>,
    %c0_i32_13 = arith.constant 0 : i32
    %17 = arith.cmpi eq, %arg1, %c0_i32_13 : i32
    %18 = arith.extui %17 : i1 to i32
    %c0_i32_14 = arith.constant 0 : i32
    %19 = arith.cmpi ne, %18, %c0_i32_14 : i32
    scf.if %19 {
      %c0_15 = arith.constant 0 : index
      %c0_16 = arith.constant 0 : index
      %20 = vector.load %arg8[%c0_15, %c0_16] : memref<1x128xf32, #tpu.memory_space<vmem>>, vector<1x128xf32>
      %cst_17 = arith.constant 3.906250e-03 : f32
      %21 = vector.broadcast %cst_17 : f32 to vector<1x128xf32>
      %22 = arith.mulf %20, %21 : vector<1x128xf32>
      %c0_18 = arith.constant 0 : index
      %c0_19 = arith.constant 0 : index
      %23 = vector.load %arg5[%c0_18, %c0_19] : memref<128x32xf32, #tpu.memory_space<vmem>>, vector<128x32xf32>
      %cst_20 = arith.constant dense<0.000000e+00> : vector<1x32xf32>
      %24 = tpu.matmul %22, %23, %cst_20 {dimension_numbers = #tpu.dot_dimension_numbers<[1], [0], [0], [1], [0, 0, 1, 1], [], []>} : vector<1x128xf32>, vector<128x32xf32>, vector<1x32xf32> -> vector<1x32xf32>
      %c0_21 = arith.constant 0 : index
      %c0_22 = arith.constant 0 : index
      %25 = vector.load %arg6[%c0_21, %c0_22] : memref<1x32xf32, #tpu.memory_space<vmem>>, vector<1x32xf32>
      %26 = arith.addf %24, %25 : vector<1x32xf32>
      %27 = arith.mulf %26, %26 : vector<1x32xf32>
      %cst_23 = arith.constant dense<0.000000e+00> : vector<1xf32>
      %28 = vector.multi_reduction <add>, %27, %cst_23 [1] : vector<1x32xf32> to vector<1xf32>
      %29 = vector.shape_cast %28 : vector<1xf32> to vector<1x1xf32>
      %30 = math.sqrt %29 : vector<1x1xf32>
      %cst_24 = arith.constant 9.99999996E-13 : f32
      %31 = vector.broadcast %cst_24 : f32 to vector<1x1xf32>
      %32 = arith.maximumf %30, %31 : vector<1x1xf32>
      %33 = vector.broadcast %32 : vector<1x1xf32> to vector<1x32xf32>
      %34 = arith.divf %26, %33 : vector<1x32xf32>
      %c0_25 = arith.constant 0 : index
      %c0_26 = arith.constant 0 : index
      %c0_27 = arith.constant 0 : index
      %35 = vector.load %arg7[%c0_25, %c0_26, %c0_27] : memref<1x1x32xf32, #tpu.memory_space<vmem>>, vector<1x1x32xf32>
      %36 = vector.shape_cast %35 : vector<1x1x32xf32> to vector<1x32xf32>
      %37 = vector.shape_cast %34 : vector<1x32xf32> to vector<1x1x32xf32>
      tpu.vector_store %arg7[%c0_25, %c0_26, %c0_27], %37 {strides = array<i32>} : memref<1x1x32xf32, #tpu.memory_space<vmem>>, vector<1x1x32xf32>,
    } else {
    }
    return
  }
  func.func @transform_0(%arg0: i32, %arg1: i32) -> (i32, i32, i32) {
    %c0_i32 = arith.constant 0 : i32
    %c0_i32_0 = arith.constant 0 : i32
    return %arg0, %arg1, %c0_i32 : i32, i32, i32
  }
  func.func @transform_1(%arg0: i32, %arg1: i32) -> (i32, i32) {
    %c0_i32 = arith.constant 0 : i32
    %c0_i32_0 = arith.constant 0 : i32
    %c0_i32_1 = arith.constant 0 : i32
    return %c0_i32, %c0_i32_0 : i32, i32
  }
  func.func @transform_2(%arg0: i32, %arg1: i32) -> (i32, i32) {
    %c0_i32 = arith.constant 0 : i32
    %c0_i32_0 = arith.constant 0 : i32
    %c0_i32_1 = arith.constant 0 : i32
    return %c0_i32, %c0_i32_0 : i32, i32
  }
  func.func @transform_3(%arg0: i32, %arg1: i32) -> (i32, i32) {
    %c0_i32 = arith.constant 0 : i32
    %c0_i32_0 = arith.constant 0 : i32
    %c0_i32_1 = arith.constant 0 : i32
    return %c0_i32, %c0_i32_0 : i32, i32
  }
  func.func @transform_4(%arg0: i32, %arg1: i32) -> (i32, i32) {
    %c0_i32 = arith.constant 0 : i32
    %c0_i32_0 = arith.constant 0 : i32
    %c0_i32_1 = arith.constant 0 : i32
    return %c0_i32, %c0_i32_0 : i32, i32
  }
  func.func @transform_5(%arg0: i32, %arg1: i32) -> (i32, i32, i32) {
    %c0_i32 = arith.constant 0 : i32
    %c0_i32_0 = arith.constant 0 : i32
    %c0_i32_1 = arith.constant 0 : i32
    return %arg0, %c0_i32, %c0_i32_0 : i32, i32, i32
  }
}

module attributes {stable_mosaic.version = 11 : i64} {
  func.func @_gru_input_proj_kernel(%arg0: i32, %arg1: memref<16x32xf32, #tpu.memory_space<vmem>>, %arg2: memref<32x32xf32, #tpu.memory_space<vmem>>, %arg3: memref<32x32xf32, #tpu.memory_space<vmem>>, %arg4: memref<32x32xf32, #tpu.memory_space<vmem>>, %arg5: memref<1x32xf32, #tpu.memory_space<vmem>>, %arg6: memref<1x32xf32, #tpu.memory_space<vmem>>, %arg7: memref<1x32xf32, #tpu.memory_space<vmem>>, %arg8: memref<16x32xf32, #tpu.memory_space<vmem>>, %arg9: memref<16x32xf32, #tpu.memory_space<vmem>>, %arg10: memref<16x32xf32, #tpu.memory_space<vmem>>) attributes {dimension_semantics = [#tpu.dimension_semantics<parallel>], iteration_bounds = array<i64: 1>, scalar_prefetch = 0 : i64, scratch_operands = 0 : i64, tpu.core_type = #tpu.core_type<tc>, window_params = [{transform_indices = @transform_0, window_bounds = array<i64: 16, 32>}, {pipeline_mode = #tpu.pipeline_mode<synchronous>, transform_indices = @transform_1, window_bounds = array<i64: 32, 32>}, {pipeline_mode = #tpu.pipeline_mode<synchronous>, transform_indices = @transform_2, window_bounds = array<i64: 32, 32>}, {pipeline_mode = #tpu.pipeline_mode<synchronous>, transform_indices = @transform_3, window_bounds = array<i64: 32, 32>}, {pipeline_mode = #tpu.pipeline_mode<synchronous>, transform_indices = @transform_4, window_bounds = array<i64: 1, 32>}, {pipeline_mode = #tpu.pipeline_mode<synchronous>, transform_indices = @transform_5, window_bounds = array<i64: 1, 32>}, {pipeline_mode = #tpu.pipeline_mode<synchronous>, transform_indices = @transform_6, window_bounds = array<i64: 1, 32>}, {transform_indices = @transform_7, window_bounds = array<i64: 16, 32>}, {transform_indices = @transform_8, window_bounds = array<i64: 16, 32>}, {transform_indices = @transform_9, window_bounds = array<i64: 16, 32>}]} {
    %c0 = arith.constant 0 : index
    %c0_0 = arith.constant 0 : index
    %0 = vector.load %arg1[%c0, %c0_0] : memref<16x32xf32, #tpu.memory_space<vmem>>, vector<16x32xf32>
    %c0_1 = arith.constant 0 : index
    %c0_2 = arith.constant 0 : index
    %1 = vector.load %arg2[%c0_1, %c0_2] : memref<32x32xf32, #tpu.memory_space<vmem>>, vector<32x32xf32>
    %cst = arith.constant dense<0.000000e+00> : vector<16x32xf32>
    %2 = tpu.matmul %0, %1, %cst {dimension_numbers = #tpu.dot_dimension_numbers<[1], [0], [0], [1], [0, 0, 1, 1], [], []>} : vector<16x32xf32>, vector<32x32xf32>, vector<16x32xf32> -> vector<16x32xf32>
    %c0_3 = arith.constant 0 : index
    %c0_4 = arith.constant 0 : index
    %3 = vector.load %arg5[%c0_3, %c0_4] : memref<1x32xf32, #tpu.memory_space<vmem>>, vector<1x32xf32>
    %4 = vector.broadcast %3 : vector<1x32xf32> to vector<16x32xf32>
    %5 = arith.addf %2, %4 : vector<16x32xf32>
    %c0_5 = arith.constant 0 : index
    %c0_6 = arith.constant 0 : index
    %6 = vector.load %arg8[%c0_5, %c0_6] : memref<16x32xf32, #tpu.memory_space<vmem>>, vector<16x32xf32>
    tpu.vector_store %arg8[%c0_5, %c0_6], %5 {strides = array<i32>} : memref<16x32xf32, #tpu.memory_space<vmem>>, vector<16x32xf32>,
    %c0_7 = arith.constant 0 : index
    %c0_8 = arith.constant 0 : index
    %7 = vector.load %arg3[%c0_7, %c0_8] : memref<32x32xf32, #tpu.memory_space<vmem>>, vector<32x32xf32>
    %cst_9 = arith.constant dense<0.000000e+00> : vector<16x32xf32>
    %8 = tpu.matmul %0, %7, %cst_9 {dimension_numbers = #tpu.dot_dimension_numbers<[1], [0], [0], [1], [0, 0, 1, 1], [], []>} : vector<16x32xf32>, vector<32x32xf32>, vector<16x32xf32> -> vector<16x32xf32>
    %c0_10 = arith.constant 0 : index
    %c0_11 = arith.constant 0 : index
    %9 = vector.load %arg6[%c0_10, %c0_11] : memref<1x32xf32, #tpu.memory_space<vmem>>, vector<1x32xf32>
    %10 = vector.broadcast %9 : vector<1x32xf32> to vector<16x32xf32>
    %11 = arith.addf %8, %10 : vector<16x32xf32>
    %c0_12 = arith.constant 0 : index
    %c0_13 = arith.constant 0 : index
    %12 = vector.load %arg9[%c0_12, %c0_13] : memref<16x32xf32, #tpu.memory_space<vmem>>, vector<16x32xf32>
    tpu.vector_store %arg9[%c0_12, %c0_13], %11 {strides = array<i32>} : memref<16x32xf32, #tpu.memory_space<vmem>>, vector<16x32xf32>,
    %c0_14 = arith.constant 0 : index
    %c0_15 = arith.constant 0 : index
    %13 = vector.load %arg4[%c0_14, %c0_15] : memref<32x32xf32, #tpu.memory_space<vmem>>, vector<32x32xf32>
    %cst_16 = arith.constant dense<0.000000e+00> : vector<16x32xf32>
    %14 = tpu.matmul %0, %13, %cst_16 {dimension_numbers = #tpu.dot_dimension_numbers<[1], [0], [0], [1], [0, 0, 1, 1], [], []>} : vector<16x32xf32>, vector<32x32xf32>, vector<16x32xf32> -> vector<16x32xf32>
    %c0_17 = arith.constant 0 : index
    %c0_18 = arith.constant 0 : index
    %15 = vector.load %arg7[%c0_17, %c0_18] : memref<1x32xf32, #tpu.memory_space<vmem>>, vector<1x32xf32>
    %16 = vector.broadcast %15 : vector<1x32xf32> to vector<16x32xf32>
    %17 = arith.addf %14, %16 : vector<16x32xf32>
    %c0_19 = arith.constant 0 : index
    %c0_20 = arith.constant 0 : index
    %18 = vector.load %arg10[%c0_19, %c0_20] : memref<16x32xf32, #tpu.memory_space<vmem>>, vector<16x32xf32>
    tpu.vector_store %arg10[%c0_19, %c0_20], %17 {strides = array<i32>} : memref<16x32xf32, #tpu.memory_space<vmem>>, vector<16x32xf32>,
    return
  }
  func.func @transform_0(%arg0: i32) -> (i32, i32) {
    %c0_i32 = arith.constant 0 : i32
    %c0_i32_0 = arith.constant 0 : i32
    return %arg0, %c0_i32 : i32, i32
  }
  func.func @transform_1(%arg0: i32) -> (i32, i32) {
    %c0_i32 = arith.constant 0 : i32
    %c0_i32_0 = arith.constant 0 : i32
    %c0_i32_1 = arith.constant 0 : i32
    return %c0_i32, %c0_i32_0 : i32, i32
  }
  func.func @transform_2(%arg0: i32) -> (i32, i32) {
    %c0_i32 = arith.constant 0 : i32
    %c0_i32_0 = arith.constant 0 : i32
    %c0_i32_1 = arith.constant 0 : i32
    return %c0_i32, %c0_i32_0 : i32, i32
  }
  func.func @transform_3(%arg0: i32) -> (i32, i32) {
    %c0_i32 = arith.constant 0 : i32
    %c0_i32_0 = arith.constant 0 : i32
    %c0_i32_1 = arith.constant 0 : i32
    return %c0_i32, %c0_i32_0 : i32, i32
  }
  func.func @transform_4(%arg0: i32) -> (i32, i32) {
    %c0_i32 = arith.constant 0 : i32
    %c0_i32_0 = arith.constant 0 : i32
    %c0_i32_1 = arith.constant 0 : i32
    return %c0_i32, %c0_i32_0 : i32, i32
  }
  func.func @transform_5(%arg0: i32) -> (i32, i32) {
    %c0_i32 = arith.constant 0 : i32
    %c0_i32_0 = arith.constant 0 : i32
    %c0_i32_1 = arith.constant 0 : i32
    return %c0_i32, %c0_i32_0 : i32, i32
  }
  func.func @transform_6(%arg0: i32) -> (i32, i32) {
    %c0_i32 = arith.constant 0 : i32
    %c0_i32_0 = arith.constant 0 : i32
    %c0_i32_1 = arith.constant 0 : i32
    return %c0_i32, %c0_i32_0 : i32, i32
  }
  func.func @transform_7(%arg0: i32) -> (i32, i32) {
    %c0_i32 = arith.constant 0 : i32
    %c0_i32_0 = arith.constant 0 : i32
    return %arg0, %c0_i32 : i32, i32
  }
  func.func @transform_8(%arg0: i32) -> (i32, i32) {
    %c0_i32 = arith.constant 0 : i32
    %c0_i32_0 = arith.constant 0 : i32
    return %arg0, %c0_i32 : i32, i32
  }
  func.func @transform_9(%arg0: i32) -> (i32, i32) {
    %c0_i32 = arith.constant 0 : i32
    %c0_i32_0 = arith.constant 0 : i32
    return %arg0, %c0_i32 : i32, i32
  }
}

module attributes {stable_mosaic.version = 11 : i64} {
  func.func @_gru_decode_kernel(%arg0: i32, %arg1: memref<2x1xi32, #tpu.memory_space<vmem>>, %arg2: memref<8x2x32xf32, #tpu.memory_space<vmem>>, %arg3: memref<8x2x32xf32, #tpu.memory_space<vmem>>, %arg4: memref<8x2x32xf32, #tpu.memory_space<vmem>>, %arg5: memref<32x32xf32, #tpu.memory_space<vmem>>, %arg6: memref<32x32xf32, #tpu.memory_space<vmem>>, %arg7: memref<32x32xf32, #tpu.memory_space<vmem>>, %arg8: memref<1x32xf32, #tpu.memory_space<vmem>>, %arg9: memref<1x32xf32, #tpu.memory_space<vmem>>, %arg10: memref<1x32xf32, #tpu.memory_space<vmem>>, %arg11: memref<32x64xf32, #tpu.memory_space<vmem>>, %arg12: memref<1x64xf32, #tpu.memory_space<vmem>>, %arg13: memref<64x32xf32, #tpu.memory_space<vmem>>, %arg14: memref<1x32xf32, #tpu.memory_space<vmem>>, %arg15: memref<2x32xf32, #tpu.memory_space<vmem>>, %arg16: memref<2x32xf32, #tpu.memory_space<vmem>>) attributes {dimension_semantics = [#tpu.dimension_semantics<arbitrary>], iteration_bounds = array<i64: 1>, scalar_prefetch = 0 : i64, scratch_operands = 0 : i64, tpu.core_type = #tpu.core_type<tc>, window_params = [{pipeline_mode = #tpu.pipeline_mode<synchronous>, transform_indices = @transform_0, window_bounds = array<i64: 2, 1>}, {pipeline_mode = #tpu.pipeline_mode<synchronous>, transform_indices = @transform_1, window_bounds = array<i64: 8, 2, 32>}, {pipeline_mode = #tpu.pipeline_mode<synchronous>, transform_indices = @transform_2, window_bounds = array<i64: 8, 2, 32>}, {pipeline_mode = #tpu.pipeline_mode<synchronous>, transform_indices = @transform_3, window_bounds = array<i64: 8, 2, 32>}, {pipeline_mode = #tpu.pipeline_mode<synchronous>, transform_indices = @transform_4, window_bounds = array<i64: 32, 32>}, {pipeline_mode = #tpu.pipeline_mode<synchronous>, transform_indices = @transform_5, window_bounds = array<i64: 32, 32>}, {pipeline_mode = #tpu.pipeline_mode<synchronous>, transform_indices = @transform_6, window_bounds = array<i64: 32, 32>}, {pipeline_mode = #tpu.pipeline_mode<synchronous>, transform_indices = @transform_7, window_bounds = array<i64: 1, 32>}, {pipeline_mode = #tpu.pipeline_mode<synchronous>, transform_indices = @transform_8, window_bounds = array<i64: 1, 32>}, {pipeline_mode = #tpu.pipeline_mode<synchronous>, transform_indices = @transform_9, window_bounds = array<i64: 1, 32>}, {pipeline_mode = #tpu.pipeline_mode<synchronous>, transform_indices = @transform_10, window_bounds = array<i64: 32, 64>}, {pipeline_mode = #tpu.pipeline_mode<synchronous>, transform_indices = @transform_11, window_bounds = array<i64: 1, 64>}, {pipeline_mode = #tpu.pipeline_mode<synchronous>, transform_indices = @transform_12, window_bounds = array<i64: 64, 32>}, {pipeline_mode = #tpu.pipeline_mode<synchronous>, transform_indices = @transform_13, window_bounds = array<i64: 1, 32>}, {pipeline_mode = #tpu.pipeline_mode<synchronous>, transform_indices = @transform_14, window_bounds = array<i64: 2, 32>}, {pipeline_mode = #tpu.pipeline_mode<synchronous>, transform_indices = @transform_15, window_bounds = array<i64: 2, 32>}]} {
    %c0 = arith.constant 0 : index
    %c0_0 = arith.constant 0 : index
    %0 = vector.load %arg1[%c0, %c0_0] : memref<2x1xi32, #tpu.memory_space<vmem>>, vector<2x1xi32>
    %cst = arith.constant 0.000000e+00 : f32
    %1 = vector.broadcast %cst : f32 to vector<2x32xf32>
    %c0_i32 = arith.constant 0 : i32
    %2 = arith.index_cast %c0_i32 : i32 to index
    %c0_1 = arith.constant 0 : index
    %c0_2 = arith.constant 0 : index
    %3 = vector.load %arg2[%2, %c0_1, %c0_2] : memref<8x2x32xf32, #tpu.memory_space<vmem>>, vector<1x2x32xf32>
    %4 = vector.shape_cast %3 : vector<1x2x32xf32> to vector<2x32xf32>
    %c0_3 = arith.constant 0 : index
    %c0_4 = arith.constant 0 : index
    %5 = vector.load %arg5[%c0_3, %c0_4] : memref<32x32xf32, #tpu.memory_space<vmem>>, vector<32x32xf32>
    %cst_5 = arith.constant dense<0.000000e+00> : vector<2x32xf32>
    %6 = tpu.matmul %1, %5, %cst_5 {dimension_numbers = #tpu.dot_dimension_numbers<[1], [0], [0], [1], [0, 0, 1, 1], [], []>} : vector<2x32xf32>, vector<32x32xf32>, vector<2x32xf32> -> vector<2x32xf32>
    %7 = arith.addf %4, %6 : vector<2x32xf32>
    %c0_6 = arith.constant 0 : index
    %c0_7 = arith.constant 0 : index
    %8 = vector.load %arg8[%c0_6, %c0_7] : memref<1x32xf32, #tpu.memory_space<vmem>>, vector<1x32xf32>
    %9 = vector.broadcast %8 : vector<1x32xf32> to vector<2x32xf32>
    %10 = arith.addf %7, %9 : vector<2x32xf32>
    %11 = arith.index_cast %c0_i32 : i32 to index
    %c0_8 = arith.constant 0 : index
    %c0_9 = arith.constant 0 : index
    %12 = vector.load %arg3[%11, %c0_8, %c0_9] : memref<8x2x32xf32, #tpu.memory_space<vmem>>, vector<1x2x32xf32>
    %13 = vector.shape_cast %12 : vector<1x2x32xf32> to vector<2x32xf32>
    %c0_10 = arith.constant 0 : index
    %c0_11 = arith.constant 0 : index
    %14 = vector.load %arg6[%c0_10, %c0_11] : memref<32x32xf32, #tpu.memory_space<vmem>>, vector<32x32xf32>
    %cst_12 = arith.constant dense<0.000000e+00> : vector<2x32xf32>
    %15 = tpu.matmul %1, %14, %cst_12 {dimension_numbers = #tpu.dot_dimension_numbers<[1], [0], [0], [1], [0, 0, 1, 1], [], []>} : vector<2x32xf32>, vector<32x32xf32>, vector<2x32xf32> -> vector<2x32xf32>
    %16 = arith.addf %13, %15 : vector<2x32xf32>
    %c0_13 = arith.constant 0 : index
    %c0_14 = arith.constant 0 : index
    %17 = vector.load %arg9[%c0_13, %c0_14] : memref<1x32xf32, #tpu.memory_space<vmem>>, vector<1x32xf32>
    %18 = vector.broadcast %17 : vector<1x32xf32> to vector<2x32xf32>
    %19 = arith.addf %16, %18 : vector<2x32xf32>
    %c0_15 = arith.constant 0 : index
    %c0_16 = arith.constant 0 : index
    %20 = vector.load %arg7[%c0_15, %c0_16] : memref<32x32xf32, #tpu.memory_space<vmem>>, vector<32x32xf32>
    %cst_17 = arith.constant dense<0.000000e+00> : vector<2x32xf32>
    %21 = tpu.matmul %1, %20, %cst_17 {dimension_numbers = #tpu.dot_dimension_numbers<[1], [0], [0], [1], [0, 0, 1, 1], [], []>} : vector<2x32xf32>, vector<32x32xf32>, vector<2x32xf32> -> vector<2x32xf32>
    %c0_18 = arith.constant 0 : index
    %c0_19 = arith.constant 0 : index
    %22 = vector.load %arg10[%c0_18, %c0_19] : memref<1x32xf32, #tpu.memory_space<vmem>>, vector<1x32xf32>
    %23 = vector.broadcast %22 : vector<1x32xf32> to vector<2x32xf32>
    %24 = arith.addf %21, %23 : vector<2x32xf32>
    %25 = arith.negf %10 : vector<2x32xf32>
    %26 = math.exp %25 : vector<2x32xf32>
    %cst_20 = arith.constant 1.000000e+00 : f32
    %27 = vector.broadcast %cst_20 : f32 to vector<2x32xf32>
    %28 = arith.addf %27, %26 : vector<2x32xf32>
    %29 = arith.divf %27, %28 : vector<2x32xf32>
    %30 = arith.negf %19 : vector<2x32xf32>
    %31 = math.exp %30 : vector<2x32xf32>
    %cst_21 = arith.constant 1.000000e+00 : f32
    %32 = vector.broadcast %cst_21 : f32 to vector<2x32xf32>
    %33 = arith.addf %32, %31 : vector<2x32xf32>
    %34 = arith.divf %32, %33 : vector<2x32xf32>
    %35 = arith.index_cast %c0_i32 : i32 to index
    %c0_22 = arith.constant 0 : index
    %c0_23 = arith.constant 0 : index
    %36 = vector.load %arg4[%35, %c0_22, %c0_23] : memref<8x2x32xf32, #tpu.memory_space<vmem>>, vector<1x2x32xf32>
    %37 = vector.shape_cast %36 : vector<1x2x32xf32> to vector<2x32xf32>
    %38 = arith.mulf %29, %24 : vector<2x32xf32>
    %39 = arith.addf %37, %38 : vector<2x32xf32>
    %40 = math.tanh %39 : vector<2x32xf32>
    %cst_24 = arith.constant 1.000000e+00 : f32
    %41 = vector.broadcast %cst_24 : f32 to vector<2x32xf32>
    %42 = arith.subf %41, %34 : vector<2x32xf32>
    %43 = arith.mulf %42, %40 : vector<2x32xf32>
    %44 = arith.mulf %34, %1 : vector<2x32xf32>
    %45 = arith.addf %43, %44 : vector<2x32xf32>
    %c1_i32 = arith.constant 1 : i32
    %46 = vector.broadcast %c1_i32 : i32 to vector<2x1xi32>
    %47 = arith.subi %0, %46 : vector<2x1xi32>
    %48 = vector.broadcast %c0_i32 : i32 to vector<2x1xi32>
    %49 = arith.cmpi eq, %47, %48 : vector<2x1xi32>
    %50 = vector.shape_cast %49 : vector<2x1xi1> to vector<2x1xi1>
    %51 = vector.broadcast %50 : vector<2x1xi1> to vector<2x32xi1>
    %52 = arith.select %51, %45, %1 : vector<2x32xi1>, vector<2x32xf32>
    %c1_i32_25 = arith.constant 1 : i32
    %53 = arith.index_cast %c1_i32_25 : i32 to index
    %c0_26 = arith.constant 0 : index
    %c0_27 = arith.constant 0 : index
    %54 = vector.load %arg2[%53, %c0_26, %c0_27] : memref<8x2x32xf32, #tpu.memory_space<vmem>>, vector<1x2x32xf32>
    %55 = vector.shape_cast %54 : vector<1x2x32xf32> to vector<2x32xf32>
    %c0_28 = arith.constant 0 : index
    %c0_29 = arith.constant 0 : index
    %56 = vector.load %arg5[%c0_28, %c0_29] : memref<32x32xf32, #tpu.memory_space<vmem>>, vector<32x32xf32>
    %cst_30 = arith.constant dense<0.000000e+00> : vector<2x32xf32>
    %57 = tpu.matmul %45, %56, %cst_30 {dimension_numbers = #tpu.dot_dimension_numbers<[1], [0], [0], [1], [0, 0, 1, 1], [], []>} : vector<2x32xf32>, vector<32x32xf32>, vector<2x32xf32> -> vector<2x32xf32>
    %58 = arith.addf %55, %57 : vector<2x32xf32>
    %c0_31 = arith.constant 0 : index
    %c0_32 = arith.constant 0 : index
    %59 = vector.load %arg8[%c0_31, %c0_32] : memref<1x32xf32, #tpu.memory_space<vmem>>, vector<1x32xf32>
    %60 = vector.broadcast %59 : vector<1x32xf32> to vector<2x32xf32>
    %61 = arith.addf %58, %60 : vector<2x32xf32>
    %62 = arith.index_cast %c1_i32_25 : i32 to index
    %c0_33 = arith.constant 0 : index
    %c0_34 = arith.constant 0 : index
    %63 = vector.load %arg3[%62, %c0_33, %c0_34] : memref<8x2x32xf32, #tpu.memory_space<vmem>>, vector<1x2x32xf32>
    %64 = vector.shape_cast %63 : vector<1x2x32xf32> to vector<2x32xf32>
    %c0_35 = arith.constant 0 : index
    %c0_36 = arith.constant 0 : index
    %65 = vector.load %arg6[%c0_35, %c0_36] : memref<32x32xf32, #tpu.memory_space<vmem>>, vector<32x32xf32>
    %cst_37 = arith.constant dense<0.000000e+00> : vector<2x32xf32>
    %66 = tpu.matmul %45, %65, %cst_37 {dimension_numbers = #tpu.dot_dimension_numbers<[1], [0], [0], [1], [0, 0, 1, 1], [], []>} : vector<2x32xf32>, vector<32x32xf32>, vector<2x32xf32> -> vector<2x32xf32>
    %67 = arith.addf %64, %66 : vector<2x32xf32>
    %c0_38 = arith.constant 0 : index
    %c0_39 = arith.constant 0 : index
    %68 = vector.load %arg9[%c0_38, %c0_39] : memref<1x32xf32, #tpu.memory_space<vmem>>, vector<1x32xf32>
    %69 = vector.broadcast %68 : vector<1x32xf32> to vector<2x32xf32>
    %70 = arith.addf %67, %69 : vector<2x32xf32>
    %c0_40 = arith.constant 0 : index
    %c0_41 = arith.constant 0 : index
    %71 = vector.load %arg7[%c0_40, %c0_41] : memref<32x32xf32, #tpu.memory_space<vmem>>, vector<32x32xf32>
    %cst_42 = arith.constant dense<0.000000e+00> : vector<2x32xf32>
    %72 = tpu.matmul %45, %71, %cst_42 {dimension_numbers = #tpu.dot_dimension_numbers<[1], [0], [0], [1], [0, 0, 1, 1], [], []>} : vector<2x32xf32>, vector<32x32xf32>, vector<2x32xf32> -> vector<2x32xf32>
    %c0_43 = arith.constant 0 : index
    %c0_44 = arith.constant 0 : index
    %73 = vector.load %arg10[%c0_43, %c0_44] : memref<1x32xf32, #tpu.memory_space<vmem>>, vector<1x32xf32>
    %74 = vector.broadcast %73 : vector<1x32xf32> to vector<2x32xf32>
    %75 = arith.addf %72, %74 : vector<2x32xf32>
    %76 = arith.negf %61 : vector<2x32xf32>
    %77 = math.exp %76 : vector<2x32xf32>
    %cst_45 = arith.constant 1.000000e+00 : f32
    %78 = vector.broadcast %cst_45 : f32 to vector<2x32xf32>
    %79 = arith.addf %78, %77 : vector<2x32xf32>
    %80 = arith.divf %78, %79 : vector<2x32xf32>
    %81 = arith.negf %70 : vector<2x32xf32>
    %82 = math.exp %81 : vector<2x32xf32>
    %cst_46 = arith.constant 1.000000e+00 : f32
    %83 = vector.broadcast %cst_46 : f32 to vector<2x32xf32>
    %84 = arith.addf %83, %82 : vector<2x32xf32>
    %85 = arith.divf %83, %84 : vector<2x32xf32>
    %86 = arith.index_cast %c1_i32_25 : i32 to index
    %c0_47 = arith.constant 0 : index
    %c0_48 = arith.constant 0 : index
    %87 = vector.load %arg4[%86, %c0_47, %c0_48] : memref<8x2x32xf32, #tpu.memory_space<vmem>>, vector<1x2x32xf32>
    %88 = vector.shape_cast %87 : vector<1x2x32xf32> to vector<2x32xf32>
    %89 = arith.mulf %80, %75 : vector<2x32xf32>
    %90 = arith.addf %88, %89 : vector<2x32xf32>
    %91 = math.tanh %90 : vector<2x32xf32>
    %cst_49 = arith.constant 1.000000e+00 : f32
    %92 = vector.broadcast %cst_49 : f32 to vector<2x32xf32>
    %93 = arith.subf %92, %85 : vector<2x32xf32>
    %94 = arith.mulf %93, %91 : vector<2x32xf32>
    %95 = arith.mulf %85, %45 : vector<2x32xf32>
    %96 = arith.addf %94, %95 : vector<2x32xf32>
    %c1_i32_50 = arith.constant 1 : i32
    %97 = vector.broadcast %c1_i32_50 : i32 to vector<2x1xi32>
    %98 = arith.subi %0, %97 : vector<2x1xi32>
    %99 = vector.broadcast %c1_i32_25 : i32 to vector<2x1xi32>
    %100 = arith.cmpi eq, %98, %99 : vector<2x1xi32>
    %101 = vector.shape_cast %100 : vector<2x1xi1> to vector<2x1xi1>
    %102 = vector.broadcast %101 : vector<2x1xi1> to vector<2x32xi1>
    %103 = arith.select %102, %96, %52 : vector<2x32xi1>, vector<2x32xf32>
    %c2_i32 = arith.constant 2 : i32
    %104 = arith.index_cast %c2_i32 : i32 to index
    %c0_51 = arith.constant 0 : index
    %c0_52 = arith.constant 0 : index
    %105 = vector.load %arg2[%104, %c0_51, %c0_52] : memref<8x2x32xf32, #tpu.memory_space<vmem>>, vector<1x2x32xf32>
    %106 = vector.shape_cast %105 : vector<1x2x32xf32> to vector<2x32xf32>
    %c0_53 = arith.constant 0 : index
    %c0_54 = arith.constant 0 : index
    %107 = vector.load %arg5[%c0_53, %c0_54] : memref<32x32xf32, #tpu.memory_space<vmem>>, vector<32x32xf32>
    %cst_55 = arith.constant dense<0.000000e+00> : vector<2x32xf32>
    %108 = tpu.matmul %96, %107, %cst_55 {dimension_numbers = #tpu.dot_dimension_numbers<[1], [0], [0], [1], [0, 0, 1, 1], [], []>} : vector<2x32xf32>, vector<32x32xf32>, vector<2x32xf32> -> vector<2x32xf32>
    %109 = arith.addf %106, %108 : vector<2x32xf32>
    %c0_56 = arith.constant 0 : index
    %c0_57 = arith.constant 0 : index
    %110 = vector.load %arg8[%c0_56, %c0_57] : memref<1x32xf32, #tpu.memory_space<vmem>>, vector<1x32xf32>
    %111 = vector.broadcast %110 : vector<1x32xf32> to vector<2x32xf32>
    %112 = arith.addf %109, %111 : vector<2x32xf32>
    %113 = arith.index_cast %c2_i32 : i32 to index
    %c0_58 = arith.constant 0 : index
    %c0_59 = arith.constant 0 : index
    %114 = vector.load %arg3[%113, %c0_58, %c0_59] : memref<8x2x32xf32, #tpu.memory_space<vmem>>, vector<1x2x32xf32>
    %115 = vector.shape_cast %114 : vector<1x2x32xf32> to vector<2x32xf32>
    %c0_60 = arith.constant 0 : index
    %c0_61 = arith.constant 0 : index
    %116 = vector.load %arg6[%c0_60, %c0_61] : memref<32x32xf32, #tpu.memory_space<vmem>>, vector<32x32xf32>
    %cst_62 = arith.constant dense<0.000000e+00> : vector<2x32xf32>
    %117 = tpu.matmul %96, %116, %cst_62 {dimension_numbers = #tpu.dot_dimension_numbers<[1], [0], [0], [1], [0, 0, 1, 1], [], []>} : vector<2x32xf32>, vector<32x32xf32>, vector<2x32xf32> -> vector<2x32xf32>
    %118 = arith.addf %115, %117 : vector<2x32xf32>
    %c0_63 = arith.constant 0 : index
    %c0_64 = arith.constant 0 : index
    %119 = vector.load %arg9[%c0_63, %c0_64] : memref<1x32xf32, #tpu.memory_space<vmem>>, vector<1x32xf32>
    %120 = vector.broadcast %119 : vector<1x32xf32> to vector<2x32xf32>
    %121 = arith.addf %118, %120 : vector<2x32xf32>
    %c0_65 = arith.constant 0 : index
    %c0_66 = arith.constant 0 : index
    %122 = vector.load %arg7[%c0_65, %c0_66] : memref<32x32xf32, #tpu.memory_space<vmem>>, vector<32x32xf32>
    %cst_67 = arith.constant dense<0.000000e+00> : vector<2x32xf32>
    %123 = tpu.matmul %96, %122, %cst_67 {dimension_numbers = #tpu.dot_dimension_numbers<[1], [0], [0], [1], [0, 0, 1, 1], [], []>} : vector<2x32xf32>, vector<32x32xf32>, vector<2x32xf32> -> vector<2x32xf32>
    %c0_68 = arith.constant 0 : index
    %c0_69 = arith.constant 0 : index
    %124 = vector.load %arg10[%c0_68, %c0_69] : memref<1x32xf32, #tpu.memory_space<vmem>>, vector<1x32xf32>
    %125 = vector.broadcast %124 : vector<1x32xf32> to vector<2x32xf32>
    %126 = arith.addf %123, %125 : vector<2x32xf32>
    %127 = arith.negf %112 : vector<2x32xf32>
    %128 = math.exp %127 : vector<2x32xf32>
    %cst_70 = arith.constant 1.000000e+00 : f32
    %129 = vector.broadcast %cst_70 : f32 to vector<2x32xf32>
    %130 = arith.addf %129, %128 : vector<2x32xf32>
    %131 = arith.divf %129, %130 : vector<2x32xf32>
    %132 = arith.negf %121 : vector<2x32xf32>
    %133 = math.exp %132 : vector<2x32xf32>
    %cst_71 = arith.constant 1.000000e+00 : f32
    %134 = vector.broadcast %cst_71 : f32 to vector<2x32xf32>
    %135 = arith.addf %134, %133 : vector<2x32xf32>
    %136 = arith.divf %134, %135 : vector<2x32xf32>
    %137 = arith.index_cast %c2_i32 : i32 to index
    %c0_72 = arith.constant 0 : index
    %c0_73 = arith.constant 0 : index
    %138 = vector.load %arg4[%137, %c0_72, %c0_73] : memref<8x2x32xf32, #tpu.memory_space<vmem>>, vector<1x2x32xf32>
    %139 = vector.shape_cast %138 : vector<1x2x32xf32> to vector<2x32xf32>
    %140 = arith.mulf %131, %126 : vector<2x32xf32>
    %141 = arith.addf %139, %140 : vector<2x32xf32>
    %142 = math.tanh %141 : vector<2x32xf32>
    %cst_74 = arith.constant 1.000000e+00 : f32
    %143 = vector.broadcast %cst_74 : f32 to vector<2x32xf32>
    %144 = arith.subf %143, %136 : vector<2x32xf32>
    %145 = arith.mulf %144, %142 : vector<2x32xf32>
    %146 = arith.mulf %136, %96 : vector<2x32xf32>
    %147 = arith.addf %145, %146 : vector<2x32xf32>
    %c1_i32_75 = arith.constant 1 : i32
    %148 = vector.broadcast %c1_i32_75 : i32 to vector<2x1xi32>
    %149 = arith.subi %0, %148 : vector<2x1xi32>
    %150 = vector.broadcast %c2_i32 : i32 to vector<2x1xi32>
    %151 = arith.cmpi eq, %149, %150 : vector<2x1xi32>
    %152 = vector.shape_cast %151 : vector<2x1xi1> to vector<2x1xi1>
    %153 = vector.broadcast %152 : vector<2x1xi1> to vector<2x32xi1>
    %154 = arith.select %153, %147, %103 : vector<2x32xi1>, vector<2x32xf32>
    %c3_i32 = arith.constant 3 : i32
    %155 = arith.index_cast %c3_i32 : i32 to index
    %c0_76 = arith.constant 0 : index
    %c0_77 = arith.constant 0 : index
    %156 = vector.load %arg2[%155, %c0_76, %c0_77] : memref<8x2x32xf32, #tpu.memory_space<vmem>>, vector<1x2x32xf32>
    %157 = vector.shape_cast %156 : vector<1x2x32xf32> to vector<2x32xf32>
    %c0_78 = arith.constant 0 : index
    %c0_79 = arith.constant 0 : index
    %158 = vector.load %arg5[%c0_78, %c0_79] : memref<32x32xf32, #tpu.memory_space<vmem>>, vector<32x32xf32>
    %cst_80 = arith.constant dense<0.000000e+00> : vector<2x32xf32>
    %159 = tpu.matmul %147, %158, %cst_80 {dimension_numbers = #tpu.dot_dimension_numbers<[1], [0], [0], [1], [0, 0, 1, 1], [], []>} : vector<2x32xf32>, vector<32x32xf32>, vector<2x32xf32> -> vector<2x32xf32>
    %160 = arith.addf %157, %159 : vector<2x32xf32>
    %c0_81 = arith.constant 0 : index
    %c0_82 = arith.constant 0 : index
    %161 = vector.load %arg8[%c0_81, %c0_82] : memref<1x32xf32, #tpu.memory_space<vmem>>, vector<1x32xf32>
    %162 = vector.broadcast %161 : vector<1x32xf32> to vector<2x32xf32>
    %163 = arith.addf %160, %162 : vector<2x32xf32>
    %164 = arith.index_cast %c3_i32 : i32 to index
    %c0_83 = arith.constant 0 : index
    %c0_84 = arith.constant 0 : index
    %165 = vector.load %arg3[%164, %c0_83, %c0_84] : memref<8x2x32xf32, #tpu.memory_space<vmem>>, vector<1x2x32xf32>
    %166 = vector.shape_cast %165 : vector<1x2x32xf32> to vector<2x32xf32>
    %c0_85 = arith.constant 0 : index
    %c0_86 = arith.constant 0 : index
    %167 = vector.load %arg6[%c0_85, %c0_86] : memref<32x32xf32, #tpu.memory_space<vmem>>, vector<32x32xf32>
    %cst_87 = arith.constant dense<0.000000e+00> : vector<2x32xf32>
    %168 = tpu.matmul %147, %167, %cst_87 {dimension_numbers = #tpu.dot_dimension_numbers<[1], [0], [0], [1], [0, 0, 1, 1], [], []>} : vector<2x32xf32>, vector<32x32xf32>, vector<2x32xf32> -> vector<2x32xf32>
    %169 = arith.addf %166, %168 : vector<2x32xf32>
    %c0_88 = arith.constant 0 : index
    %c0_89 = arith.constant 0 : index
    %170 = vector.load %arg9[%c0_88, %c0_89] : memref<1x32xf32, #tpu.memory_space<vmem>>, vector<1x32xf32>
    %171 = vector.broadcast %170 : vector<1x32xf32> to vector<2x32xf32>
    %172 = arith.addf %169, %171 : vector<2x32xf32>
    %c0_90 = arith.constant 0 : index
    %c0_91 = arith.constant 0 : index
    %173 = vector.load %arg7[%c0_90, %c0_91] : memref<32x32xf32, #tpu.memory_space<vmem>>, vector<32x32xf32>
    %cst_92 = arith.constant dense<0.000000e+00> : vector<2x32xf32>
    %174 = tpu.matmul %147, %173, %cst_92 {dimension_numbers = #tpu.dot_dimension_numbers<[1], [0], [0], [1], [0, 0, 1, 1], [], []>} : vector<2x32xf32>, vector<32x32xf32>, vector<2x32xf32> -> vector<2x32xf32>
    %c0_93 = arith.constant 0 : index
    %c0_94 = arith.constant 0 : index
    %175 = vector.load %arg10[%c0_93, %c0_94] : memref<1x32xf32, #tpu.memory_space<vmem>>, vector<1x32xf32>
    %176 = vector.broadcast %175 : vector<1x32xf32> to vector<2x32xf32>
    %177 = arith.addf %174, %176 : vector<2x32xf32>
    %178 = arith.negf %163 : vector<2x32xf32>
    %179 = math.exp %178 : vector<2x32xf32>
    %cst_95 = arith.constant 1.000000e+00 : f32
    %180 = vector.broadcast %cst_95 : f32 to vector<2x32xf32>
    %181 = arith.addf %180, %179 : vector<2x32xf32>
    %182 = arith.divf %180, %181 : vector<2x32xf32>
    %183 = arith.negf %172 : vector<2x32xf32>
    %184 = math.exp %183 : vector<2x32xf32>
    %cst_96 = arith.constant 1.000000e+00 : f32
    %185 = vector.broadcast %cst_96 : f32 to vector<2x32xf32>
    %186 = arith.addf %185, %184 : vector<2x32xf32>
    %187 = arith.divf %185, %186 : vector<2x32xf32>
    %188 = arith.index_cast %c3_i32 : i32 to index
    %c0_97 = arith.constant 0 : index
    %c0_98 = arith.constant 0 : index
    %189 = vector.load %arg4[%188, %c0_97, %c0_98] : memref<8x2x32xf32, #tpu.memory_space<vmem>>, vector<1x2x32xf32>
    %190 = vector.shape_cast %189 : vector<1x2x32xf32> to vector<2x32xf32>
    %191 = arith.mulf %182, %177 : vector<2x32xf32>
    %192 = arith.addf %190, %191 : vector<2x32xf32>
    %193 = math.tanh %192 : vector<2x32xf32>
    %cst_99 = arith.constant 1.000000e+00 : f32
    %194 = vector.broadcast %cst_99 : f32 to vector<2x32xf32>
    %195 = arith.subf %194, %187 : vector<2x32xf32>
    %196 = arith.mulf %195, %193 : vector<2x32xf32>
    %197 = arith.mulf %187, %147 : vector<2x32xf32>
    %198 = arith.addf %196, %197 : vector<2x32xf32>
    %c1_i32_100 = arith.constant 1 : i32
    %199 = vector.broadcast %c1_i32_100 : i32 to vector<2x1xi32>
    %200 = arith.subi %0, %199 : vector<2x1xi32>
    %201 = vector.broadcast %c3_i32 : i32 to vector<2x1xi32>
    %202 = arith.cmpi eq, %200, %201 : vector<2x1xi32>
    %203 = vector.shape_cast %202 : vector<2x1xi1> to vector<2x1xi1>
    %204 = vector.broadcast %203 : vector<2x1xi1> to vector<2x32xi1>
    %205 = arith.select %204, %198, %154 : vector<2x32xi1>, vector<2x32xf32>
    %c4_i32 = arith.constant 4 : i32
    %206 = arith.index_cast %c4_i32 : i32 to index
    %c0_101 = arith.constant 0 : index
    %c0_102 = arith.constant 0 : index
    %207 = vector.load %arg2[%206, %c0_101, %c0_102] : memref<8x2x32xf32, #tpu.memory_space<vmem>>, vector<1x2x32xf32>
    %208 = vector.shape_cast %207 : vector<1x2x32xf32> to vector<2x32xf32>
    %c0_103 = arith.constant 0 : index
    %c0_104 = arith.constant 0 : index
    %209 = vector.load %arg5[%c0_103, %c0_104] : memref<32x32xf32, #tpu.memory_space<vmem>>, vector<32x32xf32>
    %cst_105 = arith.constant dense<0.000000e+00> : vector<2x32xf32>
    %210 = tpu.matmul %198, %209, %cst_105 {dimension_numbers = #tpu.dot_dimension_numbers<[1], [0], [0], [1], [0, 0, 1, 1], [], []>} : vector<2x32xf32>, vector<32x32xf32>, vector<2x32xf32> -> vector<2x32xf32>
    %211 = arith.addf %208, %210 : vector<2x32xf32>
    %c0_106 = arith.constant 0 : index
    %c0_107 = arith.constant 0 : index
    %212 = vector.load %arg8[%c0_106, %c0_107] : memref<1x32xf32, #tpu.memory_space<vmem>>, vector<1x32xf32>
    %213 = vector.broadcast %212 : vector<1x32xf32> to vector<2x32xf32>
    %214 = arith.addf %211, %213 : vector<2x32xf32>
    %215 = arith.index_cast %c4_i32 : i32 to index
    %c0_108 = arith.constant 0 : index
    %c0_109 = arith.constant 0 : index
    %216 = vector.load %arg3[%215, %c0_108, %c0_109] : memref<8x2x32xf32, #tpu.memory_space<vmem>>, vector<1x2x32xf32>
    %217 = vector.shape_cast %216 : vector<1x2x32xf32> to vector<2x32xf32>
    %c0_110 = arith.constant 0 : index
    %c0_111 = arith.constant 0 : index
    %218 = vector.load %arg6[%c0_110, %c0_111] : memref<32x32xf32, #tpu.memory_space<vmem>>, vector<32x32xf32>
    %cst_112 = arith.constant dense<0.000000e+00> : vector<2x32xf32>
    %219 = tpu.matmul %198, %218, %cst_112 {dimension_numbers = #tpu.dot_dimension_numbers<[1], [0], [0], [1], [0, 0, 1, 1], [], []>} : vector<2x32xf32>, vector<32x32xf32>, vector<2x32xf32> -> vector<2x32xf32>
    %220 = arith.addf %217, %219 : vector<2x32xf32>
    %c0_113 = arith.constant 0 : index
    %c0_114 = arith.constant 0 : index
    %221 = vector.load %arg9[%c0_113, %c0_114] : memref<1x32xf32, #tpu.memory_space<vmem>>, vector<1x32xf32>
    %222 = vector.broadcast %221 : vector<1x32xf32> to vector<2x32xf32>
    %223 = arith.addf %220, %222 : vector<2x32xf32>
    %c0_115 = arith.constant 0 : index
    %c0_116 = arith.constant 0 : index
    %224 = vector.load %arg7[%c0_115, %c0_116] : memref<32x32xf32, #tpu.memory_space<vmem>>, vector<32x32xf32>
    %cst_117 = arith.constant dense<0.000000e+00> : vector<2x32xf32>
    %225 = tpu.matmul %198, %224, %cst_117 {dimension_numbers = #tpu.dot_dimension_numbers<[1], [0], [0], [1], [0, 0, 1, 1], [], []>} : vector<2x32xf32>, vector<32x32xf32>, vector<2x32xf32> -> vector<2x32xf32>
    %c0_118 = arith.constant 0 : index
    %c0_119 = arith.constant 0 : index
    %226 = vector.load %arg10[%c0_118, %c0_119] : memref<1x32xf32, #tpu.memory_space<vmem>>, vector<1x32xf32>
    %227 = vector.broadcast %226 : vector<1x32xf32> to vector<2x32xf32>
    %228 = arith.addf %225, %227 : vector<2x32xf32>
    %229 = arith.negf %214 : vector<2x32xf32>
    %230 = math.exp %229 : vector<2x32xf32>
    %cst_120 = arith.constant 1.000000e+00 : f32
    %231 = vector.broadcast %cst_120 : f32 to vector<2x32xf32>
    %232 = arith.addf %231, %230 : vector<2x32xf32>
    %233 = arith.divf %231, %232 : vector<2x32xf32>
    %234 = arith.negf %223 : vector<2x32xf32>
    %235 = math.exp %234 : vector<2x32xf32>
    %cst_121 = arith.constant 1.000000e+00 : f32
    %236 = vector.broadcast %cst_121 : f32 to vector<2x32xf32>
    %237 = arith.addf %236, %235 : vector<2x32xf32>
    %238 = arith.divf %236, %237 : vector<2x32xf32>
    %239 = arith.index_cast %c4_i32 : i32 to index
    %c0_122 = arith.constant 0 : index
    %c0_123 = arith.constant 0 : index
    %240 = vector.load %arg4[%239, %c0_122, %c0_123] : memref<8x2x32xf32, #tpu.memory_space<vmem>>, vector<1x2x32xf32>
    %241 = vector.shape_cast %240 : vector<1x2x32xf32> to vector<2x32xf32>
    %242 = arith.mulf %233, %228 : vector<2x32xf32>
    %243 = arith.addf %241, %242 : vector<2x32xf32>
    %244 = math.tanh %243 : vector<2x32xf32>
    %cst_124 = arith.constant 1.000000e+00 : f32
    %245 = vector.broadcast %cst_124 : f32 to vector<2x32xf32>
    %246 = arith.subf %245, %238 : vector<2x32xf32>
    %247 = arith.mulf %246, %244 : vector<2x32xf32>
    %248 = arith.mulf %238, %198 : vector<2x32xf32>
    %249 = arith.addf %247, %248 : vector<2x32xf32>
    %c1_i32_125 = arith.constant 1 : i32
    %250 = vector.broadcast %c1_i32_125 : i32 to vector<2x1xi32>
    %251 = arith.subi %0, %250 : vector<2x1xi32>
    %252 = vector.broadcast %c4_i32 : i32 to vector<2x1xi32>
    %253 = arith.cmpi eq, %251, %252 : vector<2x1xi32>
    %254 = vector.shape_cast %253 : vector<2x1xi1> to vector<2x1xi1>
    %255 = vector.broadcast %254 : vector<2x1xi1> to vector<2x32xi1>
    %256 = arith.select %255, %249, %205 : vector<2x32xi1>, vector<2x32xf32>
    %c5_i32 = arith.constant 5 : i32
    %257 = arith.index_cast %c5_i32 : i32 to index
    %c0_126 = arith.constant 0 : index
    %c0_127 = arith.constant 0 : index
    %258 = vector.load %arg2[%257, %c0_126, %c0_127] : memref<8x2x32xf32, #tpu.memory_space<vmem>>, vector<1x2x32xf32>
    %259 = vector.shape_cast %258 : vector<1x2x32xf32> to vector<2x32xf32>
    %c0_128 = arith.constant 0 : index
    %c0_129 = arith.constant 0 : index
    %260 = vector.load %arg5[%c0_128, %c0_129] : memref<32x32xf32, #tpu.memory_space<vmem>>, vector<32x32xf32>
    %cst_130 = arith.constant dense<0.000000e+00> : vector<2x32xf32>
    %261 = tpu.matmul %249, %260, %cst_130 {dimension_numbers = #tpu.dot_dimension_numbers<[1], [0], [0], [1], [0, 0, 1, 1], [], []>} : vector<2x32xf32>, vector<32x32xf32>, vector<2x32xf32> -> vector<2x32xf32>
    %262 = arith.addf %259, %261 : vector<2x32xf32>
    %c0_131 = arith.constant 0 : index
    %c0_132 = arith.constant 0 : index
    %263 = vector.load %arg8[%c0_131, %c0_132] : memref<1x32xf32, #tpu.memory_space<vmem>>, vector<1x32xf32>
    %264 = vector.broadcast %263 : vector<1x32xf32> to vector<2x32xf32>
    %265 = arith.addf %262, %264 : vector<2x32xf32>
    %266 = arith.index_cast %c5_i32 : i32 to index
    %c0_133 = arith.constant 0 : index
    %c0_134 = arith.constant 0 : index
    %267 = vector.load %arg3[%266, %c0_133, %c0_134] : memref<8x2x32xf32, #tpu.memory_space<vmem>>, vector<1x2x32xf32>
    %268 = vector.shape_cast %267 : vector<1x2x32xf32> to vector<2x32xf32>
    %c0_135 = arith.constant 0 : index
    %c0_136 = arith.constant 0 : index
    %269 = vector.load %arg6[%c0_135, %c0_136] : memref<32x32xf32, #tpu.memory_space<vmem>>, vector<32x32xf32>
    %cst_137 = arith.constant dense<0.000000e+00> : vector<2x32xf32>
    %270 = tpu.matmul %249, %269, %cst_137 {dimension_numbers = #tpu.dot_dimension_numbers<[1], [0], [0], [1], [0, 0, 1, 1], [], []>} : vector<2x32xf32>, vector<32x32xf32>, vector<2x32xf32> -> vector<2x32xf32>
    %271 = arith.addf %268, %270 : vector<2x32xf32>
    %c0_138 = arith.constant 0 : index
    %c0_139 = arith.constant 0 : index
    %272 = vector.load %arg9[%c0_138, %c0_139] : memref<1x32xf32, #tpu.memory_space<vmem>>, vector<1x32xf32>
    %273 = vector.broadcast %272 : vector<1x32xf32> to vector<2x32xf32>
    %274 = arith.addf %271, %273 : vector<2x32xf32>
    %c0_140 = arith.constant 0 : index
    %c0_141 = arith.constant 0 : index
    %275 = vector.load %arg7[%c0_140, %c0_141] : memref<32x32xf32, #tpu.memory_space<vmem>>, vector<32x32xf32>
    %cst_142 = arith.constant dense<0.000000e+00> : vector<2x32xf32>
    %276 = tpu.matmul %249, %275, %cst_142 {dimension_numbers = #tpu.dot_dimension_numbers<[1], [0], [0], [1], [0, 0, 1, 1], [], []>} : vector<2x32xf32>, vector<32x32xf32>, vector<2x32xf32> -> vector<2x32xf32>
    %c0_143 = arith.constant 0 : index
    %c0_144 = arith.constant 0 : index
    %277 = vector.load %arg10[%c0_143, %c0_144] : memref<1x32xf32, #tpu.memory_space<vmem>>, vector<1x32xf32>
    %278 = vector.broadcast %277 : vector<1x32xf32> to vector<2x32xf32>
    %279 = arith.addf %276, %278 : vector<2x32xf32>
    %280 = arith.negf %265 : vector<2x32xf32>
    %281 = math.exp %280 : vector<2x32xf32>
    %cst_145 = arith.constant 1.000000e+00 : f32
    %282 = vector.broadcast %cst_145 : f32 to vector<2x32xf32>
    %283 = arith.addf %282, %281 : vector<2x32xf32>
    %284 = arith.divf %282, %283 : vector<2x32xf32>
    %285 = arith.negf %274 : vector<2x32xf32>
    %286 = math.exp %285 : vector<2x32xf32>
    %cst_146 = arith.constant 1.000000e+00 : f32
    %287 = vector.broadcast %cst_146 : f32 to vector<2x32xf32>
    %288 = arith.addf %287, %286 : vector<2x32xf32>
    %289 = arith.divf %287, %288 : vector<2x32xf32>
    %290 = arith.index_cast %c5_i32 : i32 to index
    %c0_147 = arith.constant 0 : index
    %c0_148 = arith.constant 0 : index
    %291 = vector.load %arg4[%290, %c0_147, %c0_148] : memref<8x2x32xf32, #tpu.memory_space<vmem>>, vector<1x2x32xf32>
    %292 = vector.shape_cast %291 : vector<1x2x32xf32> to vector<2x32xf32>
    %293 = arith.mulf %284, %279 : vector<2x32xf32>
    %294 = arith.addf %292, %293 : vector<2x32xf32>
    %295 = math.tanh %294 : vector<2x32xf32>
    %cst_149 = arith.constant 1.000000e+00 : f32
    %296 = vector.broadcast %cst_149 : f32 to vector<2x32xf32>
    %297 = arith.subf %296, %289 : vector<2x32xf32>
    %298 = arith.mulf %297, %295 : vector<2x32xf32>
    %299 = arith.mulf %289, %249 : vector<2x32xf32>
    %300 = arith.addf %298, %299 : vector<2x32xf32>
    %c1_i32_150 = arith.constant 1 : i32
    %301 = vector.broadcast %c1_i32_150 : i32 to vector<2x1xi32>
    %302 = arith.subi %0, %301 : vector<2x1xi32>
    %303 = vector.broadcast %c5_i32 : i32 to vector<2x1xi32>
    %304 = arith.cmpi eq, %302, %303 : vector<2x1xi32>
    %305 = vector.shape_cast %304 : vector<2x1xi1> to vector<2x1xi1>
    %306 = vector.broadcast %305 : vector<2x1xi1> to vector<2x32xi1>
    %307 = arith.select %306, %300, %256 : vector<2x32xi1>, vector<2x32xf32>
    %c6_i32 = arith.constant 6 : i32
    %308 = arith.index_cast %c6_i32 : i32 to index
    %c0_151 = arith.constant 0 : index
    %c0_152 = arith.constant 0 : index
    %309 = vector.load %arg2[%308, %c0_151, %c0_152] : memref<8x2x32xf32, #tpu.memory_space<vmem>>, vector<1x2x32xf32>
    %310 = vector.shape_cast %309 : vector<1x2x32xf32> to vector<2x32xf32>
    %c0_153 = arith.constant 0 : index
    %c0_154 = arith.constant 0 : index
    %311 = vector.load %arg5[%c0_153, %c0_154] : memref<32x32xf32, #tpu.memory_space<vmem>>, vector<32x32xf32>
    %cst_155 = arith.constant dense<0.000000e+00> : vector<2x32xf32>
    %312 = tpu.matmul %300, %311, %cst_155 {dimension_numbers = #tpu.dot_dimension_numbers<[1], [0], [0], [1], [0, 0, 1, 1], [], []>} : vector<2x32xf32>, vector<32x32xf32>, vector<2x32xf32> -> vector<2x32xf32>
    %313 = arith.addf %310, %312 : vector<2x32xf32>
    %c0_156 = arith.constant 0 : index
    %c0_157 = arith.constant 0 : index
    %314 = vector.load %arg8[%c0_156, %c0_157] : memref<1x32xf32, #tpu.memory_space<vmem>>, vector<1x32xf32>
    %315 = vector.broadcast %314 : vector<1x32xf32> to vector<2x32xf32>
    %316 = arith.addf %313, %315 : vector<2x32xf32>
    %317 = arith.index_cast %c6_i32 : i32 to index
    %c0_158 = arith.constant 0 : index
    %c0_159 = arith.constant 0 : index
    %318 = vector.load %arg3[%317, %c0_158, %c0_159] : memref<8x2x32xf32, #tpu.memory_space<vmem>>, vector<1x2x32xf32>
    %319 = vector.shape_cast %318 : vector<1x2x32xf32> to vector<2x32xf32>
    %c0_160 = arith.constant 0 : index
    %c0_161 = arith.constant 0 : index
    %320 = vector.load %arg6[%c0_160, %c0_161] : memref<32x32xf32, #tpu.memory_space<vmem>>, vector<32x32xf32>
    %cst_162 = arith.constant dense<0.000000e+00> : vector<2x32xf32>
    %321 = tpu.matmul %300, %320, %cst_162 {dimension_numbers = #tpu.dot_dimension_numbers<[1], [0], [0], [1], [0, 0, 1, 1], [], []>} : vector<2x32xf32>, vector<32x32xf32>, vector<2x32xf32> -> vector<2x32xf32>
    %322 = arith.addf %319, %321 : vector<2x32xf32>
    %c0_163 = arith.constant 0 : index
    %c0_164 = arith.constant 0 : index
    %323 = vector.load %arg9[%c0_163, %c0_164] : memref<1x32xf32, #tpu.memory_space<vmem>>, vector<1x32xf32>
    %324 = vector.broadcast %323 : vector<1x32xf32> to vector<2x32xf32>
    %325 = arith.addf %322, %324 : vector<2x32xf32>
    %c0_165 = arith.constant 0 : index
    %c0_166 = arith.constant 0 : index
    %326 = vector.load %arg7[%c0_165, %c0_166] : memref<32x32xf32, #tpu.memory_space<vmem>>, vector<32x32xf32>
    %cst_167 = arith.constant dense<0.000000e+00> : vector<2x32xf32>
    %327 = tpu.matmul %300, %326, %cst_167 {dimension_numbers = #tpu.dot_dimension_numbers<[1], [0], [0], [1], [0, 0, 1, 1], [], []>} : vector<2x32xf32>, vector<32x32xf32>, vector<2x32xf32> -> vector<2x32xf32>
    %c0_168 = arith.constant 0 : index
    %c0_169 = arith.constant 0 : index
    %328 = vector.load %arg10[%c0_168, %c0_169] : memref<1x32xf32, #tpu.memory_space<vmem>>, vector<1x32xf32>
    %329 = vector.broadcast %328 : vector<1x32xf32> to vector<2x32xf32>
    %330 = arith.addf %327, %329 : vector<2x32xf32>
    %331 = arith.negf %316 : vector<2x32xf32>
    %332 = math.exp %331 : vector<2x32xf32>
    %cst_170 = arith.constant 1.000000e+00 : f32
    %333 = vector.broadcast %cst_170 : f32 to vector<2x32xf32>
    %334 = arith.addf %333, %332 : vector<2x32xf32>
    %335 = arith.divf %333, %334 : vector<2x32xf32>
    %336 = arith.negf %325 : vector<2x32xf32>
    %337 = math.exp %336 : vector<2x32xf32>
    %cst_171 = arith.constant 1.000000e+00 : f32
    %338 = vector.broadcast %cst_171 : f32 to vector<2x32xf32>
    %339 = arith.addf %338, %337 : vector<2x32xf32>
    %340 = arith.divf %338, %339 : vector<2x32xf32>
    %341 = arith.index_cast %c6_i32 : i32 to index
    %c0_172 = arith.constant 0 : index
    %c0_173 = arith.constant 0 : index
    %342 = vector.load %arg4[%341, %c0_172, %c0_173] : memref<8x2x32xf32, #tpu.memory_space<vmem>>, vector<1x2x32xf32>
    %343 = vector.shape_cast %342 : vector<1x2x32xf32> to vector<2x32xf32>
    %344 = arith.mulf %335, %330 : vector<2x32xf32>
    %345 = arith.addf %343, %344 : vector<2x32xf32>
    %346 = math.tanh %345 : vector<2x32xf32>
    %cst_174 = arith.constant 1.000000e+00 : f32
    %347 = vector.broadcast %cst_174 : f32 to vector<2x32xf32>
    %348 = arith.subf %347, %340 : vector<2x32xf32>
    %349 = arith.mulf %348, %346 : vector<2x32xf32>
    %350 = arith.mulf %340, %300 : vector<2x32xf32>
    %351 = arith.addf %349, %350 : vector<2x32xf32>
    %c1_i32_175 = arith.constant 1 : i32
    %352 = vector.broadcast %c1_i32_175 : i32 to vector<2x1xi32>
    %353 = arith.subi %0, %352 : vector<2x1xi32>
    %354 = vector.broadcast %c6_i32 : i32 to vector<2x1xi32>
    %355 = arith.cmpi eq, %353, %354 : vector<2x1xi32>
    %356 = vector.shape_cast %355 : vector<2x1xi1> to vector<2x1xi1>
    %357 = vector.broadcast %356 : vector<2x1xi1> to vector<2x32xi1>
    %358 = arith.select %357, %351, %307 : vector<2x32xi1>, vector<2x32xf32>
    %c7_i32 = arith.constant 7 : i32
    %359 = arith.index_cast %c7_i32 : i32 to index
    %c0_176 = arith.constant 0 : index
    %c0_177 = arith.constant 0 : index
    %360 = vector.load %arg2[%359, %c0_176, %c0_177] : memref<8x2x32xf32, #tpu.memory_space<vmem>>, vector<1x2x32xf32>
    %361 = vector.shape_cast %360 : vector<1x2x32xf32> to vector<2x32xf32>
    %c0_178 = arith.constant 0 : index
    %c0_179 = arith.constant 0 : index
    %362 = vector.load %arg5[%c0_178, %c0_179] : memref<32x32xf32, #tpu.memory_space<vmem>>, vector<32x32xf32>
    %cst_180 = arith.constant dense<0.000000e+00> : vector<2x32xf32>
    %363 = tpu.matmul %351, %362, %cst_180 {dimension_numbers = #tpu.dot_dimension_numbers<[1], [0], [0], [1], [0, 0, 1, 1], [], []>} : vector<2x32xf32>, vector<32x32xf32>, vector<2x32xf32> -> vector<2x32xf32>
    %364 = arith.addf %361, %363 : vector<2x32xf32>
    %c0_181 = arith.constant 0 : index
    %c0_182 = arith.constant 0 : index
    %365 = vector.load %arg8[%c0_181, %c0_182] : memref<1x32xf32, #tpu.memory_space<vmem>>, vector<1x32xf32>
    %366 = vector.broadcast %365 : vector<1x32xf32> to vector<2x32xf32>
    %367 = arith.addf %364, %366 : vector<2x32xf32>
    %368 = arith.index_cast %c7_i32 : i32 to index
    %c0_183 = arith.constant 0 : index
    %c0_184 = arith.constant 0 : index
    %369 = vector.load %arg3[%368, %c0_183, %c0_184] : memref<8x2x32xf32, #tpu.memory_space<vmem>>, vector<1x2x32xf32>
    %370 = vector.shape_cast %369 : vector<1x2x32xf32> to vector<2x32xf32>
    %c0_185 = arith.constant 0 : index
    %c0_186 = arith.constant 0 : index
    %371 = vector.load %arg6[%c0_185, %c0_186] : memref<32x32xf32, #tpu.memory_space<vmem>>, vector<32x32xf32>
    %cst_187 = arith.constant dense<0.000000e+00> : vector<2x32xf32>
    %372 = tpu.matmul %351, %371, %cst_187 {dimension_numbers = #tpu.dot_dimension_numbers<[1], [0], [0], [1], [0, 0, 1, 1], [], []>} : vector<2x32xf32>, vector<32x32xf32>, vector<2x32xf32> -> vector<2x32xf32>
    %373 = arith.addf %370, %372 : vector<2x32xf32>
    %c0_188 = arith.constant 0 : index
    %c0_189 = arith.constant 0 : index
    %374 = vector.load %arg9[%c0_188, %c0_189] : memref<1x32xf32, #tpu.memory_space<vmem>>, vector<1x32xf32>
    %375 = vector.broadcast %374 : vector<1x32xf32> to vector<2x32xf32>
    %376 = arith.addf %373, %375 : vector<2x32xf32>
    %c0_190 = arith.constant 0 : index
    %c0_191 = arith.constant 0 : index
    %377 = vector.load %arg7[%c0_190, %c0_191] : memref<32x32xf32, #tpu.memory_space<vmem>>, vector<32x32xf32>
    %cst_192 = arith.constant dense<0.000000e+00> : vector<2x32xf32>
    %378 = tpu.matmul %351, %377, %cst_192 {dimension_numbers = #tpu.dot_dimension_numbers<[1], [0], [0], [1], [0, 0, 1, 1], [], []>} : vector<2x32xf32>, vector<32x32xf32>, vector<2x32xf32> -> vector<2x32xf32>
    %c0_193 = arith.constant 0 : index
    %c0_194 = arith.constant 0 : index
    %379 = vector.load %arg10[%c0_193, %c0_194] : memref<1x32xf32, #tpu.memory_space<vmem>>, vector<1x32xf32>
    %380 = vector.broadcast %379 : vector<1x32xf32> to vector<2x32xf32>
    %381 = arith.addf %378, %380 : vector<2x32xf32>
    %382 = arith.negf %367 : vector<2x32xf32>
    %383 = math.exp %382 : vector<2x32xf32>
    %cst_195 = arith.constant 1.000000e+00 : f32
    %384 = vector.broadcast %cst_195 : f32 to vector<2x32xf32>
    %385 = arith.addf %384, %383 : vector<2x32xf32>
    %386 = arith.divf %384, %385 : vector<2x32xf32>
    %387 = arith.negf %376 : vector<2x32xf32>
    %388 = math.exp %387 : vector<2x32xf32>
    %cst_196 = arith.constant 1.000000e+00 : f32
    %389 = vector.broadcast %cst_196 : f32 to vector<2x32xf32>
    %390 = arith.addf %389, %388 : vector<2x32xf32>
    %391 = arith.divf %389, %390 : vector<2x32xf32>
    %392 = arith.index_cast %c7_i32 : i32 to index
    %c0_197 = arith.constant 0 : index
    %c0_198 = arith.constant 0 : index
    %393 = vector.load %arg4[%392, %c0_197, %c0_198] : memref<8x2x32xf32, #tpu.memory_space<vmem>>, vector<1x2x32xf32>
    %394 = vector.shape_cast %393 : vector<1x2x32xf32> to vector<2x32xf32>
    %395 = arith.mulf %386, %381 : vector<2x32xf32>
    %396 = arith.addf %394, %395 : vector<2x32xf32>
    %397 = math.tanh %396 : vector<2x32xf32>
    %cst_199 = arith.constant 1.000000e+00 : f32
    %398 = vector.broadcast %cst_199 : f32 to vector<2x32xf32>
    %399 = arith.subf %398, %391 : vector<2x32xf32>
    %400 = arith.mulf %399, %397 : vector<2x32xf32>
    %401 = arith.mulf %391, %351 : vector<2x32xf32>
    %402 = arith.addf %400, %401 : vector<2x32xf32>
    %c1_i32_200 = arith.constant 1 : i32
    %403 = vector.broadcast %c1_i32_200 : i32 to vector<2x1xi32>
    %404 = arith.subi %0, %403 : vector<2x1xi32>
    %405 = vector.broadcast %c7_i32 : i32 to vector<2x1xi32>
    %406 = arith.cmpi eq, %404, %405 : vector<2x1xi32>
    %407 = vector.shape_cast %406 : vector<2x1xi1> to vector<2x1xi1>
    %408 = vector.broadcast %407 : vector<2x1xi1> to vector<2x32xi1>
    %409 = arith.select %408, %402, %358 : vector<2x32xi1>, vector<2x32xf32>
    %c8_i32 = arith.constant 8 : i32
    %410 = arith.mulf %409, %409 : vector<2x32xf32>
    %cst_201 = arith.constant dense<0.000000e+00> : vector<2xf32>
    %411 = vector.multi_reduction <add>, %410, %cst_201 [1] : vector<2x32xf32> to vector<2xf32>
    %412 = vector.shape_cast %411 : vector<2xf32> to vector<2x1xf32>
    %413 = math.sqrt %412 : vector<2x1xf32>
    %cst_202 = arith.constant 9.99999996E-13 : f32
    %414 = vector.broadcast %cst_202 : f32 to vector<2x1xf32>
    %415 = arith.maximumf %413, %414 : vector<2x1xf32>
    %416 = vector.broadcast %415 : vector<2x1xf32> to vector<2x32xf32>
    %417 = arith.divf %409, %416 : vector<2x32xf32>
    %c0_203 = arith.constant 0 : index
    %c0_204 = arith.constant 0 : index
    %418 = vector.load %arg15[%c0_203, %c0_204] : memref<2x32xf32, #tpu.memory_space<vmem>>, vector<2x32xf32>
    tpu.vector_store %arg15[%c0_203, %c0_204], %417 {strides = array<i32>} : memref<2x32xf32, #tpu.memory_space<vmem>>, vector<2x32xf32>,
    %c0_205 = arith.constant 0 : index
    %c0_206 = arith.constant 0 : index
    %419 = vector.load %arg11[%c0_205, %c0_206] : memref<32x64xf32, #tpu.memory_space<vmem>>, vector<32x64xf32>
    %cst_207 = arith.constant dense<0.000000e+00> : vector<2x64xf32>
    %420 = tpu.matmul %417, %419, %cst_207 {dimension_numbers = #tpu.dot_dimension_numbers<[1], [0], [0], [1], [0, 0, 1, 1], [], []>} : vector<2x32xf32>, vector<32x64xf32>, vector<2x64xf32> -> vector<2x64xf32>
    %c0_208 = arith.constant 0 : index
    %c0_209 = arith.constant 0 : index
    %421 = vector.load %arg12[%c0_208, %c0_209] : memref<1x64xf32, #tpu.memory_space<vmem>>, vector<1x64xf32>
    %422 = vector.broadcast %421 : vector<1x64xf32> to vector<2x64xf32>
    %423 = arith.addf %420, %422 : vector<2x64xf32>
    %cst_210 = arith.constant 0.000000e+00 : f32
    %424 = vector.broadcast %cst_210 : f32 to vector<2x64xf32>
    %425 = arith.maximumf %423, %424 : vector<2x64xf32>
    %c0_211 = arith.constant 0 : index
    %c0_212 = arith.constant 0 : index
    %426 = vector.load %arg13[%c0_211, %c0_212] : memref<64x32xf32, #tpu.memory_space<vmem>>, vector<64x32xf32>
    %cst_213 = arith.constant dense<0.000000e+00> : vector<2x32xf32>
    %427 = tpu.matmul %425, %426, %cst_213 {dimension_numbers = #tpu.dot_dimension_numbers<[1], [0], [0], [1], [0, 0, 1, 1], [], []>} : vector<2x64xf32>, vector<64x32xf32>, vector<2x32xf32> -> vector<2x32xf32>
    %c0_214 = arith.constant 0 : index
    %c0_215 = arith.constant 0 : index
    %428 = vector.load %arg14[%c0_214, %c0_215] : memref<1x32xf32, #tpu.memory_space<vmem>>, vector<1x32xf32>
    %429 = vector.broadcast %428 : vector<1x32xf32> to vector<2x32xf32>
    %430 = arith.addf %427, %429 : vector<2x32xf32>
    %c0_216 = arith.constant 0 : index
    %c0_217 = arith.constant 0 : index
    %431 = vector.load %arg16[%c0_216, %c0_217] : memref<2x32xf32, #tpu.memory_space<vmem>>, vector<2x32xf32>
    tpu.vector_store %arg16[%c0_216, %c0_217], %430 {strides = array<i32>} : memref<2x32xf32, #tpu.memory_space<vmem>>, vector<2x32xf32>,
    return
  }
  func.func @transform_0(%arg0: i32) -> (i32, i32) {
    %c0_i32 = arith.constant 0 : i32
    %c0_i32_0 = arith.constant 0 : i32
    %c0_i32_1 = arith.constant 0 : i32
    return %c0_i32, %c0_i32_0 : i32, i32
  }
  func.func @transform_1(%arg0: i32) -> (i32, i32, i32) {
    %c0_i32 = arith.constant 0 : i32
    %c0_i32_0 = arith.constant 0 : i32
    %c0_i32_1 = arith.constant 0 : i32
    %c0_i32_2 = arith.constant 0 : i32
    return %c0_i32, %c0_i32_0, %c0_i32_1 : i32, i32, i32
  }
  func.func @transform_2(%arg0: i32) -> (i32, i32, i32) {
    %c0_i32 = arith.constant 0 : i32
    %c0_i32_0 = arith.constant 0 : i32
    %c0_i32_1 = arith.constant 0 : i32
    %c0_i32_2 = arith.constant 0 : i32
    return %c0_i32, %c0_i32_0, %c0_i32_1 : i32, i32, i32
  }
  func.func @transform_3(%arg0: i32) -> (i32, i32, i32) {
    %c0_i32 = arith.constant 0 : i32
    %c0_i32_0 = arith.constant 0 : i32
    %c0_i32_1 = arith.constant 0 : i32
    %c0_i32_2 = arith.constant 0 : i32
    return %c0_i32, %c0_i32_0, %c0_i32_1 : i32, i32, i32
  }
  func.func @transform_4(%arg0: i32) -> (i32, i32) {
    %c0_i32 = arith.constant 0 : i32
    %c0_i32_0 = arith.constant 0 : i32
    %c0_i32_1 = arith.constant 0 : i32
    return %c0_i32, %c0_i32_0 : i32, i32
  }
  func.func @transform_5(%arg0: i32) -> (i32, i32) {
    %c0_i32 = arith.constant 0 : i32
    %c0_i32_0 = arith.constant 0 : i32
    %c0_i32_1 = arith.constant 0 : i32
    return %c0_i32, %c0_i32_0 : i32, i32
  }
  func.func @transform_6(%arg0: i32) -> (i32, i32) {
    %c0_i32 = arith.constant 0 : i32
    %c0_i32_0 = arith.constant 0 : i32
    %c0_i32_1 = arith.constant 0 : i32
    return %c0_i32, %c0_i32_0 : i32, i32
  }
  func.func @transform_7(%arg0: i32) -> (i32, i32) {
    %c0_i32 = arith.constant 0 : i32
    %c0_i32_0 = arith.constant 0 : i32
    %c0_i32_1 = arith.constant 0 : i32
    return %c0_i32, %c0_i32_0 : i32, i32
  }
  func.func @transform_8(%arg0: i32) -> (i32, i32) {
    %c0_i32 = arith.constant 0 : i32
    %c0_i32_0 = arith.constant 0 : i32
    %c0_i32_1 = arith.constant 0 : i32
    return %c0_i32, %c0_i32_0 : i32, i32
  }
  func.func @transform_9(%arg0: i32) -> (i32, i32) {
    %c0_i32 = arith.constant 0 : i32
    %c0_i32_0 = arith.constant 0 : i32
    %c0_i32_1 = arith.constant 0 : i32
    return %c0_i32, %c0_i32_0 : i32, i32
  }
  func.func @transform_10(%arg0: i32) -> (i32, i32) {
    %c0_i32 = arith.constant 0 : i32
    %c0_i32_0 = arith.constant 0 : i32
    %c0_i32_1 = arith.constant 0 : i32
    return %c0_i32, %c0_i32_0 : i32, i32
  }
  func.func @transform_11(%arg0: i32) -> (i32, i32) {
    %c0_i32 = arith.constant 0 : i32
    %c0_i32_0 = arith.constant 0 : i32
    %c0_i32_1 = arith.constant 0 : i32
    return %c0_i32, %c0_i32_0 : i32, i32
  }
  func.func @transform_12(%arg0: i32) -> (i32, i32) {
    %c0_i32 = arith.constant 0 : i32
    %c0_i32_0 = arith.constant 0 : i32
    %c0_i32_1 = arith.constant 0 : i32
    return %c0_i32, %c0_i32_0 : i32, i32
  }
  func.func @transform_13(%arg0: i32) -> (i32, i32) {
    %c0_i32 = arith.constant 0 : i32
    %c0_i32_0 = arith.constant 0 : i32
    %c0_i32_1 = arith.constant 0 : i32
    return %c0_i32, %c0_i32_0 : i32, i32
  }
  func.func @transform_14(%arg0: i32) -> (i32, i32) {
    %c0_i32 = arith.constant 0 : i32
    %c0_i32_0 = arith.constant 0 : i32
    %c0_i32_1 = arith.constant 0 : i32
    return %c0_i32, %c0_i32_0 : i32, i32
  }
  func.func @transform_15(%arg0: i32) -> (i32, i32) {
    %c0_i32 = arith.constant 0 : i32
    %c0_i32_0 = arith.constant 0 : i32
    %c0_i32_1 = arith.constant 0 : i32
    return %c0_i32, %c0_i32_0 : i32, i32
  }
}

</mosaic_0001>

<bundles_post_ra>
// kernel: image_caption_encoder_forward.4
= control target key start
LH: loop header
LB: loop body
LE: loop exit
PB: predicated region body
PF: predicated region fallthrough
CT: control target
= control target key end

     0   :  { %vm42_vm0 = vcmask 261120   ;;  %s529_s1 = inlined_call_operand.vmem [shape: f32[32,32], index: 1, kind: input, shape index: {}]   ;;  %s530_s0 = inlined_call_operand.vmem [shape: f32[16,32], index: 0, kind: input, shape index: {}]   ;;  %s531_s2 = inlined_call_operand.vmem [shape: f32[32,32], index: 2, kind: input, shape index: {}]   ;;  %s532_s3 = inlined_call_operand.vmem [shape: f32[32,32], index: 3, kind: input, shape index: {}]   ;;  %s533_s4 = inlined_call_operand.vmem [shape: f32[1,32], index: 4, kind: input, shape index: {}]   ;;  %s534_s5 = inlined_call_operand.vmem [shape: f32[1,32], index: 5, kind: input, shape index: {}]   ;;  %s535_s7 = inlined_call_operand.vmem [shape: f32[16,32], index: 7, kind: output, shape index: {0}]   ;;  %s536_s8 = inlined_call_operand.vmem [shape: f32[16,32], index: 8, kind: output, shape index: {1}]   ;;  %s537_s6 = inlined_call_operand.vmem [shape: f32[1,32], index: 6, kind: input, shape index: {}]   ;;  %s538_s9 = inlined_call_operand.vmem [shape: f32[16,32], index: 9, kind: output, shape index: {2}]  }
   0x1   :  { %v31_v0 = vld [vmem:[%s529_s1] sm:$0xff]  ;;  %v32_v1 = vld [vmem:[%s529_s1 + $0x8] sm:$0xff]  ;;  %v33_v2 = vld [vmem:[%s529_s1 + $0x10] sm:$0xff] }
   0x2   :  { %v374_v3 = vpack.c.bf16 %v32_v1, %v31_v0  ;;  %v34_v4 = vld [vmem:[%s529_s1 + $0x18] sm:$0xff]  ;;  %v29_v5 = vld [vmem:[%s530_s0] sm:$0xff]  ;;  %v127_v8 = vld [vmem:[%s531_s2 + $0x8] sm:$0xff] }
   0x3   :  { %v126_v6 = vld [vmem:[%s531_s2] sm:$0xff]  ;;  %v378_v7 = vpack.c.bf16 %v34_v4, %v33_v2  ;;  %349 = vmatprep.mubr.msk.f32.mxu0 %vm42_vm0, %v29_v5  ;;  %360 = vmatprep.mubr.msk.f32.mxu1 %vm42_vm0, %v29_v5  ;;  %v215_v11 = vld [vmem:[%s532_s3 + $0x8] sm:$0xff]  ;;  %v128_v12 = vld [vmem:[%s531_s2 + $0x10] sm:$0xff] }
   0x4   :  { %v214_v9 = vld [vmem:[%s532_s3] sm:$0xff]  ;;  %375 = vmatprep.subr.bf16.mxu0 %v374_v3  ;;  %v382_v10 = vpack.c.bf16 %v127_v8, %v126_v6  ;;  %v129_v13 = vld [vmem:[%s531_s2 + $0x18] sm:$0xff]  ;;  %v216_v16 = vld [vmem:[%s532_s3 + $0x10] sm:$0xff] }
   0x5   :  { %377 = vmatpush3.bf16.msra.mxu0 %v374_v3  ;;  %v386_v14 = vpack.c.bf16 %v129_v13, %v128_v12  ;;  %v390_v15 = vpack.c.bf16 %v215_v11, %v214_v9  ;;  %v217_v17 = vld [vmem:[%s532_s3 + $0x18] sm:$0xff]  ;;  %v30_v18 = vld [vmem:[%s530_s0 + $0x8] sm:$0xff]  ;;  %v314_v20 = vld [vmem:[%s533_s4] ss:$0 sm:$0xff] }
   0x6   :  { %379 = vmatprep.subr.bf16.mxu0 %v378_v7  ;;  %383 = vmatprep.subr.bf16.mxu1 %v382_v10  ;;  %v394_v19 = vpack.c.bf16 %v217_v17, %v216_v16  ;;  %v317_v22 = vld [vmem:[%s534_s5] ss:$0 sm:$0xff] }
   0x7   :  { %385 = vmatpush3.bf16.msra.mxu1 %v382_v10  ;;  %v320_v30 = vld [vmem:[%s537_s6] ss:$0 sm:$0xff] }
   0x8   :  { %387 = vmatprep.subr.bf16.mxu1 %v386_v14 }
   0x9   :  { %381 = vmatpush3.bf16.msra.mxu0 %v378_v7 }
   0xa   :  { %391 = vmatprep.subr.bf16.mxu0 %v390_v15 }
   0xb   :  { %389 = vmatpush3.bf16.msra.mxu1 %v386_v14 }
   0xc   :  { %350 = vmatmul.mubr.msk.f32.vlgmr.msra.gmra.mrb[0].mxu0 %vm42_vm0, %v30_v18 }
   0xd   :  { %393 = vmatpush3.bf16.msra.mxu0 %v390_v15  ;;  %371 = vmatprep.mubr.msk.f32.mxu0 %vm42_vm0, %v29_v5 }
   0xe   :  { %395 = vmatprep.subr.bf16.mxu0 %v394_v19  ;;  %361 = vmatmul.mubr.msk.f32.vlgmr.msra.gmra.mrb[0].mxu1 %vm42_vm0, %v30_v18 }
  0x11   :  { %397 = vmatpush3.bf16.msra.mxu0 %v394_v19 }
  0x14   :  { %372 = vmatmul.mubr.msk.f32.vlgmr.msra.gmra.mrb[2].mxu0 %vm42_vm0, %v30_v18 }
  0xdf   :  { %v351_v21 = vpop.f32.mrb[0].mxu0 }
  0xe0   :  { %v121_v23 = vadd.f32 %v351_v21, %v314_v20  ;;  %v115_v24 = vpop.f32.mrb[1].mxu0 }
  0xe1   :  { %v116_v25 = vadd.f32 %v314_v20, %v115_v24  ;;  %v362_v26 = vpop.f32.mrb[0].mxu1 }
  0xe2   :  { %125 = vst.msk [vmem:[%s535_s7 + $0x8] sm:$0xff] %vm42_vm0, %v121_v23  ;;  %v209_v27 = vadd.f32 %v362_v26, %v317_v22  ;;  %v203_v28 = vpop.f32.mrb[1].mxu1 }
  0xe3   :  { %124 = vst.msk [vmem:[%s535_s7] sm:$0xff] %vm42_vm0, %v116_v25  ;;  %v204_v29 = vadd.f32 %v317_v22, %v203_v28 }
  0xe4   :  { %213 = vst.msk [vmem:[%s536_s8 + $0x8] sm:$0xff] %vm42_vm0, %v209_v27 }
  0xe5   :  { %212 = vst.msk [vmem:[%s536_s8] sm:$0xff] %vm42_vm0, %v204_v29 }
  0xe7   :  { %v373_v31 = vpop.f32.mrb[2].mxu0 }
  0xe8   :  { %v297_v32 = vadd.f32 %v373_v31, %v320_v30  ;;  %v291_v33 = vpop.f32.mrb[3].mxu0 }
  0xe9   :  { %v292_v34 = vadd.f32 %v320_v30, %v291_v33 }
  0xea   :  { %301 = vst.msk [vmem:[%s538_s9 + $0x8] sm:$0xff] %vm42_vm0, %v297_v32 }
  0xeb   :  { %300 = vst.msk [vmem:[%s538_s9] sm:$0xff] %vm42_vm0, %v292_v34 }

// kernel: image_caption_encoder_forward.3
= control target key start
LH: loop header
LB: loop body
LE: loop exit
PB: predicated region body
PF: predicated region fallthrough
CT: control target
= control target key end

     0   :  { %10 = vsyncpa [#allocation4], 0  ;;  %s1570_s0 = inlined_call_operand.vmem [shape: f32[2,256,36], index: 0, kind: input, shape index: {}]   ;;  %s1571_s1 = inlined_call_operand.vmem [shape: f32[36,128], index: 1, kind: input, shape index: {}]   ;;  %s1572_s2 = inlined_call_operand.vmem [shape: f32[1,128], index: 2, kind: input, shape index: {}]   ;;  %s1573_s3 = inlined_call_operand.vmem [shape: f32[128,32], index: 3, kind: input, shape index: {}]   ;;  %s1574_s4 = inlined_call_operand.vmem [shape: f32[1,32], index: 4, kind: input, shape index: {}]   ;;  %s1575_s5 = inlined_call_operand.hbm [shape: f32[2,1,32], index: 5, kind: output, shape index: {}]  }
   0x1   :  { %12 = vsyncpa [#allocation4 + $0x1], 0  ;;  %s1287_s18 = smov 0   ;;  %s1289_s19 = smov 0  }
   0x2   :  { %s1291_s20 = smov 0   ;;  %s1293_s21 = smov 0  }
   0x3   :  { %s1295_s22 = smov 0   ;;  %s1297_s23 = smov 0  }
   0x4 LB: > { %s887_s24 = sadd.s32 4294967295, %s1251_s23   ;;  %s888_s25 = sadd.s32 4294967294, %s1251_s23   ;;  %s1251_s23 = sphi %s1297_s23, %s18_s23   ;;  %s1247_s22 = sphi %s1295_s22, %s1582_s22   ;;  %s1243_s21 = sphi %s1293_s21, %s1581_s21   ;;  %s1239_s20 = sphi %s1291_s20, %s1580_s20   ;;  %s1235_s19 = sphi %s1289_s19, %s1579_s19   ;;  %s1231_s18 = sphi %s1287_s18, %s1578_s18  }
   0x5   : > { %s30_s26 = sadd.s32 1, %s1247_s22  ;;  %s149_s27 = sadd.s32 1, %s1239_s20 }
   0x6   : > { %p32_p0 = scmp.ge.s32.totalorder %s30_s26, 2  ;;  %p159_p1 = scmp.ne.s32.totalorder %s1239_s20, %s1235_s19 }
   0x7   : > { %p160_p2 = scmp.eq.s32.totalorder %s887_s24, 1  ;;  %p165_p3 = scmp.ne.s32.totalorder %s1235_s19, %s1231_s18 }
   0x8   : > { %s1584_s26 = smov (%p32_p0, %s30_s26), 0  ;;  %p166_p5 = scmp.eq.s32.totalorder %s888_s25, 1 }
   0x9   : > { %p1327_p4 = por %p160_p2, %p159_p1  ;;  %s146_s29 = ssub.s32 %s1247_s22, %s1584_s26 }
   0xa   : > { %p891_p6 = scmp.ge.s32.totalorder %s1251_s23, 1  ;;  %p147_p7 = scmp.eq.s32.totalorder %s146_s29, 0 }
   0xb   : > { %p1334_p8 = por %p166_p5, %p165_p3  ;;  %p209_p9 = scmp.lt.s32.totalorder %s1251_s23, 3 }
   0xc   : > { %s1340_s6 = scalar_select %p147_p7, %s1239_s20, %s149_s27  }
   0xd   : > { %p210_p10 = pnand %p891_p6, %p209_p9 }
   0xe   : > { %v287_v0 = vld [vmem:[%s1571_s1] sm:$0xff] (!%p210_p10)  ;;  %v288_v1 = vld [vmem:[%s1571_s1 + $0x8] sm:$0xff] (!%p210_p10)  ;;  %v289_v2 = vld [vmem:[%s1571_s1 + $0x10] sm:$0xff] (!%p210_p10)  ;;  %p241_p11 = scmp.lt.s32.totalorder (!%p210_p10), %s1243_s21, 1  ;;  %vm299_vm0 = vcmask (!%p210_p10), 293888   ;;  %vm396_vm1 = vcmask (!%p210_p10), 1043456  }
   0xf   : > { %213 = sbr.rel (%p210_p10) target bundleno = 736 (0x2e0), region = 40  ;;  %v1079_v3 = vpack.c.bf16 (!%p210_p10), %v288_v1, %v287_v0  ;;  %v290_v4 = vld [vmem:[%s1571_s1 + $0x18] sm:$0xff] (!%p210_p10)  ;;  %v291_v6 = vld [vmem:[%s1571_s1 + $0x20] sm:$0xf] (!%p210_p10)  ;;  %v703_v40 = vld [vmem:[%s1573_s3 + $0x8] sm:$0xff] (!%p210_p10)  ;;  %v1253_v42 = vmov (!%p210_p10), 0.0|0.0  }
  0x10   : > { %v1083_v5 = vpack.c.bf16 (!%p210_p10), %v290_v4, %v289_v2  ;;  %v702_v39 = vld [vmem:[%s1573_s3] sm:$0xff] (!%p210_p10)  ;;  %1087 = vmatprep.subr.bf16.mxu1 (!%p210_p10), %v1253_v42  ;;  %v704_v43 = vld [vmem:[%s1573_s3 + $0x10] sm:$0xff] (!%p210_p10)  ;;  %v705_v44 = vld [vmem:[%s1573_s3 + $0x18] sm:$0xff] (!%p210_p10)  ;;  %v1254_v52 = vmov (!%p210_p10), 0.0   ;;  %vm1255_vm2 = vmmov (!%p210_p10), 0   ;;  %vm790_vm3 = vcmask (!%p210_p10), 253952  }
  0x11   : > { %1080 = vmatprep.subr.bf16.mxu0 (!%p210_p10), %v1079_v3  ;;  %v1088_v41 = vpack.c.bf16 (!%p210_p10), %v703_v40, %v702_v39  ;;  %v1091_v45 = vpack.c.bf16 (!%p210_p10), %v705_v44, %v704_v43  ;;  %v706_v46 = vld [vmem:[%s1573_s3 + $0x20] sm:$0xff] (!%p210_p10)  ;;  %v707_v47 = vld [vmem:[%s1573_s3 + $0x28] sm:$0xff] (!%p210_p10)  ;;  %v708_v49 = vld [vmem:[%s1573_s3 + $0x30] sm:$0xff] (!%p210_p10)  ;;  %254 = vst [vmem:[#allocation2] sm:$0x1] (!%p210_p10), %v1254_v52  ;;  %1076 = vmatprep.mubr.msk.f32.mxu1 (!%p210_p10), %vm1255_vm2, %v1254_v52  ;;  %s238_s13 = sand.u32 (!%p210_p10), 1, %s1235_s19  }
  0x12   : > { %1082 = vmatpush3.bf16.msra.mxu0 (!%p210_p10), %v1079_v3  ;;  %v1094_v48 = vpack.c.bf16 (!%p210_p10), %v707_v47, %v706_v46  ;;  %v709_v50 = vld [vmem:[%s1573_s3 + $0x38] sm:$0xff] (!%p210_p10)  ;;  %v710_v53 = vld [vmem:[%s1573_s3 + $0x40] sm:$0xff] (!%p210_p10)  ;;  %v711_v54 = vld [vmem:[%s1573_s3 + $0x48] sm:$0xff] (!%p210_p10)  ;;  %s928_s14 = sshll.u32 (!%p210_p10), %s1243_s21, 4  ;;  %s806_s27 = scalar_lea.sflag (!%p210_p10), [#allocation4], %s238_s13 }
  0x13   : > { %1084 = vmatprep.subr.bf16.mxu0 (!%p210_p10), %v1083_v5  ;;  %1089 = vmatpush3.bf16.msra.mxu1 (!%p210_p10), %v1088_v41  ;;  %v1097_v51 = vpack.c.bf16 (!%p210_p10), %v709_v50, %v708_v49  ;;  %v712_v55 = vld [vmem:[%s1573_s3 + $0x50] sm:$0xff] (!%p210_p10)  ;;  %v1100_v56 = vpack.c.bf16 (!%p210_p10), %v711_v54, %v710_v53  ;;  %v713_v57 = vld [vmem:[%s1573_s3 + $0x58] sm:$0xff] (!%p210_p10)  ;;  %v714_v59 = vld [vmem:[%s1573_s3 + $0x60] sm:$0xff] (!%p210_p10) }
  0x14   : > { %1090 = vmatprep.subr.bf16.mxu1 (!%p210_p10), %v1253_v42  ;;  %v1103_v58 = vpack.c.bf16 (!%p210_p10), %v713_v57, %v712_v55  ;;  %v715_v60 = vld [vmem:[%s1573_s3 + $0x68] sm:$0xff] (!%p210_p10)  ;;  %v716_v62 = vld [vmem:[%s1573_s3 + $0x70] sm:$0xff] (!%p210_p10)  ;;  %v717_v63 = vld [vmem:[%s1573_s3 + $0x78] sm:$0xff] (!%p210_p10) }
  0x15   : > { %v1106_v61 = vpack.c.bf16 (!%p210_p10), %v715_v60, %v714_v59  ;;  %v1109_v0 = vpack.c.bf16 (!%p210_p10), %v717_v63, %v716_v62  ;;  %v1479_v1 = vld [vmem:[%s1572_s2] ss:$0 sm:$0xff] (!%p210_p10) }
  0x16   : > { %s242_s15 = scalar_select %p241_p11, %s1243_s21, 1  ;;  %1086 = vmatpush3.bf16.msra.mxu0 %v1083_v5 }
  0x17   : > { %994 = vmatprep.subr.msk.mxu0 %vm396_vm1, %v291_v6  ;;  %1092 = vmatpush3.bf16.msra.mxu1 %v1091_v45  ;;  %s1256_s21 = smov [#allocation3]  }
  0x18   : > { %s931_s16 = sshll.u32 %s242_s15, 8  ;;  %1093 = vmatprep.subr.bf16.mxu1 %v1253_v42  ;;  %s239_s15 = scalar_lea.vmem [#allocation3], %s238_s13 }
  0x19   : > { %s1359_s25 = scalar_lea.vmem %s1570_s0, %s931_s16  ;;  %s818_s16 = sshll.u32 %s239_s15, 4  ;;  %s1524_s16 = int_to_ptr.vmem [resolvable:$true] %s818_s16 }
  0x1a   : > { %v255_v7 = vld [vmem:[%s1359_s25] sm:$0xff]  ;;  %v256_v8 = vld [vmem:[%s1359_s25 + $0x8] sm:$0xff]  ;;  %v257_v9 = vld [vmem:[%s1359_s25 + $0x10] sm:$0xff]  ;;  %995 = vmatpush3.msk.msra.mxu0 %vm396_vm1, %v291_v6  ;;  %s1173_s29 = scalar_lea.vmem %s1524_s16, 16  ;;  %s1177_s7 = sshll.u32 %s1256_s21, 4  ;;  %s1178_s7 = int_to_ptr.vmem [resolvable:$false] %s1177_s7 }
  0x1b   : > { %996 = vmatprep.mubr.msk.f32.mxu0 %vm299_vm0, %v255_v7  ;;  %v258_v10 = vld [vmem:[%s1359_s25 + $0x18] sm:$0xff]  ;;  %v259_v11 = vld [vmem:[%s1359_s25 + $0x20] sm:$0xff]  ;;  %v260_v12 = vld [vmem:[%s1359_s25 + $0x28] sm:$0xff]  ;;  %1095 = vmatpush3.bf16.msra.mxu1 %v1094_v48  ;;  %p1174_p12 = scmp.ne.s32.totalorder %s1524_s16, %s1173_s29  ;;  %s1179_s8 = scalar_lea.vmem %s1178_s7, 32 }
  0x1c   : > { %997 = vmatmul.mubr.msk.f32.vlgmr.msra.gmra.mrb[0].mxu0 %vm299_vm0, %v256_v8  ;;  %v261_v13 = vld [vmem:[%s1359_s25 + $0x30] sm:$0xff]  ;;  %v262_v14 = vld [vmem:[%s1359_s25 + $0x38] sm:$0xff]  ;;  %v263_v15 = vld [vmem:[%s1359_s25 + $0x40] sm:$0xff]  ;;  %1096 = vmatprep.subr.bf16.mxu1 %v1253_v42  ;;  %p1180_p1 = scmp.lt.s32.totalorder %s1524_s16, %s1178_s7  ;;  %p1181_p2 = scmp.lt.s32.totalorder %s1179_s8, %s1173_s29 }
  0x1d   : > { %999 = vmatprep.mubr.msk.f32.mxu0 %vm299_vm0, %v257_v9  ;;  %v264_v16 = vld [vmem:[%s1359_s25 + $0x48] sm:$0xff]  ;;  %v265_v17 = vld [vmem:[%s1359_s25 + $0x50] sm:$0xff]  ;;  %v266_v18 = vld [vmem:[%s1359_s25 + $0x58] sm:$0xff]  ;;  %p1175_p13 = pnand %p1174_p12, %p1327_p4 }
  0x1e   : > { %v267_v19 = vld [vmem:[%s1359_s25 + $0x60] sm:$0xff]  ;;  %v268_v20 = vld [vmem:[%s1359_s25 + $0x68] sm:$0xff]  ;;  %v269_v21 = vld [vmem:[%s1359_s25 + $0x70] sm:$0xff]  ;;  %p1182_p3 = por %p1181_p2, %p1180_p1 }
  0x1f   : > { %v270_v22 = vld [vmem:[%s1359_s25 + $0x78] sm:$0xff]  ;;  %v271_v23 = vld [vmem:[%s1359_s25 + $0x80] sm:$0xff]  ;;  %v272_v24 = vld [vmem:[%s1359_s25 + $0x88] sm:$0xff]  ;;  %1098 = vmatpush3.bf16.msra.mxu1 %v1097_v51  ;;  %p1176_p0 = pneg %p1175_p13 }
  0x20   : > { %1000 = vmatmul.mubr.msk.f32.gmra.mrb[2].mxu0 %vm299_vm0, %v258_v10  ;;  %v273_v25 = vld [vmem:[%s1359_s25 + $0x90] sm:$0xff]  ;;  %v274_v26 = vld [vmem:[%s1359_s25 + $0x98] sm:$0xff]  ;;  %v275_v27 = vld [vmem:[%s1359_s25 + $0xa0] sm:$0xff]  ;;  %1099 = vmatprep.subr.bf16.mxu1 %v1253_v42 }
  0x21   : > { %1002 = vmatprep.mubr.msk.f32.mxu0 %vm299_vm0, %v259_v11  ;;  %v276_v28 = vld [vmem:[%s1359_s25 + $0xa8] sm:$0xff]  ;;  %v277_v29 = vld [vmem:[%s1359_s25 + $0xb0] sm:$0xff]  ;;  %v278_v30 = vld [vmem:[%s1359_s25 + $0xb8] sm:$0xff]  ;;  %p1183_p5 = pnand %p1182_p3, %p1176_p0 }
  0x22   : > { %v279_v31 = vld [vmem:[%s1359_s25 + $0xc0] sm:$0xff]  ;;  %v280_v32 = vld [vmem:[%s1359_s25 + $0xc8] sm:$0xff]  ;;  %v281_v33 = vld [vmem:[%s1359_s25 + $0xd0] sm:$0xff] }
  0x23   : > { %v282_v34 = vld [vmem:[%s1359_s25 + $0xd8] sm:$0xff]  ;;  %v283_v35 = vld [vmem:[%s1359_s25 + $0xe0] sm:$0xff]  ;;  %v284_v36 = vld [vmem:[%s1359_s25 + $0xe8] sm:$0xff]  ;;  %1101 = vmatpush3.bf16.msra.mxu1 %v1100_v56 }
  0x24   : > { %1003 = vmatmul.mubr.msk.f32.gmra.mrb[4].mxu0 %vm299_vm0, %v260_v12  ;;  %v285_v37 = vld [vmem:[%s1359_s25 + $0xf0] sm:$0xff]  ;;  %v286_v38 = vld [vmem:[%s1359_s25 + $0xf8] sm:$0xff]  ;;  %1102 = vmatprep.subr.bf16.mxu1 %v1253_v42  ;;  %s1522_s25 = scalar_lea.hbm %s1575_s5, %s928_s14 }
  0x25   : > { %1005 = vmatprep.mubr.msk.f32.mxu0 %vm299_vm0, %v261_v13 }
  0x27   : > { %1104 = vmatpush3.bf16.msra.mxu1 %v1103_v58 }
  0x28   : > { %1006 = vmatmul.mubr.msk.f32.gmra.mrb[6].mxu0 %vm299_vm0, %v262_v14  ;;  %1105 = vmatprep.subr.bf16.mxu1 %v1253_v42 }
  0x29   : > { %1008 = vmatprep.mubr.msk.f32.mxu0 %vm299_vm0, %v263_v15 }
  0x2b   : > { %1107 = vmatpush3.bf16.msra.mxu1 %v1106_v61 }
  0x2c   : > { %1009 = vmatmul.mubr.msk.f32.gmra.mrb[8].mxu0 %vm299_vm0, %v264_v16  ;;  %1108 = vmatprep.subr.bf16.mxu1 %v1253_v42 }
  0x2d   : > { %1011 = vmatprep.mubr.msk.f32.mxu0 %vm299_vm0, %v265_v17 }
  0x2f   : > { %1110 = vmatpush3.bf16.msra.mxu1 %v1109_v0 }
  0x30   : > { %1012 = vmatmul.mubr.msk.f32.gmra.mrb[10].mxu0 %vm299_vm0, %v266_v18 }
  0x31   : > { %1014 = vmatprep.mubr.msk.f32.mxu0 %vm299_vm0, %v267_v19 }
  0x34   : > { %1015 = vmatmul.mubr.msk.f32.gmra.mrb[12].mxu0 %vm299_vm0, %v268_v20 }
  0x35   : > { %1017 = vmatprep.mubr.msk.f32.mxu0 %vm299_vm0, %v269_v21 }
  0x38   : > { %1018 = vmatmul.mubr.msk.f32.gmra.mrb[14].mxu0 %vm299_vm0, %v270_v22 }
  0x39   : > { %1020 = vmatprep.mubr.msk.f32.mxu0 %vm299_vm0, %v271_v23 }
  0x3c   : > { %1021 = vmatmul.mubr.msk.f32.gmra.mrb[16].mxu0 %vm299_vm0, %v272_v24 }
  0x3d   : > { %1023 = vmatprep.mubr.msk.f32.mxu0 %vm299_vm0, %v273_v25 }
  0x40   : > { %1024 = vmatmul.mubr.msk.f32.gmra.mrb[18].mxu0 %vm299_vm0, %v274_v26 }
  0x41   : > { %1026 = vmatprep.mubr.msk.f32.mxu0 %vm299_vm0, %v275_v27 }
  0x44   : > { %1027 = vmatmul.mubr.msk.f32.gmra.mrb[20].mxu0 %vm299_vm0, %v276_v28 }
  0x45   : > { %1029 = vmatprep.mubr.msk.f32.mxu0 %vm299_vm0, %v277_v29 }
  0x48   : > { %1030 = vmatmul.mubr.msk.f32.gmra.mrb[22].mxu0 %vm299_vm0, %v278_v30 }
  0x49   : > { %1032 = vmatprep.mubr.msk.f32.mxu0 %vm299_vm0, %v279_v31 }
  0x4c   : > { %1033 = vmatmul.mubr.msk.f32.gmra.mrb[24].mxu0 %vm299_vm0, %v280_v32 }
  0x4d   : > { %1035 = vmatprep.mubr.msk.f32.mxu0 %vm299_vm0, %v281_v33 }
  0x50   : > { %1036 = vmatmul.mubr.msk.f32.gmra.mrb[26].mxu0 %vm299_vm0, %v282_v34 }
  0x51   : > { %1038 = vmatprep.mubr.msk.f32.mxu0 %vm299_vm0, %v283_v35 }
  0x54   : > { %1039 = vmatmul.mubr.msk.f32.gmra.mrb[28].mxu0 %vm299_vm0, %v284_v36 }
  0x55   : > { %1041 = vmatprep.mubr.msk.f32.mxu0 %vm299_vm0, %v285_v37 }
  0x58   : > { %1042 = vmatmul.mubr.msk.f32.gmra.mrb[30].mxu0 %vm299_vm0, %v286_v38 }
  0xef   : > { %v998_v2 = vpop.f32.mrb[0].mxu0 }
  0xf0   : > { %v472_v3 = vadd.f32 %v998_v2, %v1479_v1  ;;  %v466_v4 = vpop.f32.mrb[1].mxu0 }
  0xf1   : > { %v467_v5 = vadd.f32 %v1479_v1, %v466_v4 }
  0xf2   : > { %v626_v6 = vmax.f32 %v472_v3, 0.0 }
  0xf3   : > { %v625_v7 = vmax.f32 %v467_v5, 0.0  ;;  %v1001_v8 = vpop.f32.mrb[2].mxu0 }
  0xf4   : > { %v476_v9 = vpop.f32.mrb[3].mxu0  ;;  %v482_v11 = vadd.f32 %v1001_v8, %v1479_v1 }
  0xf5   : > { %v658_v10 = vadd.f32 %v626_v6, %v625_v7  ;;  %v477_v12 = vadd.f32 %v1479_v1, %v476_v9 }
  0xf6   : > { %v628_v16 = vmax.f32 %v482_v11, 0.0 }
  0xf7   : > { %v627_v13 = vmax.f32 %v477_v12, 0.0  ;;  %v1004_v14 = vpop.f32.mrb[4].mxu0 }
  0xf8   : > { %v486_v15 = vpop.f32.mrb[5].mxu0  ;;  %v492_v18 = vadd.f32 %v1004_v14, %v1479_v1 }
  0xf9   : > { %v659_v17 = vadd.f32 %v658_v10, %v627_v13  ;;  %v487_v19 = vadd.f32 %v1479_v1, %v486_v15 }
  0xfa   : > { %v630_v24 = vmax.f32 %v492_v18, 0.0 }
  0xfb   : > { %v629_v20 = vmax.f32 %v487_v19, 0.0  ;;  %v660_v21 = vadd.f32 %v659_v17, %v628_v16  ;;  %v1007_v22 = vpop.f32.mrb[6].mxu0 }
  0xfc   : > { %v496_v23 = vpop.f32.mrb[7].mxu0  ;;  %v502_v26 = vadd.f32 %v1007_v22, %v1479_v1 }
  0xfd   : > { %v661_v25 = vadd.f32 %v660_v21, %v629_v20  ;;  %v497_v27 = vadd.f32 %v1479_v1, %v496_v23 }
  0xfe   : > { %v632_v32 = vmax.f32 %v502_v26, 0.0 }
  0xff   : > { %v631_v28 = vmax.f32 %v497_v27, 0.0  ;;  %v662_v29 = vadd.f32 %v661_v25, %v630_v24  ;;  %v1010_v30 = vpop.f32.mrb[8].mxu0 }
 0x100   : > { %v506_v31 = vpop.f32.mrb[9].mxu0  ;;  %v512_v34 = vadd.f32 %v1010_v30, %v1479_v1 }
 0x101   : > { %v663_v33 = vadd.f32 %v662_v29, %v631_v28  ;;  %v507_v35 = vadd.f32 %v1479_v1, %v506_v31 }
 0x102   : > { %v634_v40 = vmax.f32 %v512_v34, 0.0 }
 0x103   : > { %v633_v36 = vmax.f32 %v507_v35, 0.0  ;;  %v664_v37 = vadd.f32 %v663_v33, %v632_v32  ;;  %v1013_v38 = vpop.f32.mrb[10].mxu0 }
 0x104   : > { %v516_v39 = vpop.f32.mrb[11].mxu0  ;;  %v522_v42 = vadd.f32 %v1013_v38, %v1479_v1 }
 0x105   : > { %v665_v41 = vadd.f32 %v664_v37, %v633_v36  ;;  %v517_v43 = vadd.f32 %v1479_v1, %v516_v39 }
 0x106   : > { %v636_v48 = vmax.f32 %v522_v42, 0.0 }
 0x107   : > { %v635_v44 = vmax.f32 %v517_v43, 0.0  ;;  %v666_v45 = vadd.f32 %v665_v41, %v634_v40  ;;  %v1016_v46 = vpop.f32.mrb[12].mxu0 }
 0x108   : > { %v526_v47 = vpop.f32.mrb[13].mxu0  ;;  %v532_v50 = vadd.f32 %v1016_v46, %v1479_v1 }
 0x109   : > { %v667_v49 = vadd.f32 %v666_v45, %v635_v44  ;;  %v527_v51 = vadd.f32 %v1479_v1, %v526_v47 }
 0x10a   : > { %v638_v56 = vmax.f32 %v532_v50, 0.0 }
 0x10b   : > { %v637_v52 = vmax.f32 %v527_v51, 0.0  ;;  %v668_v53 = vadd.f32 %v667_v49, %v636_v48  ;;  %v1019_v54 = vpop.f32.mrb[14].mxu0 }
 0x10c   : > { %v536_v55 = vpop.f32.mrb[15].mxu0  ;;  %v542_v58 = vadd.f32 %v1019_v54, %v1479_v1 }
 0x10d   : > { %v669_v57 = vadd.f32 %v668_v53, %v637_v52  ;;  %v537_v59 = vadd.f32 %v1479_v1, %v536_v55 }
 0x10e   : > { %v640_v0 = vmax.f32 %v542_v58, 0.0 }
 0x10f   : > { %v639_v60 = vmax.f32 %v537_v59, 0.0  ;;  %v670_v61 = vadd.f32 %v669_v57, %v638_v56  ;;  %v1022_v62 = vpop.f32.mrb[16].mxu0 }
 0x110   : > { %v546_v63 = vpop.f32.mrb[17].mxu0  ;;  %v552_v3 = vadd.f32 %v1022_v62, %v1479_v1 }
 0x111   : > { %v671_v2 = vadd.f32 %v670_v61, %v639_v60  ;;  %v547_v4 = vadd.f32 %v1479_v1, %v546_v63 }
 0x112   : > { %v642_v9 = vmax.f32 %v552_v3, 0.0 }
 0x113   : > { %v641_v5 = vmax.f32 %v547_v4, 0.0  ;;  %v672_v6 = vadd.f32 %v671_v2, %v640_v0  ;;  %v1025_v7 = vpop.f32.mrb[18].mxu0 }
 0x114   : > { %v556_v8 = vpop.f32.mrb[19].mxu0  ;;  %v562_v11 = vadd.f32 %v1025_v7, %v1479_v1 }
 0x115   : > { %v673_v10 = vadd.f32 %v672_v6, %v641_v5  ;;  %v557_v12 = vadd.f32 %v1479_v1, %v556_v8  ;;  %v657_v8 = vld [vmem:[#allocation2] sm:$0x1] }
 0x116   : > { %v644_v17 = vmax.f32 %v562_v11, 0.0 }
 0x117   : > { %v643_v13 = vmax.f32 %v557_v12, 0.0  ;;  %v674_v14 = vadd.f32 %v673_v10, %v642_v9  ;;  %v1028_v15 = vpop.f32.mrb[20].mxu0 }
 0x118   : > { %v566_v16 = vpop.f32.mrb[21].mxu0  ;;  %v572_v19 = vadd.f32 %v1028_v15, %v1479_v1 }
 0x119   : > { %v675_v18 = vadd.f32 %v674_v14, %v643_v13  ;;  %v567_v20 = vadd.f32 %v1479_v1, %v566_v16 }
 0x11a   : > { %v646_v25 = vmax.f32 %v572_v19, 0.0 }
 0x11b   : > { %v645_v21 = vmax.f32 %v567_v20, 0.0  ;;  %v676_v22 = vadd.f32 %v675_v18, %v644_v17  ;;  %v1031_v23 = vpop.f32.mrb[22].mxu0 }
 0x11c   : > { %v576_v24 = vpop.f32.mrb[23].mxu0  ;;  %v582_v27 = vadd.f32 %v1031_v23, %v1479_v1 }
 0x11d   : > { %v677_v26 = vadd.f32 %v676_v22, %v645_v21  ;;  %v577_v28 = vadd.f32 %v1479_v1, %v576_v24 }
 0x11e   : > { %v648_v33 = vmax.f32 %v582_v27, 0.0 }
 0x11f   : > { %v647_v29 = vmax.f32 %v577_v28, 0.0  ;;  %v678_v30 = vadd.f32 %v677_v26, %v646_v25  ;;  %v1034_v31 = vpop.f32.mrb[24].mxu0 }
 0x120   : > { %v586_v32 = vpop.f32.mrb[25].mxu0  ;;  %v592_v35 = vadd.f32 %v1034_v31, %v1479_v1 }
 0x121   : > { %v679_v34 = vadd.f32 %v678_v30, %v647_v29  ;;  %v587_v36 = vadd.f32 %v1479_v1, %v586_v32 }
 0x122   : > { %v650_v41 = vmax.f32 %v592_v35, 0.0 }
 0x123   : > { %v649_v37 = vmax.f32 %v587_v36, 0.0  ;;  %v680_v38 = vadd.f32 %v679_v34, %v648_v33  ;;  %v1037_v39 = vpop.f32.mrb[26].mxu0 }
 0x124   : > { %v596_v40 = vpop.f32.mrb[27].mxu0  ;;  %v602_v43 = vadd.f32 %v1037_v39, %v1479_v1 }
 0x125   : > { %v681_v42 = vadd.f32 %v680_v38, %v649_v37  ;;  %v597_v44 = vadd.f32 %v1479_v1, %v596_v40 }
 0x126   : > { %v652_v49 = vmax.f32 %v602_v43, 0.0 }
 0x127   : > { %v651_v45 = vmax.f32 %v597_v44, 0.0  ;;  %v682_v46 = vadd.f32 %v681_v42, %v650_v41  ;;  %v1040_v47 = vpop.f32.mrb[28].mxu0 }
 0x128   : > { %v606_v48 = vpop.f32.mrb[29].mxu0  ;;  %v612_v51 = vadd.f32 %v1040_v47, %v1479_v1 }
 0x129   : > { %v683_v50 = vadd.f32 %v682_v46, %v651_v45  ;;  %v607_v52 = vadd.f32 %v1479_v1, %v606_v48 }
 0x12a   : > { %v654_v57 = vmax.f32 %v612_v51, 0.0 }
 0x12b   : > { %v653_v53 = vmax.f32 %v607_v52, 0.0  ;;  %v684_v54 = vadd.f32 %v683_v50, %v652_v49  ;;  %v1043_v55 = vpop.f32.mrb[30].mxu0 }
 0x12c   : > { %v616_v56 = vpop.f32.mrb[31].mxu0  ;;  %v622_v59 = vadd.f32 %v1043_v55, %v1479_v1 }
 0x12d   : > { %v685_v58 = vadd.f32 %v684_v54, %v653_v53  ;;  %v617_v60 = vadd.f32 %v1479_v1, %v616_v56  ;;  %v718_v1 = vld [vmem:[%s1574_s4] sm:$0x1] }
 0x12e   : > { %v656_v63 = vmax.f32 %v622_v59, 0.0 }
 0x12f   : > { %v655_v61 = vmax.f32 %v617_v60, 0.0  ;;  %v686_v62 = vadd.f32 %v685_v58, %v654_v57 }
 0x131   : > { %v687_v0 = vadd.f32 %v686_v62, %v655_v61 }
 0x133   : > { %v688_v2 = vadd.f32 %v687_v0, %v656_v63 }
 0x135   : > { %v689_v3 = vrot.slane %v688_v2, 4 }
 0x137   : > { %v690_v4 = vadd.f32 %v689_v3, %v688_v2 }
 0x139   : > { %v691_v5 = vrot.slane %v690_v4, 2 }
 0x13b   : > { %v692_v6 = vadd.f32 %v691_v5, %v690_v4 }
 0x13d   : > { %v693_v7 = vrot.slane %v692_v6, 1 }
 0x13f   : > { %v694_v9 = vadd.f32 %v693_v7, %v692_v6 }
 0x141   : > { %v695_v10 = vadd.f32 %v694_v9, %v657_v8 }
 0x143   : > { %696 = vst [vmem:[#allocation2] sm:$0x1] %v695_v10 }
 0x14a   : > { %v700_v11 = vld [vmem:[#allocation2] sm:$0x1] }
 0x14b   : > { %v701_v12 = vmul.f32 0.00390625, %v700_v11 }
 0x14d   : > { %1077 = vmatmul.mubr.f32.vlgmr.msra.gmra.mrb[0].mxu1 %v701_v12 }
 0x220   : > { %v785_v13 = vpop.f32.mrb[0].mxu1 }
 0x221   : > { %v786_v14 = vadd.f32 %v785_v13, %v718_v1  ;;  %v1078_v15 = vpop.f32.mrb[1].mxu1 }
 0x223   : > { %v789_v16 = vmul.f32 %v786_v14, %v786_v14 }
 0x225   : > { %v791_v17 = vsel %vm790_vm3, %v789_v16, 0.0 }
 0x226   : > { %792 = vadd.xlane.f32.xlu0 %v791_v17 }
 0x2b3   : > { %v793_v18 = vpop.xlane.xlu0 %792 }
 0x2b4   : > { %1169 = vrsqrt.f32 %v793_v18  ;;  %vm796_vm4 = vcmp.eq.f32.partialorder %v793_v18, inf  ;;  %v799_v21 = vand.u32 2147483648, %v793_v18  ;;  %vm798_vm5 = vcmp.eq.f32.partialorder %v793_v18, 0.0 }
 0x2be   : > { %v1170_v19 = vpop.eup %1169 }
 0x2bf   : > { %v795_v20 = vmul.f32 %v1170_v19, %v793_v18 }
 0x2c1   : > { %v797_v22 = vsel %vm796_vm4, %v793_v18, %v795_v20 }
 0x2c2   : > { %v800_v23 = vsel %vm798_vm5, %v799_v21, %v797_v22 }
 0x2c3   : > { %v801_v24 = vmax.f32 %v800_v23, 1e-12 }
 0x2c5   : > { %1171 = vrcp.f32 %v801_v24 }
 0x2cf   : > { %v1172_v25 = vpop.eup %1171 }
 0x2d0   : > { %v803_v26 = vmul.f32 %v1172_v25, %v786_v14 }
 0x2d2   : > { %804 = vst.msk [vmem:[%s239_s15] sm:$0x1] %vm790_vm3, %v803_v26 }
 0x2d3   : > { %1186 = shalt.err (!%p1183_p5)
}
 0x2d4   : > { %s1187_s9 = scalar_lea.hbm %s1522_s25, 16  ;;  %s1191_s12 = scalar_lea.hbm %s1575_s5, 32 }
 0x2d5   : > { %p1188_p6 = scmp.ne.s32.totalorder %s1522_s25, %s1187_s9  ;;  %p1192_p10 = scmp.lt.u32.totalorder %s1522_s25, %s1575_s5 }
 0x2d6   : > { %p1193_p11 = scmp.lt.u32.totalorder %s1191_s12, %s1187_s9  ;;  %p1195_p13 = scmp.lt.u32.totalorder %s1187_s9, %s1522_s25 }
 0x2d7   : > { %p1189_p7 = pnand %p1188_p6, %p1327_p4 }
 0x2d8   : > { %p1194_p12 = por %p1193_p11, %p1192_p10 }
 0x2d9   : > { %p1190_p9 = pneg %p1189_p7 }
 0x2da   : > { %p1196_p0 = por %p1195_p13, %p1194_p12 }
 0x2dc   : > { %p1197_p1 = pnand %p1196_p0, %p1190_p9 }
 0x2de   : > { %1200 = shalt.err (!%p1197_p1)
}
 0x2df   : > { %1111 = dma.vmem_to_hbm [thread:$0]  (%p1327_p4), %s1524_s16, 16, %s1522_s25, %s806_s27  }
 0x2e0 PF: > { %p1117_p2 = scmp.ge.s32.totalorder %s1251_s23, 2  ;;  %s830_s15 = sand.u32 1, %s1231_s18  }
 0x2e1   : > { %s831_s17 = scalar_lea.sflag [#allocation4], %s830_s15 }
 0x2e2   : > { %p1114_p3 = pnand %p1117_p2, %p1334_p8 }
 0x2e4   : > { %1226 = dma.done.wait (!%p1114_p3), %s831_s17, 16  }
 0x2e5   : > { %1228 = vsyncadd (!%p1114_p3), %s831_s17, 4294967280  ;;  %s18_s23 = sadd.s32 1, %s1251_s23   ;;  %s1578_s18 = smov %s1235_s19 }
 0x2e6   : > { %p15_p5 = scmp.ge.s32.totalorder %s18_s23, 4   ;;  %s1579_s19 = smov %s1239_s20 }
 0x2e7   : > { %s1580_s20 = smov %s1340_s6  ;;  %s1581_s21 = smov %s1247_s22 }
 0x2e8   : > { %s1582_s22 = smov %s1584_s26  ;;  %17 = sbr.rel (!%p15_p5) target bundleno = 4 (0x4), region = 83 }
 0x2ef   :  { %835 = vsyncpa [#allocation4], 1 }
 0x2f0   :  { %837 = vsyncpa [#allocation4 + $0x1], 1 }

// kernel: image_caption_encoder_forward.5
= control target key start
LH: loop header
LB: loop body
LE: loop exit
PB: predicated region body
PF: predicated region fallthrough
CT: control target
= control target key end

     0   :  { %21 = vsyncpa [#allocation3], 0  ;;  %v3091_v3 = vmov 0.0|0.0   ;;  %vm3092_vm0 = vmmov 0   ;;  %v3093_v6 = vmov 0.0   ;;  %v3094_v14 = vmov 0   ;;  %s3656_s0 = inlined_call_operand.vmem [shape: s32[2,1], index: 0, kind: input, shape index: {}]   ;;  %s3657_s1 = inlined_call_operand.vmem [shape: f32[8,2,32], index: 1, kind: input, shape index: {}]   ;;  %s3658_s2 = inlined_call_operand.vmem [shape: f32[8,2,32], index: 2, kind: input, shape index: {}]   ;;  %s3659_s3 = inlined_call_operand.vmem [shape: f32[8,2,32], index: 3, kind: input, shape index: {}]   ;;  %s3660_s4 = inlined_call_operand.vmem [shape: f32[32,32], index: 4, kind: input, shape index: {}]   ;;  %s3661_s5 = inlined_call_operand.vmem [shape: f32[32,32], index: 5, kind: input, shape index: {}]   ;;  %s3662_s6 = inlined_call_operand.vmem [shape: f32[32,32], index: 6, kind: input, shape index: {}]   ;;  %s3663_s7 = inlined_call_operand.vmem [shape: f32[1,32], index: 7, kind: input, shape index: {}]   ;;  %s3664_s8 = inlined_call_operand.vmem [shape: f32[1,32], index: 8, kind: input, shape index: {}]   ;;  %s3665_s9 = inlined_call_operand.vmem [shape: f32[1,32], index: 9, kind: input, shape index: {}]   ;;  %s3666_s10 = inlined_call_operand.vmem [shape: f32[32,64], index: 10, kind: input, shape index: {}]   ;;  %s3667_s11 = inlined_call_operand.vmem [shape: f32[1,64], index: 11, kind: input, shape index: {}]   ;;  %s3668_s12 = inlined_call_operand.vmem [shape: f32[64,32], index: 12, kind: input, shape index: {}]   ;;  %s3669_s13 = inlined_call_operand.vmem [shape: f32[1,32], index: 13, kind: input, shape index: {}]   ;;  %s3670_s14 = inlined_call_operand.hbm [shape: f32[2,32], index: 14, kind: output, shape index: {0}]   ;;  %s3671_s15 = inlined_call_operand.hbm [shape: f32[2,32], index: 15, kind: output, shape index: {1}]  }
   0x1   :  { %v53_v0 = vld [vmem:[%s3660_s4] sm:$0xff]  ;;  %v54_v1 = vld [vmem:[%s3660_s4 + $0x8] sm:$0xff]  ;;  %v55_v2 = vld [vmem:[%s3660_s4 + $0x10] sm:$0xff]  ;;  %2789 = vmatprep.subr.bf16.mxu0 %v3091_v3  ;;  %2503 = vmatprep.mubr.msk.f32.mxu0 %vm3092_vm0, %v3093_v6 }
   0x2   :  { %v3187_v4 = vpack.c.bf16 %v54_v1, %v53_v0  ;;  %v56_v5 = vld [vmem:[%s3660_s4 + $0x18] sm:$0xff]  ;;  %v141_v7 = vld [vmem:[%s3661_s5] sm:$0xff]  ;;  %v142_v8 = vld [vmem:[%s3661_s5 + $0x8] sm:$0xff]  ;;  %2795 = vmatprep.subr.bf16.mxu1 %v3091_v3  ;;  %2514 = vmatprep.mubr.msk.f32.mxu1 %vm3092_vm0, %v3093_v6 }
   0x3   :  { %v3201_v9 = vpack.c.bf16 %v142_v8, %v141_v7  ;;  %v143_v10 = vld [vmem:[%s3661_s5 + $0x10] sm:$0xff]  ;;  %v144_v11 = vld [vmem:[%s3661_s5 + $0x18] sm:$0xff]  ;;  %v3212_v12 = vpack.c.bf16 %v56_v5, %v55_v2  ;;  %v224_v13 = vld [vmem:[%s3662_s6] sm:$0xff]  ;;  %2957 = vset.pattern.permute.xlu0 %v3094_v14 }
   0x4   :  { %2791 = vmatpush3.bf16.msra.mxu0 %v3187_v4  ;;  %v3220_v15 = vpack.c.bf16 %v144_v11, %v143_v10  ;;  %v225_v16 = vld [vmem:[%s3662_s6 + $0x8] sm:$0xff]  ;;  %v51_v17 = vld [vmem:[%s3656_s0] sm:$0x3] }
   0x5   :  { %2792 = vmatprep.subr.bf16.mxu0 %v3091_v3  ;;  %2797 = vmatpush3.bf16.msra.mxu1 %v3201_v9 }
   0x6   :  { %22 = vsyncpa [#allocation5], 0  ;;  %2798 = vmatprep.subr.bf16.mxu1 %v3091_v3  ;;  %v3229_v18 = vadd.s32 4294967295, %v51_v17  ;;  %2958 = vset.pattern.permute.xlu1 %v3094_v14  ;;  %v3233_v19 = vpack.c.bf16 %v225_v16, %v224_v13  ;;  %v226_v20 = vld [vmem:[%s3662_s6 + $0x10] sm:$0xff]  ;;  %v227_v21 = vld [vmem:[%s3662_s6 + $0x18] sm:$0xff]  ;;  %vm57_vm3 = vcmask 261120  }
   0x7   :  { %v3249_v23 = vpack.c.bf16 %v227_v21, %v226_v20  ;;  %v52_v25 = vld [vmem:[%s3657_s1] sm:$0x3]  ;;  %v2301_v58 = vld [vmem:[%s3657_s1 + $0x2] sm:$0x3] }
   0x8   :  { %2794 = vmatpush3.bf16.msra.mxu0 %v3212_v12  ;;  %vm326_vm1 = vcmp.eq.s32.totalorder %v3229_v18, 0  ;;  %vm575_vm2 = vcmp.eq.s32.totalorder %v3229_v18, 1  ;;  %v140_v26 = vld [vmem:[%s3658_s2] sm:$0x3]  ;;  %vm824_vm4 = vcmp.eq.s32.totalorder %v3229_v18, 2  ;;  %vm1073_vm5 = vcmp.eq.s32.totalorder %v3229_v18, 3 }
   0x9   :  { %2800 = vmatpush3.bf16.msra.mxu1 %v3220_v15  ;;  %2801 = vmatprep.subr.bf16.mxu0 %v3091_v3  ;;  %v327_v22 = vsel %vm326_vm1, 1, %v3094_v14  ;;  %v576_v24 = vsel %vm575_vm2, 1, %v3094_v14  ;;  %v3280_v28 = vld [vmem:[%s3663_s7] ss:$0 sm:$0xff]  ;;  %v825_v57 = vsel %vm824_vm4, 1, %v3094_v14  ;;  %vm1322_vm6 = vcmp.eq.s32.totalorder %v3229_v18, 4 }
   0xa   :  { %329 = vperm.xlu0 %2957, %v327_v22   ;;  %2807 = vmatprep.subr.bf16.mxu1 %v3091_v3  ;;  %v3285_v32 = vld [vmem:[%s3664_s8] ss:$0 sm:$0xff]  ;;  %v2303_v59 = vld [vmem:[%s3658_s2 + $0x2] sm:$0x3]  ;;  %vm1571_vm7 = vcmp.eq.s32.totalorder %v3229_v18, 5  ;;  %vm1820_vm8 = vcmp.eq.s32.totalorder %v3229_v18, 6 }
   0xb   :  { %2504 = vmatmul.mubr.f32.vlgmr.msra.gmra.mrb[0].mxu0 %v3093_v6  ;;  %v3292_v44 = vld [vmem:[%s3665_s9] ss:$0 sm:$0xff]  ;;  %827 = vperm.xlu1 %2958, %v825_v57   ;;  %vm2069_vm9 = vcmp.eq.s32.totalorder %v3229_v18, 7  ;;  %vm2077_vm2 = vcmask 254976  }
   0xc   :  { %2515 = vmatmul.mubr.f32.vlgmr.msra.gmra.mrb[0].mxu1 %v3093_v6  ;;  %2803 = vmatpush3.bf16.msra.mxu0 %v3233_v19  ;;  %v317_v48 = vld [vmem:[%s3659_s3] sm:$0x3] }
   0xd   :  { %2804 = vmatprep.subr.bf16.mxu0 %v3091_v3  ;;  %2525 = vmatprep.mubr.msk.f32.mxu0 %vm3092_vm0, %v3093_v6 }
   0xe   :  { %2809 = vmatpush3.bf16.msra.mxu1 %v3187_v4  ;;  %2536 = vmatprep.mubr.msk.f32.mxu1 %vm3092_vm0, %v3093_v6 }
   0xf   :  { %2810 = vmatprep.subr.bf16.mxu1 %v3091_v3  ;;  %578 = vperm.xlu0 %2957, %v576_v24   ;;  %v2308_v24 = vld [vmem:[%s3659_s3 + $0x2] sm:$0x3] }
  0x10   :  { %2806 = vmatpush3.bf16.msra.mxu0 %v3249_v23 }
  0x11   :  { %2813 = vmatprep.subr.bf16.mxu0 %v3091_v3 }
  0x12   :  { %2812 = vmatpush3.bf16.msra.mxu1 %v3212_v12 }
  0x13   :  { %2526 = vmatmul.mubr.f32.vlgmr.msra.gmra.mrb[2].mxu0 %v3093_v6  ;;  %2819 = vmatprep.subr.bf16.mxu1 %v3091_v3 }
  0x14   :  { %2815 = vmatpush3.bf16.msra.mxu0 %v3201_v9  ;;  %2547 = vmatprep.mubr.msk.f32.mxu0 %vm3092_vm0, %v3093_v6 }
  0x15   :  { %2816 = vmatprep.subr.bf16.mxu0 %v3091_v3 }
  0x18   :  { %2818 = vmatpush3.bf16.msra.mxu0 %v3220_v15 }
  0x19   :  { %2825 = vmatprep.subr.bf16.mxu0 %v3091_v3 }
  0xde   :  { %v127_v27 = vpop.f32.mrb[0].mxu0 }
  0xdf   :  { %v131_v29 = vadd.f32 %v127_v27, %v52_v25  ;;  %v2505_v30 = vpop.f32.mrb[1].mxu0  ;;  %v211_v31 = vpop.f32.mrb[0].mxu1 }
  0xe0   :  { %v215_v33 = vadd.f32 %v211_v31, %v140_v26  ;;  %v2516_v34 = vpop.f32.mrb[1].mxu1 }
  0xe1   :  { %v139_v35 = vadd.f32 %v3280_v28, %v131_v29 }
  0xe2   :  { %v223_v36 = vadd.f32 %v3285_v32, %v215_v33 }
  0xe3   :  { %v2298_v37 = vmul.f32 -1.442695, %v139_v35  ;;  %v1074_v35 = vsel %vm1073_vm5, 1, %v3094_v14 }
  0xe4   :  { %v2299_v38 = vmul.f32 -1.442695, %v223_v36  ;;  %1076 = vperm.xlu1 %2958, %v1074_v35   ;;  %v2309_v36 = vld [vmem:[%s3657_s1 + $0x4] sm:$0x3] }
  0xe5   :  { %2959 = vpow2.f32 %v2298_v37  ;;  %v2311_v37 = vld [vmem:[%s3658_s2 + $0x4] sm:$0x3] }
  0xe6   :  { %v301_v39 = vpop.f32.mrb[2].mxu0  ;;  %2961 = vpow2.f32 %v2299_v38 }
  0xe7   :  { %v2527_v40 = vpop.f32.mrb[3].mxu0  ;;  %v302_v46 = vadd.f32 %v3292_v44, %v301_v39 }
  0xef   :  { %v2960_v41 = vpop.eup %2959 }
  0xf0   :  { %v308_v42 = vadd.f32 1.0, %v2960_v41  ;;  %v2962_v43 = vpop.eup %2961 }
  0xf1   :  { %v314_v45 = vadd.f32 1.0, %v2962_v43 }
  0xf2   :  { %2963 = vrcp.f32 %v308_v42 }
  0xf3   :  { %2965 = vrcp.f32 %v314_v45 }
  0xfc   :  { %v2964_v47 = vpop.eup %2963 }
  0xfd   :  { %v318_v49 = vmul.f32 %v2964_v47, %v302_v46  ;;  %v2966_v51 = vpop.eup %2965 }
  0xfe   :  { %v321_v52 = vsub.f32 1.0, %v2966_v51  ;;  %v323_v55 = vmul.f32 0.0, %v2966_v51 }
  0xff   :  { %v319_v50 = vadd.f32 %v318_v49, %v317_v48 }
 0x101   :  { %2967 = vtanh.f32 %v319_v50 }
 0x10b   :  { %v2968_v53 = vpop.eup %2967 }
 0x10c   :  { %v322_v54 = vmul.f32 %v2968_v53, %v321_v52 }
 0x10e   :  { %v3298_v56 = vadd.f32 %v323_v55, %v322_v54 }
 0x110   :  { %2537 = vmatmul.mubr.msk.f32.vlgmr.msra.gmra.mrb[2].mxu1 %vm57_vm3, %v3298_v56  ;;  %2548 = vmatmul.mubr.msk.f32.vlgmr.msra.gmra.mrb[4].mxu0 %vm57_vm3, %v3298_v56 }
 0x111   :  { %2821 = vmatpush3.bf16.msra.mxu1 %v3233_v19  ;;  %2558 = vmatprep.mubr.msk.f32.mxu1 %vm3092_vm0, %v3093_v6 }
 0x112   :  { %2822 = vmatprep.subr.bf16.mxu1 %v3091_v3  ;;  %2827 = vmatpush3.bf16.msra.mxu0 %v3187_v4 }
 0x113   :  { %2828 = vmatprep.subr.bf16.mxu0 %v3091_v3  ;;  %2569 = vmatprep.mubr.msk.f32.mxu0 %vm3092_vm0, %v3093_v6 }
 0x115   :  { %2824 = vmatpush3.bf16.msra.mxu1 %v3249_v23 }
 0x116   :  { %2831 = vmatprep.subr.bf16.mxu1 %v3091_v3  ;;  %2830 = vmatpush3.bf16.msra.mxu0 %v3212_v12 }
 0x117   :  { %2837 = vmatprep.subr.bf16.mxu0 %v3091_v3 }
 0x118   :  { %2559 = vmatmul.mubr.msk.f32.vlgmr.msra.gmra.mrb[4].mxu1 %vm57_vm3, %v3298_v56 }
 0x119   :  { %2833 = vmatpush3.bf16.msra.mxu1 %v3201_v9  ;;  %2580 = vmatprep.mubr.msk.f32.mxu1 %vm3092_vm0, %v3093_v6 }
 0x11a   :  { %2834 = vmatprep.subr.bf16.mxu1 %v3091_v3 }
 0x11d   :  { %2836 = vmatpush3.bf16.msra.mxu1 %v3220_v15 }
 0x11e   :  { %2843 = vmatprep.subr.bf16.mxu1 %v3091_v3 }
 0x1e3   :  { %v404_v60 = vpop.f32.mrb[2].mxu1  ;;  %v478_v61 = vpop.f32.mrb[4].mxu0 }
 0x1e4   :  { %v408_v62 = vadd.f32 %v2301_v58, %v404_v60  ;;  %v2538_v63 = vpop.f32.mrb[3].mxu1  ;;  %v2549_v0 = vpop.f32.mrb[5].mxu0  ;;  %v482_v1 = vadd.f32 %v2303_v59, %v478_v61  ;;  %v2316_v58 = vld [vmem:[%s3659_s3 + $0x4] sm:$0x3] }
 0x1e6   :  { %v409_v2 = vadd.f32 %v3280_v28, %v408_v62  ;;  %v483_v7 = vadd.f32 %v3285_v32, %v482_v1 }
 0x1e8   :  { %v2306_v5 = vmul.f32 -1.442695, %v409_v2  ;;  %v2307_v11 = vmul.f32 -1.442695, %v483_v7  ;;  %v2317_v7 = vld [vmem:[%s3657_s1 + $0x6] sm:$0x3] }
 0x1ea   :  { %2969 = vpow2.f32 %v2306_v5  ;;  %v1323_v5 = vsel %vm1322_vm6, 1, %v3094_v14 }
 0x1eb   :  { %v550_v8 = vpop.f32.mrb[4].mxu1  ;;  %2971 = vpow2.f32 %v2307_v11  ;;  %1325 = vperm.xlu0 %2957, %v1323_v5  }
 0x1ec   :  { %v2560_v10 = vpop.f32.mrb[5].mxu1  ;;  %v551_v21 = vadd.f32 %v3292_v44, %v550_v8  ;;  %v2319_v8 = vld [vmem:[%s3658_s2 + $0x6] sm:$0x3] }
 0x1f4   :  { %v2970_v13 = vpop.eup %2969 }
 0x1f5   :  { %v557_v16 = vadd.f32 1.0, %v2970_v13  ;;  %v2972_v17 = vpop.eup %2971 }
 0x1f6   :  { %v563_v20 = vadd.f32 1.0, %v2972_v17 }
 0x1f7   :  { %2973 = vrcp.f32 %v557_v16 }
 0x1f8   :  { %2975 = vrcp.f32 %v563_v20 }
 0x201   :  { %v2974_v22 = vpop.eup %2973 }
 0x202   :  { %v568_v25 = vmul.f32 %v2974_v22, %v551_v21  ;;  %v2976_v27 = vpop.eup %2975 }
 0x203   :  { %v571_v29 = vsub.f32 1.0, %v2976_v27  ;;  %v573_v33 = vmul.f32 %v2976_v27, %v3298_v56 }
 0x204   :  { %v569_v26 = vadd.f32 %v2308_v24, %v568_v25 }
 0x206   :  { %2977 = vtanh.f32 %v569_v26 }
 0x210   :  { %v2978_v30 = vpop.eup %2977 }
 0x211   :  { %v572_v31 = vmul.f32 %v2978_v30, %v571_v29 }
 0x213   :  { %v3339_v34 = vadd.f32 %v573_v33, %v572_v31 }
 0x215   :  { %2570 = vmatmul.mubr.msk.f32.vlgmr.msra.gmra.mrb[6].mxu0 %vm57_vm3, %v3339_v34  ;;  %2581 = vmatmul.mubr.msk.f32.vlgmr.msra.gmra.mrb[6].mxu1 %vm57_vm3, %v3339_v34 }
 0x216   :  { %2839 = vmatpush3.bf16.msra.mxu0 %v3233_v19  ;;  %2591 = vmatprep.mubr.msk.f32.mxu0 %vm3092_vm0, %v3093_v6 }
 0x217   :  { %2840 = vmatprep.subr.bf16.mxu0 %v3091_v3  ;;  %2845 = vmatpush3.bf16.msra.mxu1 %v3187_v4 }
 0x218   :  { %2846 = vmatprep.subr.bf16.mxu1 %v3091_v3  ;;  %2602 = vmatprep.mubr.msk.f32.mxu1 %vm3092_vm0, %v3093_v6 }
 0x21a   :  { %2842 = vmatpush3.bf16.msra.mxu0 %v3249_v23 }
 0x21b   :  { %2849 = vmatprep.subr.bf16.mxu0 %v3091_v3  ;;  %2848 = vmatpush3.bf16.msra.mxu1 %v3212_v12 }
 0x21c   :  { %2855 = vmatprep.subr.bf16.mxu1 %v3091_v3 }
 0x21d   :  { %2592 = vmatmul.mubr.msk.f32.vlgmr.msra.gmra.mrb[8].mxu0 %vm57_vm3, %v3339_v34 }
 0x21e   :  { %2851 = vmatpush3.bf16.msra.mxu0 %v3201_v9  ;;  %2613 = vmatprep.mubr.msk.f32.mxu0 %vm3092_vm0, %v3093_v6 }
 0x21f   :  { %2852 = vmatprep.subr.bf16.mxu0 %v3091_v3 }
 0x222   :  { %2854 = vmatpush3.bf16.msra.mxu0 %v3220_v15 }
 0x223   :  { %2861 = vmatprep.subr.bf16.mxu0 %v3091_v3 }
 0x2e8   :  { %v653_v38 = vpop.f32.mrb[6].mxu0  ;;  %v727_v39 = vpop.f32.mrb[6].mxu1 }
 0x2e9   :  { %v657_v40 = vadd.f32 %v2309_v36, %v653_v38  ;;  %v2571_v41 = vpop.f32.mrb[7].mxu0  ;;  %v2582_v42 = vpop.f32.mrb[7].mxu1  ;;  %v731_v43 = vadd.f32 %v2311_v37, %v727_v39  ;;  %v2324_v37 = vld [vmem:[%s3659_s3 + $0x6] sm:$0x3] }
 0x2eb   :  { %v658_v45 = vadd.f32 %v3280_v28, %v657_v40  ;;  %v732_v47 = vadd.f32 %v3285_v32, %v731_v43 }
 0x2ed   :  { %v2314_v46 = vmul.f32 -1.442695, %v658_v45  ;;  %v2315_v50 = vmul.f32 -1.442695, %v732_v47  ;;  %v1572_v47 = vsel %vm1571_vm7, 1, %v3094_v14 }
 0x2ee   :  { %1574 = vperm.xlu1 %2958, %v1572_v47  }
 0x2ef   :  { %2979 = vpow2.f32 %v2314_v46 }
 0x2f0   :  { %v799_v48 = vpop.f32.mrb[8].mxu0  ;;  %2981 = vpow2.f32 %v2315_v50 }
 0x2f1   :  { %v2593_v49 = vpop.f32.mrb[9].mxu0  ;;  %v800_v55 = vadd.f32 %v3292_v44, %v799_v48  ;;  %v2325_v48 = vld [vmem:[%s3657_s1 + $0x8] sm:$0x3] }
 0x2f2   :  { %v2327_v49 = vld [vmem:[%s3658_s2 + $0x8] sm:$0x3] }
 0x2f9   :  { %v2980_v51 = vpop.eup %2979 }
 0x2fa   :  { %v806_v52 = vadd.f32 1.0, %v2980_v51  ;;  %v2982_v53 = vpop.eup %2981 }
 0x2fb   :  { %v812_v54 = vadd.f32 1.0, %v2982_v53 }
 0x2fc   :  { %2983 = vrcp.f32 %v806_v52 }
 0x2fd   :  { %2985 = vrcp.f32 %v812_v54 }
 0x306   :  { %v2984_v57 = vpop.eup %2983 }
 0x307   :  { %v817_v59 = vmul.f32 %v2984_v57, %v800_v55  ;;  %v2986_v61 = vpop.eup %2985 }
 0x308   :  { %v820_v62 = vsub.f32 1.0, %v2986_v61  ;;  %v822_v1 = vmul.f32 %v2986_v61, %v3339_v34 }
 0x309   :  { %v818_v60 = vadd.f32 %v2316_v58, %v817_v59 }
 0x30b   :  { %2987 = vtanh.f32 %v818_v60 }
 0x315   :  { %v2988_v63 = vpop.eup %2987 }
 0x316   :  { %v821_v0 = vmul.f32 %v2988_v63, %v820_v62 }
 0x318   :  { %v3380_v2 = vadd.f32 %v822_v1, %v821_v0 }
 0x31a   :  { %2603 = vmatmul.mubr.msk.f32.vlgmr.msra.gmra.mrb[8].mxu1 %vm57_vm3, %v3380_v2  ;;  %2614 = vmatmul.mubr.msk.f32.vlgmr.msra.gmra.mrb[10].mxu0 %vm57_vm3, %v3380_v2 }
 0x31b   :  { %2857 = vmatpush3.bf16.msra.mxu1 %v3233_v19  ;;  %2624 = vmatprep.mubr.msk.f32.mxu1 %vm3092_vm0, %v3093_v6 }
 0x31c   :  { %2858 = vmatprep.subr.bf16.mxu1 %v3091_v3  ;;  %2863 = vmatpush3.bf16.msra.mxu0 %v3187_v4 }
 0x31d   :  { %2864 = vmatprep.subr.bf16.mxu0 %v3091_v3  ;;  %2635 = vmatprep.mubr.msk.f32.mxu0 %vm3092_vm0, %v3093_v6 }
 0x31f   :  { %2860 = vmatpush3.bf16.msra.mxu1 %v3249_v23 }
 0x320   :  { %2867 = vmatprep.subr.bf16.mxu1 %v3091_v3  ;;  %2866 = vmatpush3.bf16.msra.mxu0 %v3212_v12 }
 0x321   :  { %2873 = vmatprep.subr.bf16.mxu0 %v3091_v3 }
 0x322   :  { %2625 = vmatmul.mubr.msk.f32.vlgmr.msra.gmra.mrb[10].mxu1 %vm57_vm3, %v3380_v2 }
 0x323   :  { %2869 = vmatpush3.bf16.msra.mxu1 %v3201_v9  ;;  %2646 = vmatprep.mubr.msk.f32.mxu1 %vm3092_vm0, %v3093_v6 }
 0x324   :  { %2870 = vmatprep.subr.bf16.mxu1 %v3091_v3 }
 0x327   :  { %2872 = vmatpush3.bf16.msra.mxu1 %v3220_v15 }
 0x328   :  { %2879 = vmatprep.subr.bf16.mxu1 %v3091_v3 }
 0x3ed   :  { %v902_v10 = vpop.f32.mrb[8].mxu1  ;;  %v976_v11 = vpop.f32.mrb[10].mxu0 }
 0x3ee   :  { %v906_v13 = vadd.f32 %v2317_v7, %v902_v10  ;;  %v2604_v16 = vpop.f32.mrb[9].mxu1  ;;  %v2615_v17 = vpop.f32.mrb[11].mxu0  ;;  %v980_v20 = vadd.f32 %v2319_v8, %v976_v11  ;;  %v2332_v10 = vld [vmem:[%s3659_s3 + $0x8] sm:$0x3] }
 0x3f0   :  { %v907_v21 = vadd.f32 %v3280_v28, %v906_v13  ;;  %v981_v24 = vadd.f32 %v3285_v32, %v980_v20 }
 0x3f2   :  { %v2322_v22 = vmul.f32 -1.442695, %v907_v21  ;;  %v2323_v27 = vmul.f32 -1.442695, %v981_v24 }
 0x3f4   :  { %2989 = vpow2.f32 %v2322_v22 }
 0x3f5   :  { %v1048_v25 = vpop.f32.mrb[10].mxu1  ;;  %2991 = vpow2.f32 %v2323_v27  ;;  %v2335_v27 = vld [vmem:[%s3658_s2 + $0xa] sm:$0x3] }
 0x3f6   :  { %v2626_v26 = vpop.f32.mrb[11].mxu1  ;;  %v1049_v35 = vadd.f32 %v3292_v44, %v1048_v25  ;;  %v1821_v25 = vsel %vm1820_vm8, 1, %v3094_v14 }
 0x3f7   :  { %1823 = vperm.xlu0 %2957, %v1821_v25   ;;  %v2333_v26 = vld [vmem:[%s3657_s1 + $0xa] sm:$0x3] }
 0x3fe   :  { %v2990_v29 = vpop.eup %2989 }
 0x3ff   :  { %v1055_v30 = vadd.f32 1.0, %v2990_v29  ;;  %v2992_v31 = vpop.eup %2991 }
 0x400   :  { %v1061_v33 = vadd.f32 1.0, %v2992_v31 }
 0x401   :  { %2993 = vrcp.f32 %v1055_v30 }
 0x402   :  { %2995 = vrcp.f32 %v1061_v33 }
 0x40b   :  { %v2994_v36 = vpop.eup %2993 }
 0x40c   :  { %v1066_v38 = vmul.f32 %v2994_v36, %v1049_v35  ;;  %v2996_v40 = vpop.eup %2995 }
 0x40d   :  { %v1069_v41 = vsub.f32 1.0, %v2996_v40  ;;  %v1071_v45 = vmul.f32 %v2996_v40, %v3380_v2 }
 0x40e   :  { %v1067_v39 = vadd.f32 %v2324_v37, %v1066_v38 }
 0x410   :  { %2997 = vtanh.f32 %v1067_v39 }
 0x41a   :  { %v2998_v42 = vpop.eup %2997 }
 0x41b   :  { %v1070_v43 = vmul.f32 %v2998_v42, %v1069_v41 }
 0x41d   :  { %v3421_v46 = vadd.f32 %v1071_v45, %v1070_v43 }
 0x41f   :  { %2636 = vmatmul.mubr.msk.f32.vlgmr.msra.gmra.mrb[12].mxu0 %vm57_vm3, %v3421_v46  ;;  %2647 = vmatmul.mubr.msk.f32.vlgmr.msra.gmra.mrb[12].mxu1 %vm57_vm3, %v3421_v46 }
 0x420   :  { %2875 = vmatpush3.bf16.msra.mxu0 %v3233_v19  ;;  %2657 = vmatprep.mubr.msk.f32.mxu0 %vm3092_vm0, %v3093_v6 }
 0x421   :  { %2876 = vmatprep.subr.bf16.mxu0 %v3091_v3  ;;  %2881 = vmatpush3.bf16.msra.mxu1 %v3187_v4 }
 0x422   :  { %2882 = vmatprep.subr.bf16.mxu1 %v3091_v3  ;;  %2668 = vmatprep.mubr.msk.f32.mxu1 %vm3092_vm0, %v3093_v6 }
 0x424   :  { %2878 = vmatpush3.bf16.msra.mxu0 %v3249_v23 }
 0x425   :  { %2885 = vmatprep.subr.bf16.mxu0 %v3091_v3  ;;  %2884 = vmatpush3.bf16.msra.mxu1 %v3212_v12 }
 0x426   :  { %2891 = vmatprep.subr.bf16.mxu1 %v3091_v3 }
 0x427   :  { %2658 = vmatmul.mubr.msk.f32.vlgmr.msra.gmra.mrb[14].mxu0 %vm57_vm3, %v3421_v46 }
 0x428   :  { %2887 = vmatpush3.bf16.msra.mxu0 %v3201_v9  ;;  %2679 = vmatprep.mubr.msk.f32.mxu0 %vm3092_vm0, %v3093_v6 }
 0x429   :  { %2888 = vmatprep.subr.bf16.mxu0 %v3091_v3 }
 0x42c   :  { %2890 = vmatpush3.bf16.msra.mxu0 %v3220_v15 }
 0x42d   :  { %2897 = vmatprep.subr.bf16.mxu0 %v3091_v3 }
 0x4f2   :  { %v1151_v50 = vpop.f32.mrb[12].mxu0  ;;  %v1225_v51 = vpop.f32.mrb[12].mxu1 }
 0x4f3   :  { %v1155_v52 = vadd.f32 %v2325_v48, %v1151_v50  ;;  %v2637_v53 = vpop.f32.mrb[13].mxu0  ;;  %v2648_v54 = vpop.f32.mrb[13].mxu1  ;;  %v1229_v55 = vadd.f32 %v2327_v49, %v1225_v51  ;;  %v2340_v51 = vld [vmem:[%s3659_s3 + $0xa] sm:$0x3] }
 0x4f5   :  { %v1156_v57 = vadd.f32 %v3280_v28, %v1155_v52  ;;  %v1230_v59 = vadd.f32 %v3285_v32, %v1229_v55 }
 0x4f7   :  { %v2330_v58 = vmul.f32 -1.442695, %v1156_v57  ;;  %v2331_v62 = vmul.f32 -1.442695, %v1230_v59 }
 0x4f9   :  { %2999 = vpow2.f32 %v2330_v58 }
 0x4fa   :  { %v1297_v60 = vpop.f32.mrb[14].mxu0  ;;  %3001 = vpow2.f32 %v2331_v62 }
 0x4fb   :  { %v2659_v61 = vpop.f32.mrb[15].mxu0  ;;  %v1298_v7 = vadd.f32 %v3292_v44, %v1297_v60 }
 0x503   :  { %v3000_v63 = vpop.eup %2999 }
 0x504   :  { %v1304_v0 = vadd.f32 1.0, %v3000_v63  ;;  %v3002_v1 = vpop.eup %3001 }
 0x505   :  { %v1310_v5 = vadd.f32 1.0, %v3002_v1 }
 0x506   :  { %3003 = vrcp.f32 %v1304_v0 }
 0x507   :  { %3005 = vrcp.f32 %v1310_v5 }
 0x510   :  { %v3004_v8 = vpop.eup %3003 }
 0x511   :  { %v1315_v11 = vmul.f32 %v3004_v8, %v1298_v7  ;;  %v3006_v16 = vpop.eup %3005 }
 0x512   :  { %v1318_v17 = vsub.f32 1.0, %v3006_v16  ;;  %v1320_v22 = vmul.f32 %v3006_v16, %v3421_v46 }
 0x513   :  { %v1316_v13 = vadd.f32 %v2332_v10, %v1315_v11 }
 0x515   :  { %3007 = vtanh.f32 %v1316_v13 }
 0x51f   :  { %v3008_v20 = vpop.eup %3007 }
 0x520   :  { %v1319_v21 = vmul.f32 %v3008_v20, %v1318_v17 }
 0x522   :  { %v3462_v24 = vadd.f32 %v1320_v22, %v1319_v21  ;;  %v2348_v22 = vld [vmem:[%s3659_s3 + $0xc] sm:$0x3] }
 0x524   :  { %2669 = vmatmul.mubr.msk.f32.vlgmr.msra.gmra.mrb[14].mxu1 %vm57_vm3, %v3462_v24  ;;  %2680 = vmatmul.mubr.msk.f32.vlgmr.msra.gmra.mrb[16].mxu0 %vm57_vm3, %v3462_v24 }
 0x525   :  { %2893 = vmatpush3.bf16.msra.mxu1 %v3233_v19  ;;  %2690 = vmatprep.mubr.msk.f32.mxu1 %vm3092_vm0, %v3093_v6 }
 0x526   :  { %2894 = vmatprep.subr.bf16.mxu1 %v3091_v3  ;;  %2899 = vmatpush3.bf16.msra.mxu0 %v3187_v4 }
 0x527   :  { %2900 = vmatprep.subr.bf16.mxu0 %v3091_v3  ;;  %2701 = vmatprep.mubr.msk.f32.mxu0 %vm3092_vm0, %v3093_v6 }
 0x529   :  { %2896 = vmatpush3.bf16.msra.mxu1 %v3249_v23 }
 0x52a   :  { %2903 = vmatprep.subr.bf16.mxu1 %v3091_v3  ;;  %2902 = vmatpush3.bf16.msra.mxu0 %v3212_v12 }
 0x52b   :  { %2909 = vmatprep.subr.bf16.mxu0 %v3091_v3 }
 0x52c   :  { %2691 = vmatmul.mubr.msk.f32.vlgmr.msra.gmra.mrb[16].mxu1 %vm57_vm3, %v3462_v24 }
 0x52d   :  { %2905 = vmatpush3.bf16.msra.mxu1 %v3201_v9  ;;  %2712 = vmatprep.mubr.msk.f32.mxu1 %vm3092_vm0, %v3093_v6 }
 0x52e   :  { %2906 = vmatprep.subr.bf16.mxu1 %v3091_v3 }
 0x531   :  { %2908 = vmatpush3.bf16.msra.mxu1 %v3220_v15 }
 0x532   :  { %2915 = vmatprep.subr.bf16.mxu1 %v3091_v3 }
 0x5f7   :  { %v1400_v29 = vpop.f32.mrb[14].mxu1  ;;  %v1474_v30 = vpop.f32.mrb[16].mxu0 }
 0x5f8   :  { %v1404_v31 = vadd.f32 %v2333_v26, %v1400_v29  ;;  %v2670_v33 = vpop.f32.mrb[15].mxu1  ;;  %v2681_v35 = vpop.f32.mrb[17].mxu0  ;;  %v1478_v36 = vadd.f32 %v2335_v27, %v1474_v30 }
 0x5fa   :  { %v1405_v37 = vadd.f32 %v3280_v28, %v1404_v31  ;;  %v1479_v39 = vadd.f32 %v3285_v32, %v1478_v36  ;;  %v2351_v36 = vld [vmem:[%s3658_s2 + $0xe] sm:$0x3] }
 0x5fc   :  { %v2338_v38 = vmul.f32 -1.442695, %v1405_v37  ;;  %v2339_v42 = vmul.f32 -1.442695, %v1479_v39 }
 0x5fe   :  { %3009 = vpow2.f32 %v2338_v38 }
 0x5ff   :  { %v1546_v40 = vpop.f32.mrb[16].mxu1  ;;  %3011 = vpow2.f32 %v2339_v42 }
 0x600   :  { %v2692_v41 = vpop.f32.mrb[17].mxu1  ;;  %v1547_v49 = vadd.f32 %v3292_v44, %v1546_v40 }
 0x608   :  { %v3010_v43 = vpop.eup %3009 }
 0x609   :  { %v1553_v45 = vadd.f32 1.0, %v3010_v43  ;;  %v3012_v47 = vpop.eup %3011 }
 0x60a   :  { %v1559_v48 = vadd.f32 1.0, %v3012_v47 }
 0x60b   :  { %3013 = vrcp.f32 %v1553_v45 }
 0x60c   :  { %3015 = vrcp.f32 %v1559_v48 }
 0x615   :  { %v3014_v50 = vpop.eup %3013 }
 0x616   :  { %v1564_v52 = vmul.f32 %v3014_v50, %v1547_v49  ;;  %v3016_v54 = vpop.eup %3015 }
 0x617   :  { %v1567_v55 = vsub.f32 1.0, %v3016_v54  ;;  %v1569_v59 = vmul.f32 %v3016_v54, %v3462_v24 }
 0x618   :  { %v1565_v53 = vadd.f32 %v2340_v51, %v1564_v52 }
 0x61a   :  { %3017 = vtanh.f32 %v1565_v53 }
 0x624   :  { %v3018_v57 = vpop.eup %3017 }
 0x625   :  { %v1568_v58 = vmul.f32 %v3018_v57, %v1567_v55  ;;  %v330_v55 = vpop.permute.xlu0 %329 }
 0x626   :  { %vm331_vm10 = vcmp.eq.s32.totalorder %v330_v55, 1 }
 0x627   :  { %v3503_v60 = vadd.f32 %v1569_v59, %v1568_v58  ;;  %v828_v58 = vpop.permute.xlu1 %827 }
 0x628   :  { %vm829_vm12 = vcmp.eq.s32.totalorder %v828_v58, 1 }
 0x629   :  { %2702 = vmatmul.mubr.msk.f32.vlgmr.msra.gmra.mrb[18].mxu0 %vm57_vm3, %v3503_v60  ;;  %2713 = vmatmul.mubr.msk.f32.vlgmr.msra.gmra.mrb[18].mxu1 %vm57_vm3, %v3503_v60  ;;  %v579_v59 = vpop.permute.xlu0 %578 }
 0x62a   :  { %2911 = vmatpush3.bf16.msra.mxu0 %v3233_v19  ;;  %2723 = vmatprep.mubr.msk.f32.mxu0 %vm3092_vm0, %v3093_v6  ;;  %vm580_vm11 = vcmp.eq.s32.totalorder %v579_v59, 1 }
 0x62b   :  { %2912 = vmatprep.subr.bf16.mxu0 %v3091_v3  ;;  %2917 = vmatpush3.bf16.msra.mxu1 %v3187_v4  ;;  %v2070_v4 = vsel %vm2069_vm9, 1, %v3094_v14 }
 0x62c   :  { %2918 = vmatprep.subr.bf16.mxu1 %v3091_v3  ;;  %2734 = vmatprep.mubr.msk.f32.mxu1 %vm3092_vm0, %v3093_v6 }
 0x62d   :  { %2072 = vperm.xlu1 %2958, %v2070_v4   ;;  %v1077_v4 = vpop.permute.xlu1 %1076 }
 0x62e   :  { %2914 = vmatpush3.bf16.msra.mxu0 %v3249_v23  ;;  %vm1078_vm13 = vcmp.eq.s32.totalorder %v1077_v4, 1 }
 0x62f   :  { %2921 = vmatprep.subr.bf16.mxu0 %v3091_v3  ;;  %2920 = vmatpush3.bf16.msra.mxu1 %v3212_v12  ;;  %v2341_v12 = vld [vmem:[%s3657_s1 + $0xc] sm:$0x3] }
 0x630   :  { %2927 = vmatprep.subr.bf16.mxu1 %v3091_v3 }
 0x631   :  { %2724 = vmatmul.mubr.msk.f32.vlgmr.msra.gmra.mrb[20].mxu0 %vm57_vm3, %v3503_v60 }
 0x632   :  { %2923 = vmatpush3.bf16.msra.mxu0 %v3201_v9  ;;  %2745 = vmatprep.mubr.msk.f32.mxu0 %vm3092_vm0, %v3093_v6  ;;  %v2343_v9 = vld [vmem:[%s3658_s2 + $0xc] sm:$0x3] }
 0x633   :  { %2924 = vmatprep.subr.bf16.mxu0 %v3091_v3 }
 0x636   :  { %2926 = vmatpush3.bf16.msra.mxu0 %v3220_v15 }
 0x637   :  { %2933 = vmatprep.subr.bf16.mxu0 %v3091_v3 }
 0x6fc   :  { %v1649_v61 = vpop.f32.mrb[18].mxu0  ;;  %v1723_v62 = vpop.f32.mrb[18].mxu1 }
 0x6fd   :  { %v1653_v63 = vadd.f32 %v2341_v12, %v1649_v61  ;;  %v2703_v0 = vpop.f32.mrb[19].mxu0  ;;  %v2714_v15 = vpop.f32.mrb[19].mxu1  ;;  %v1727_v1 = vadd.f32 %v2343_v9, %v1723_v62 }
 0x6fe   :  { %v1326_v12 = vpop.permute.xlu0 %1325  ;;  %v1575_v61 = vpop.permute.xlu1 %1574 }
 0x6ff   :  { %v1654_v5 = vadd.f32 %v3280_v28, %v1653_v63  ;;  %v1728_v14 = vadd.f32 %v3285_v32, %v1727_v1  ;;  %vm1327_vm14 = vcmp.eq.s32.totalorder %v1326_v12, 1  ;;  %vm1576_vm15 = vcmp.eq.s32.totalorder %v1575_v61, 1 }
 0x701   :  { %v2346_v18 = vmul.f32 -1.442695, %v1654_v5  ;;  %v2347_v10 = vmul.f32 -1.442695, %v1728_v14 }
 0x702   :  { %v1824_v62 = vpop.permute.xlu0 %1823 }
 0x703   :  { %3019 = vpow2.f32 %v2346_v18 }
 0x704   :  { %v1795_v7 = vpop.f32.mrb[20].mxu0  ;;  %3021 = vpow2.f32 %v2347_v10 }
 0x705   :  { %v2725_v8 = vpop.f32.mrb[21].mxu0  ;;  %v1796_v20 = vadd.f32 %v3292_v44, %v1795_v7  ;;  %v2073_v7 = vpop.permute.xlu1 %2072 }
 0x706   :  { %vm2074_vm1 = vcmp.eq.s32.totalorder %v2073_v7, 1 }
 0x70d   :  { %v3020_v11 = vpop.eup %3019 }
 0x70e   :  { %v1802_v13 = vadd.f32 1.0, %v3020_v11  ;;  %v3022_v16 = vpop.eup %3021 }
 0x70f   :  { %v1808_v17 = vadd.f32 1.0, %v3022_v16 }
 0x710   :  { %3023 = vrcp.f32 %v1802_v13 }
 0x711   :  { %3025 = vrcp.f32 %v1808_v17  ;;  %v2095_v17 = vld [vmem:[%s3666_s10 + $0x18] sm:$0xff] }
 0x71a   :  { %v3024_v21 = vpop.eup %3023 }
 0x71b   :  { %v1813_v25 = vmul.f32 %v3024_v21, %v1796_v20  ;;  %v3026_v27 = vpop.eup %3025  ;;  %v2177_v21 = vld [vmem:[%s3668_s12] sm:$0xff] }
 0x71c   :  { %v1816_v29 = vsub.f32 1.0, %v3026_v27  ;;  %v1818_v33 = vmul.f32 %v3026_v27, %v3503_v60  ;;  %v2180_v27 = vld [vmem:[%s3668_s12 + $0x18] sm:$0xff] }
 0x71d   :  { %v1814_v26 = vadd.f32 %v2348_v22, %v1813_v25  ;;  %v2178_v22 = vld [vmem:[%s3668_s12 + $0x8] sm:$0xff]  ;;  %v2179_v25 = vld [vmem:[%s3668_s12 + $0x10] sm:$0xff] }
 0x71f   :  { %3027 = vtanh.f32 %v1814_v26  ;;  %v2940_v26 = vpack.c.bf16 %v2178_v22, %v2177_v21 }
 0x729   :  { %v3028_v30 = vpop.eup %3027 }
 0x72a   :  { %v1817_v31 = vmul.f32 %v3028_v30, %v1816_v29  ;;  %v2943_v29 = vpack.c.bf16 %v2180_v27, %v2179_v25  ;;  %v2181_v30 = vld [vmem:[%s3668_s12 + $0x20] sm:$0xff] }
 0x72c   :  { %v3544_v35 = vadd.f32 %v1818_v33, %v1817_v31  ;;  %v2182_v31 = vld [vmem:[%s3668_s12 + $0x28] sm:$0xff] }
 0x72d   :  { %v2946_v33 = vpack.c.bf16 %v2182_v31, %v2181_v30 }
 0x72e   :  { %2735 = vmatmul.mubr.msk.f32.vlgmr.msra.gmra.mrb[20].mxu1 %vm57_vm3, %v3544_v35  ;;  %2746 = vmatmul.mubr.msk.f32.vlgmr.msra.gmra.mrb[22].mxu0 %vm57_vm3, %v3544_v35 }
 0x72f   :  { %2929 = vmatpush3.bf16.msra.mxu1 %v3233_v19  ;;  %2756 = vmatprep.mubr.msk.f32.mxu1 %vm3092_vm0, %v3093_v6  ;;  %v2349_v19 = vld [vmem:[%s3657_s1 + $0xe] sm:$0x3] }
 0x730   :  { %2930 = vmatprep.subr.bf16.mxu1 %v3091_v3  ;;  %2767 = vmatprep.mubr.msk.f32.mxu0 %vm3092_vm0, %v3093_v6 }
 0x733   :  { %2932 = vmatpush3.bf16.msra.mxu1 %v3249_v23 }
 0x734   :  { %2939 = vmatprep.subr.bf16.mxu1 %v3091_v3 }
 0x736   :  { %2757 = vmatmul.mubr.msk.f32.vlgmr.msra.gmra.mrb[22].mxu1 %vm57_vm3, %v3544_v35 }
 0x737   :  { %2786 = vmatprep.mubr.msk.f32.mxu1 %vm3092_vm0, %v3093_v6  ;;  %vm1825_vm0 = vcmp.eq.s32.totalorder %v1824_v62, 1  ;;  %2941 = vmatpush3.bf16.msra.mxu1 %v2940_v26 }
 0x738   :  { %2942 = vmatprep.subr.bf16.mxu1 %v3091_v3 }
 0x73b   :  { %2944 = vmatpush3.bf16.msra.mxu1 %v2943_v29 }
 0x73c   :  { %2945 = vmatprep.subr.bf16.mxu1 %v3091_v3 }
 0x73f   :  { %2947 = vmatpush3.bf16.msra.mxu1 %v2946_v33 }
 0x740   :  { %2948 = vmatprep.subr.bf16.mxu1 %v3091_v3 }
 0x801   :  { %v1898_v37 = vpop.f32.mrb[20].mxu1  ;;  %v1972_v38 = vpop.f32.mrb[22].mxu0 }
 0x802   :  { %v1902_v39 = vadd.f32 %v2349_v19, %v1898_v37  ;;  %v2736_v23 = vpop.f32.mrb[21].mxu1  ;;  %v2747_v40 = vpop.f32.mrb[23].mxu0  ;;  %v1976_v41 = vadd.f32 %v2351_v36, %v1972_v38 }
 0x804   :  { %v1903_v42 = vadd.f32 %v3280_v28, %v1902_v39  ;;  %v1977_v45 = vadd.f32 %v3285_v32, %v1976_v41  ;;  %v2356_v28 = vld [vmem:[%s3659_s3 + $0xe] sm:$0x3]  ;;  %s3095_s3 = smov [#allocation2]  }
 0x805   :  { %s2273_s7 = sshll.u32 %s3095_s3, 4  ;;  %s2274_s7 = int_to_ptr.vmem [resolvable:$true] %s2273_s7 }
 0x806   :  { %v2354_v43 = vmul.f32 -1.442695, %v1903_v42  ;;  %v2355_v48 = vmul.f32 -1.442695, %v1977_v45  ;;  %v2184_v42 = vld [vmem:[%s3668_s12 + $0x38] sm:$0xff]  ;;  %s3043_s17 = scalar_lea.vmem %s2274_s7, 32  ;;  %p3048_p1 = scmp.lt.s32.totalorder %s2274_s7, %s2274_s7 }
 0x807   :  { %v2357_v45 = vld [vmem:[%s3667_s11] ss:$0 sm:$0xff]  ;;  %p3044_p0 = scmp.ne.s32.totalorder %s2274_s7, %s3043_s17  ;;  %p3049_p2 = scmp.lt.s32.totalorder %s3043_s17, %s3043_s17 }
 0x808   :  { %3029 = vpow2.f32 %v2354_v43 }
 0x809   :  { %v2044_v6 = vpop.f32.mrb[22].mxu1  ;;  %3031 = vpow2.f32 %v2355_v48  ;;  %p3050_p3 = por %p3049_p2, %p3048_p1 }
 0x80a   :  { %v2758_v47 = vpop.f32.mrb[23].mxu1  ;;  %v2045_v53 = vadd.f32 %v3292_v44, %v2044_v6  ;;  %v332_v44 = vsel %vm331_vm10, %v3298_v56, 0.0 }
 0x80b   :  { %v581_v63 = vsel %vm580_vm11, %v3339_v34, %v332_v44  ;;  %p3051_p4 = pnand %p3050_p3, %p3044_p0 }
 0x80c   :  { %v830_v1 = vsel %vm829_vm12, %v3380_v2, %v581_v63 }
 0x80d   :  { %v1079_v5 = vsel %vm1078_vm13, %v3421_v46, %v830_v1  ;;  %v2092_v46 = vld [vmem:[%s3666_s10] sm:$0xff] }
 0x80e   :  { %v1328_v8 = vsel %vm1327_vm14, %v3462_v24, %v1079_v5  ;;  %v2093_v24 = vld [vmem:[%s3666_s10 + $0x8] sm:$0xff] }
 0x80f   :  { %v1577_v56 = vsel %vm1576_vm15, %v3503_v60, %v1328_v8  ;;  %v2094_v60 = vld [vmem:[%s3666_s10 + $0x10] sm:$0xff]  ;;  %v2934_v16 = vpack.c.bf16 %v2093_v24, %v2092_v46 }
 0x810   :  { %v1826_v34 = vsel %vm1825_vm0, %v3544_v35, %v1577_v56  ;;  %v2937_v20 = vpack.c.bf16 %v2095_v17, %v2094_v60 }
 0x811   :  { %2935 = vmatpush3.bf16.msra.mxu0 %v2934_v16 }
 0x812   :  { %v3030_v49 = vpop.eup %3029  ;;  %2936 = vmatprep.subr.bf16.mxu0 %v3091_v3  ;;  %v2183_v3 = vld [vmem:[%s3668_s12 + $0x30] sm:$0xff] }
 0x813   :  { %v2051_v50 = vadd.f32 1.0, %v3030_v49  ;;  %v3032_v51 = vpop.eup %3031  ;;  %v2949_v43 = vpack.c.bf16 %v2184_v42, %v2183_v3 }
 0x814   :  { %v2057_v52 = vadd.f32 1.0, %v3032_v51 }
 0x815   :  { %3033 = vrcp.f32 %v2051_v50  ;;  %2938 = vmatpush3.bf16.msra.mxu0 %v2937_v20  ;;  %2950 = vmatpush3.bf16.msra.mxu1 %v2949_v43 }
 0x816   :  { %3035 = vrcp.f32 %v2057_v52 }
 0x81f   :  { %v3034_v54 = vpop.eup %3033 }
 0x820   :  { %v2062_v32 = vmul.f32 %v3034_v54, %v2045_v53  ;;  %v3036_v9 = vpop.eup %3035 }
 0x821   :  { %v2065_v0 = vsub.f32 1.0, %v3036_v9  ;;  %v2067_v14 = vmul.f32 %v3036_v9, %v3544_v35 }
 0x822   :  { %v2063_v57 = vadd.f32 %v2356_v28, %v2062_v32 }
 0x824   :  { %3037 = vtanh.f32 %v2063_v57 }
 0x82e   :  { %v3038_v15 = vpop.eup %3037 }
 0x82f   :  { %v2066_v18 = vmul.f32 %v3038_v15, %v2065_v0 }
 0x831   :  { %v2068_v10 = vadd.f32 %v2067_v14, %v2066_v18 }
 0x833   :  { %v2075_v11 = vsel %vm2074_vm1, %v2068_v10, %v1826_v34 }
 0x834   :  { %v2076_v13 = vmul.f32 %v2075_v11, %v2075_v11 }
 0x836   :  { %v2078_v2 = vsel %vm2077_vm2, %v2076_v13, 0.0 }
 0x837   :  { %2079 = vadd.xlane.f32.xlu0 %v2078_v2 }
 0x8c4   :  { %v2080_v35 = vpop.xlane.xlu0 %2079 }
 0x8c5   :  { %3039 = vrsqrt.f32 %v2080_v35  ;;  %vm2083_vm4 = vcmp.eq.f32.partialorder %v2080_v35, inf  ;;  %v2086_v37 = vand.u32 2147483648, %v2080_v35  ;;  %vm2085_vm5 = vcmp.eq.f32.partialorder %v2080_v35, 0.0 }
 0x8cf   :  { %v3040_v19 = vpop.eup %3039 }
 0x8d0   :  { %v2082_v36 = vmul.f32 %v3040_v19, %v2080_v35 }
 0x8d2   :  { %v2084_v38 = vsel %vm2083_vm4, %v2080_v35, %v2082_v36 }
 0x8d3   :  { %v2087_v39 = vsel %vm2085_vm5, %v2086_v37, %v2084_v38 }
 0x8d4   :  { %v2088_v23 = vmax.f32 %v2087_v39, 1e-12 }
 0x8d6   :  { %3041 = vrcp.f32 %v2088_v23 }
 0x8e0   :  { %v3042_v40 = vpop.eup %3041 }
 0x8e1   :  { %v2090_v41 = vmul.f32 %v3042_v40, %v2075_v11 }
 0x8e3   :  { %2768 = vmatmul.mubr.msk.f32.vlgmr.msra.gmra.mrb[24].mxu0 %vm57_vm3, %v2090_v41  ;;  %2091 = vst.msk [vmem:[#allocation2] sm:$0x3] %vm2077_vm2, %v2090_v41  ;;  %vm2192_vm3 = vcmask 523264  }
 0x9b6   :  { %v2172_v6 = vpop.f32.mrb[24].mxu0 }
 0x9b7   :  { %v2173_v47 = vadd.f32 %v2357_v45, %v2172_v6  ;;  %v2769_v48 = vpop.f32.mrb[25].mxu0 }
 0x9b9   :  { %v2176_v49 = vmax.f32 %v2173_v47, 0.0 }
 0x9bb   :  { %2787 = vmatmul.mubr.msk.f32.vlgmr.msra.gmra.mrb[24].mxu1 %vm2192_vm3, %v2176_v49 }
 0x9bc   :  { %3054 = shalt.err (!%p3051_p4)
}
 0x9bd   :  { %s3055_s11 = scalar_lea.hbm %s3670_s14, 32 }
 0x9be   :  { %p3056_p5 = scmp.ne.s32.totalorder %s3670_s14, %s3055_s11  ;;  %p3059_p6 = scmp.lt.u32.totalorder %s3055_s11, %s3670_s14 }
 0x9c0   :  { %p3061_p7 = pnand %p3059_p6, %p3056_p5 }
 0x9c2   :  { %3064 = shalt.err (!%p3061_p7)
}
 0x9c3   :  { %2276 = dma.vmem_to_hbm [thread:$0]  %s2274_s7, 32, %s3670_s14, [#allocation3]   ;;  %v2359_v50 = vld [vmem:[%s3669_s13] ss:$0 sm:$0xff] }
 0x9c4   :  { %s3096_s24 = smov [#allocation4]  }
 0x9c5   :  { %s2283_s0 = sshll.u32 %s3096_s24, 4  ;;  %s2284_s0 = int_to_ptr.vmem [resolvable:$true] %s2283_s0 }
 0x9c6   :  { %s3065_s25 = scalar_lea.vmem %s2284_s0, 32  ;;  %p3070_p9 = scmp.lt.s32.totalorder %s2284_s0, %s2284_s0 }
 0x9c7   :  { %p3066_p8 = scmp.ne.s32.totalorder %s2284_s0, %s3065_s25  ;;  %p3071_p10 = scmp.lt.s32.totalorder %s3065_s25, %s3065_s25 }
 0x9c9   :  { %p3072_p11 = por %p3071_p10, %p3070_p9 }
 0x9cb   :  { %p3073_p12 = pnand %p3072_p11, %p3066_p8 }
 0xa8e   :  { %v2262_v51 = vpop.f32.mrb[24].mxu1 }
 0xa8f   :  { %v2263_v52 = vadd.f32 %v2359_v50, %v2262_v51  ;;  %v2788_v53 = vpop.f32.mrb[25].mxu1 }
 0xa91   :  { %2266 = vst.msk [vmem:[#allocation4] sm:$0x3] %vm2077_vm2, %v2263_v52 }
 0xa92   :  { %3076 = shalt.err (!%p3073_p12)
}
 0xa93   :  { %s3077_s6 = scalar_lea.hbm %s3671_s15, 32 }
 0xa94   :  { %p3078_p13 = scmp.ne.s32.totalorder %s3671_s15, %s3077_s6  ;;  %p3081_p0 = scmp.lt.u32.totalorder %s3077_s6, %s3671_s15 }
 0xa96   :  { %p3083_p1 = pnand %p3081_p0, %p3078_p13 }
 0xa98   :  { %3086 = shalt.err (!%p3083_p1)
}
 0xa99   :  { %2286 = dma.vmem_to_hbm [thread:$0]  %s2284_s0, 32, %s3671_s15, [#allocation5]  }
 0xa9a   :  { %3087 = dma.done.wait [#allocation3], 32  }
 0xa9b   :  { %3088 = vsyncadd [#allocation3], 4294967264 }
 0xa9c   :  { %3089 = dma.done.wait [#allocation5], 32  }
 0xa9d   :  { %3090 = vsyncadd [#allocation5], 4294967264 }
 0xa9e   :  { %2293 = vsyncpa [#allocation3], 1 }
 0xa9f   :  { %2294 = vsyncpa [#allocation5], 1 }

</bundles_post_ra>
